<compile_context>
chip_gen: v6e
topology: v6e:2x2x1
jax: 0.10.0
libtpu: 0.0.40
codegen_flags: <defaults>
</compile_context>

<pallas_src>
import random

import jax
import jax.numpy as jnp
from jax.experimental import pallas as pl
from jax.experimental.pallas import tpu as pltpu

# ----------------------------- model dims -----------------------------------
N_LAYERS = 2
HID_DIM = 32
EMB_DIM = 16
INPUT_DIM = 32     # encoder vocab
OUTPUT_DIM = 32    # decoder vocab (trg_vocab_size)
SRC_LEN = 8
TRG_LEN = 8
BATCH = 2

B_PAD = 8                  # pad batch to the f32 sublane tile
GATES = 4 * HID_DIM        # 128 -> lane-dense fused-gate width
OUT_PAD = 128              # lane-dense padded logits / slab width
NEG_INF = -1e30

_VMEM = pl.BlockSpec(memory_space=pltpu.MemorySpace.VMEM)
_SMEM = pl.BlockSpec(memory_space=pltpu.MemorySpace.SMEM)


# ------------------------- packed weight-slab layout --------------------------
def _slab_offsets():
    off, row = {}, 0

    def add(name, rows):
        nonlocal row
        off[name] = (row, row + rows)
        row += rows

    add("enc0_wu", EMB_DIM + HID_DIM)   # [w;u] stacked, fused gates i|f|g|o
    add("enc1_wu", HID_DIM + HID_DIM)
    add("dec0_wu", EMB_DIM + HID_DIM)
    add("dec1_wu", HID_DIM + HID_DIM)
    add("fc_w", HID_DIM)                # [HID, 128] (cols >= OUTPUT_DIM zero)
    add("dec_emb", OUTPUT_DIM)          # [vocab, 128] (cols >= EMB_DIM zero)
    add("enc0_b", B_PAD)                # biases pre-tiled to [B_PAD, 128]
    add("enc1_b", B_PAD)
    add("dec0_b", B_PAD)
    add("dec1_b", B_PAD)
    add("fc_b", B_PAD)
    off["rows"] = row                   # 328 — every offset is sublane(8)-aligned
    return off


_OFF = _slab_offsets()
SLAB_ROWS = _OFF["rows"]


def _slab(w_ref, name):
    lo, hi = _OFF[name]
    return w_ref[lo:hi, :]


# ----------------------------- fused kernel ----------------------------------
def _lstm_cell(x, h, c, wu, b):
    """One LSTM cell step: fused [x | h] @ [W; U] dot + full-width activations.

    x: [B_PAD, in_dim], h/c: [B_PAD, HID_DIM]
    wu: [in_dim + HID_DIM, 4*HID_DIM], b: [B_PAD, 4*HID_DIM] (pre-tiled)
    Gate order along lanes (PyTorch): i | f | g | o.
    """
    xh = jnp.concatenate([x, h], axis=-1)
    z = jnp.dot(xh, wu, preferred_element_type=jnp.float32) + b
    s = jax.nn.sigmoid(z)     # full-width EUP op
    th = jnp.tanh(z)          # full-width EUP op
    i = s[:, 0 * HID_DIM:1 * HID_DIM]
    f = s[:, 1 * HID_DIM:2 * HID_DIM]
    g = th[:, 2 * HID_DIM:3 * HID_DIM]
    o = s[:, 3 * HID_DIM:4 * HID_DIM]
    c_new = f * c + i * g
    h_new = o * jnp.tanh(c_new)
    return h_new, c_new


def _seq2seq_kernel(tf_ref,        # SMEM [TRG_LEN] int32 teacher-forcing flags
                    src_emb_ref,   # [SRC_LEN, B_PAD, EMB_DIM]
                    trg_emb_ref,   # [TRG_LEN, B_PAD, EMB_DIM]
                    w_ref,         # [SLAB_ROWS, 128] packed weights/biases/emb
                    out_ref,       # [TRG_LEN, B_PAD, OUT_PAD]
                    x_ref):        # VMEM scratch [B_PAD, EMB_DIM]: next decoder input
    zeros_state = jnp.zeros((B_PAD, HID_DIM), jnp.float32)
    h0, c0, h1, c1 = zeros_state, zeros_state, zeros_state, zeros_state

    # ---------------- encoder ----------------
    enc0_wu = _slab(w_ref, "enc0_wu")
    enc1_wu = _slab(w_ref, "enc1_wu")
    enc0_b = _slab(w_ref, "enc0_b")
    enc1_b = _slab(w_ref, "enc1_b")
    for t in range(SRC_LEN):
        x = src_emb_ref[t]
        h0, c0 = _lstm_cell(x, h0, c0, enc0_wu, enc0_b)
        h1, c1 = _lstm_cell(h0, h1, c1, enc1_wu, enc1_b)
        # TODO(synk): inter-layer dropout of nn.LSTM is omitted (inference-deterministic).

    # ---------------- decoder ----------------
    out_ref[0] = jnp.zeros((B_PAD, OUT_PAD), jnp.float32)   # outputs[0] stays zero

    dec0_wu = _slab(w_ref, "dec0_wu")
    dec1_wu = _slab(w_ref, "dec1_wu")
    dec0_b = _slab(w_ref, "dec0_b")
    dec1_b = _slab(w_ref, "dec1_b")
    fc_w = _slab(w_ref, "fc_w")
    fc_b = _slab(w_ref, "fc_b")
    dec_emb = _slab(w_ref, "dec_emb")

    lane = jax.lax.broadcasted_iota(jnp.int32, (B_PAD, OUT_PAD), 1)
    vocab_iota = jax.lax.broadcasted_iota(jnp.int32, (B_PAD, OUTPUT_DIM), 1)

    x_ref[...] = trg_emb_ref[0]                     # input = trg[0, :]
    for t in range(1, TRG_LEN):
        x = x_ref[...]
        h0, c0 = _lstm_cell(x, h0, c0, dec0_wu, dec0_b)
        h1, c1 = _lstm_cell(h0, h1, c1, dec1_wu, dec1_b)

        # FC projection, lane-dense 128-wide store (cols >= OUTPUT_DIM are zero).
        logits = jnp.dot(h1, fc_w, preferred_element_type=jnp.float32) + fc_b
        out_ref[t] = logits

        if t < TRG_LEN - 1:   # last step's "next input" is never used — skip statically
            @pl.when(tf_ref[t] != 0)
            def _():
                # teacher forcing: next input = trg[t]
                x_ref[...] = trg_emb_ref[t]

            @pl.when(tf_ref[t] == 0)
            def _():
                # top1 = argmax over real OUTPUT_DIM lanes (first max index, like torch),
                # then embed it via one-hot @ dec_emb on the MXU.
                masked = jnp.where(lane < OUTPUT_DIM, logits, NEG_INF)
                m = jnp.max(masked, axis=-1, keepdims=True)                 # [B_PAD, 1]
                idx = jnp.min(jnp.where(masked == m, lane, OUT_PAD),
                              axis=-1, keepdims=True)                       # [B_PAD, 1]
                onehot = (vocab_iota == idx).astype(jnp.float32)            # [B_PAD, V]
                pred = jnp.dot(onehot, dec_emb,
                               preferred_element_type=jnp.float32)          # [B_PAD, 128]
                x_ref[...] = pred[:, 0:EMB_DIM]


# ----------------------------- host wrapper -----------------------------------
@jax.jit
def seq2seq_forward(src, trg, tf_mask, params):
    """src/trg: [seq_len, batch] int32; tf_mask: [trg_len] int32 -> [trg_len, batch, OUTPUT_DIM]."""
    batch = src.shape[1]
    # Embedding gathers are data-independent -> plain JAX; pad batch to 8 sublanes.
    src_emb = jnp.take(params["enc_emb"], src, axis=0)      # [SRC_LEN, B, EMB]
    trg_emb = jnp.take(params["dec_emb"], trg, axis=0)      # [TRG_LEN, B, EMB]
    pad = ((0, 0), (0, B_PAD - batch), (0, 0))
    src_emb = jnp.pad(src_emb, pad)
    trg_emb = jnp.pad(trg_emb, pad)

    out = pl.pallas_call(
        _seq2seq_kernel,
        out_shape=jax.ShapeDtypeStruct((TRG_LEN, B_PAD, OUT_PAD), jnp.float32),
        in_specs=[_SMEM, _VMEM, _VMEM, _VMEM],
        out_specs=_VMEM,
        scratch_shapes=[pltpu.VMEM((B_PAD, EMB_DIM), jnp.float32)],
    )(tf_mask, src_emb, trg_emb, params["slab"])

    return out[:, :batch, :OUTPUT_DIM]


# ----------------------------- parameter init ----------------------------------
def init_params(key):
    k = 1.0 / jnp.sqrt(jnp.float32(HID_DIM))

    def uniform(key, shape):
        return jax.random.uniform(key, shape, jnp.float32, -k, k)

    keys = iter(jax.random.split(key, 64))

    enc_emb = uniform(next(keys), (INPUT_DIM, EMB_DIM))
    dec_emb = uniform(next(keys), (OUTPUT_DIM, EMB_DIM))

    def lstm_layer(in_dim):
        w = uniform(next(keys), (in_dim, GATES))             # fused gates [i|f|g|o]
        u = uniform(next(keys), (HID_DIM, GATES))
        b = (uniform(next(keys), (1, GATES))
             + uniform(next(keys), (1, GATES)))              # b_ih + b_hh
        wu = jnp.concatenate([w, u], axis=0)                 # stacked [W; U]
        return wu, b

    enc0_wu, enc0_b = lstm_layer(EMB_DIM)
    enc1_wu, enc1_b = lstm_layer(HID_DIM)
    dec0_wu, dec0_b = lstm_layer(EMB_DIM)
    dec1_wu, dec1_b = lstm_layer(HID_DIM)

    fc_w = uniform(next(keys), (HID_DIM, OUTPUT_DIM))
    fc_b = uniform(next(keys), (1, OUTPUT_DIM))
    fc_w_p = jnp.pad(fc_w, ((0, 0), (0, OUT_PAD - OUTPUT_DIM)))
    fc_b_p = jnp.pad(fc_b, ((0, 0), (0, OUT_PAD - OUTPUT_DIM)))
    dec_emb_p = jnp.pad(dec_emb, ((0, 0), (0, OUT_PAD - EMB_DIM)))

    def tile_bias(b):            # [1, 128] -> [B_PAD, 128] (pre-broadcast for the kernel)
        return jnp.tile(b, (B_PAD, 1))

    slab = jnp.concatenate([
        enc0_wu, enc1_wu, dec0_wu, dec1_wu,   # 48 + 64 + 48 + 64 rows
        fc_w_p,                               # 32
        dec_emb_p,                            # 32
        tile_bias(enc0_b), tile_bias(enc1_b),
        tile_bias(dec0_b), tile_bias(dec1_b),
        tile_bias(fc_b_p),                    # 5 * 8
    ], axis=0)
    assert slab.shape == (SLAB_ROWS, OUT_PAD)

    return {"enc_emb": enc_emb, "dec_emb": dec_emb, "slab": slab}


# ----------------------------- main ---------------------------------------------
if __name__ == "__main__":
    random.seed(0)  # deterministic teacher-forcing coin flips (mirrors random.random())

    key = jax.random.PRNGKey(0)
    k_params, k_src, k_trg = jax.random.split(key, 3)

    params = init_params(k_params)
    src = jax.random.randint(k_src, (SRC_LEN, BATCH), 0, INPUT_DIM, dtype=jnp.int32)
    trg = jax.random.randint(k_trg, (TRG_LEN, BATCH), 0, OUTPUT_DIM, dtype=jnp.int32)

    # Runtime teacher-forcing coin flips, drawn in reference order (t = 1 .. trg_len-1).
    flips = [0]  # index 0 unused
    for _ in range(1, TRG_LEN):
        flips.append(int(random.random() < 0.5))
    tf_mask = jnp.asarray(flips, dtype=jnp.int32)

    outputs = seq2seq_forward(src, trg, tf_mask, params)
    outputs = jax.block_until_ready(outputs)

    assert outputs.shape == (TRG_LEN, BATCH, OUTPUT_DIM)
    assert outputs.dtype == jnp.float32
    print("KERNEL_OK")
</pallas_src>

<mosaic_0001>
module attributes {stable_mosaic.version = 11 : i64} {
  func.func @_seq2seq_kernel(%arg0: memref<8xi32, #tpu.memory_space<smem>>, %arg1: memref<8x8x16xf32, #tpu.memory_space<vmem>>, %arg2: memref<8x8x16xf32, #tpu.memory_space<vmem>>, %arg3: memref<328x128xf32, #tpu.memory_space<vmem>>, %arg4: memref<8x8x128xf32, #tpu.memory_space<vmem>>, %arg5: memref<8x16xf32, #tpu.memory_space<vmem>>) attributes {dimension_semantics = [], scalar_prefetch = 0 : i64, scratch_operands = 1 : i64, tpu.core_type = #tpu.core_type<tc>} {
    %cst = arith.constant 0.000000e+00 : f32
    %0 = vector.broadcast %cst : f32 to vector<8x32xf32>
    %c0 = arith.constant 0 : index
    %c0_0 = arith.constant 0 : index
    %1 = vector.load %arg3[%c0, %c0_0] : memref<328x128xf32, #tpu.memory_space<vmem>>, vector<48x128xf32>
    %c48 = arith.constant 48 : index
    %c0_1 = arith.constant 0 : index
    %2 = vector.load %arg3[%c48, %c0_1] : memref<328x128xf32, #tpu.memory_space<vmem>>, vector<64x128xf32>
    %c288 = arith.constant 288 : index
    %c0_2 = arith.constant 0 : index
    %3 = vector.load %arg3[%c288, %c0_2] : memref<328x128xf32, #tpu.memory_space<vmem>>, vector<8x128xf32>
    %c296 = arith.constant 296 : index
    %c0_3 = arith.constant 0 : index
    %4 = vector.load %arg3[%c296, %c0_3] : memref<328x128xf32, #tpu.memory_space<vmem>>, vector<8x128xf32>
    %c0_4 = arith.constant 0 : index
    %c0_5 = arith.constant 0 : index
    %c0_6 = arith.constant 0 : index
    %5 = vector.load %arg1[%c0_4, %c0_5, %c0_6] : memref<8x8x16xf32, #tpu.memory_space<vmem>>, vector<1x8x16xf32>
    %6 = vector.shape_cast %5 : vector<1x8x16xf32> to vector<8x16xf32>
    %7 = tpu.concatenate %6, %0 in 1 : vector<8x16xf32>, vector<8x32xf32> -> vector<8x48xf32>
    %cst_7 = arith.constant dense<0.000000e+00> : vector<8x128xf32>
    %8 = tpu.matmul %7, %1, %cst_7 {dimension_numbers = #tpu.dot_dimension_numbers<[1], [0], [0], [1], [0, 0, 1, 1], [], []>} : vector<8x48xf32>, vector<48x128xf32>, vector<8x128xf32> -> vector<8x128xf32>
    %9 = arith.addf %8, %3 : vector<8x128xf32>
    %10 = arith.negf %9 : vector<8x128xf32>
    %11 = math.exp %10 : vector<8x128xf32>
    %cst_8 = arith.constant 1.000000e+00 : f32
    %12 = vector.broadcast %cst_8 : f32 to vector<8x128xf32>
    %13 = arith.addf %12, %11 : vector<8x128xf32>
    %14 = arith.divf %12, %13 : vector<8x128xf32>
    %15 = math.tanh %9 : vector<8x128xf32>
    %16 = vector.extract_strided_slice %14 {offsets = [0, 0], sizes = [8, 32], strides = [1, 1]} : vector<8x128xf32> to vector<8x32xf32>
    %17 = vector.extract_strided_slice %14 {offsets = [0, 32], sizes = [8, 32], strides = [1, 1]} : vector<8x128xf32> to vector<8x32xf32>
    %18 = vector.extract_strided_slice %15 {offsets = [0, 64], sizes = [8, 32], strides = [1, 1]} : vector<8x128xf32> to vector<8x32xf32>
    %19 = vector.extract_strided_slice %14 {offsets = [0, 96], sizes = [8, 32], strides = [1, 1]} : vector<8x128xf32> to vector<8x32xf32>
    %20 = arith.mulf %17, %0 : vector<8x32xf32>
    %21 = arith.mulf %16, %18 : vector<8x32xf32>
    %22 = arith.addf %20, %21 : vector<8x32xf32>
    %23 = math.tanh %22 : vector<8x32xf32>
    %24 = arith.mulf %19, %23 : vector<8x32xf32>
    %25 = tpu.concatenate %24, %0 in 1 : vector<8x32xf32>, vector<8x32xf32> -> vector<8x64xf32>
    %cst_9 = arith.constant dense<0.000000e+00> : vector<8x128xf32>
    %26 = tpu.matmul %25, %2, %cst_9 {dimension_numbers = #tpu.dot_dimension_numbers<[1], [0], [0], [1], [0, 0, 1, 1], [], []>} : vector<8x64xf32>, vector<64x128xf32>, vector<8x128xf32> -> vector<8x128xf32>
    %27 = arith.addf %26, %4 : vector<8x128xf32>
    %28 = arith.negf %27 : vector<8x128xf32>
    %29 = math.exp %28 : vector<8x128xf32>
    %cst_10 = arith.constant 1.000000e+00 : f32
    %30 = vector.broadcast %cst_10 : f32 to vector<8x128xf32>
    %31 = arith.addf %30, %29 : vector<8x128xf32>
    %32 = arith.divf %30, %31 : vector<8x128xf32>
    %33 = math.tanh %27 : vector<8x128xf32>
    %34 = vector.extract_strided_slice %32 {offsets = [0, 0], sizes = [8, 32], strides = [1, 1]} : vector<8x128xf32> to vector<8x32xf32>
    %35 = vector.extract_strided_slice %32 {offsets = [0, 32], sizes = [8, 32], strides = [1, 1]} : vector<8x128xf32> to vector<8x32xf32>
    %36 = vector.extract_strided_slice %33 {offsets = [0, 64], sizes = [8, 32], strides = [1, 1]} : vector<8x128xf32> to vector<8x32xf32>
    %37 = vector.extract_strided_slice %32 {offsets = [0, 96], sizes = [8, 32], strides = [1, 1]} : vector<8x128xf32> to vector<8x32xf32>
    %38 = arith.mulf %35, %0 : vector<8x32xf32>
    %39 = arith.mulf %34, %36 : vector<8x32xf32>
    %40 = arith.addf %38, %39 : vector<8x32xf32>
    %41 = math.tanh %40 : vector<8x32xf32>
    %42 = arith.mulf %37, %41 : vector<8x32xf32>
    %c1 = arith.constant 1 : index
    %c0_11 = arith.constant 0 : index
    %c0_12 = arith.constant 0 : index
    %43 = vector.load %arg1[%c1, %c0_11, %c0_12] : memref<8x8x16xf32, #tpu.memory_space<vmem>>, vector<1x8x16xf32>
    %44 = vector.shape_cast %43 : vector<1x8x16xf32> to vector<8x16xf32>
    %45 = tpu.concatenate %44, %24 in 1 : vector<8x16xf32>, vector<8x32xf32> -> vector<8x48xf32>
    %cst_13 = arith.constant dense<0.000000e+00> : vector<8x128xf32>
    %46 = tpu.matmul %45, %1, %cst_13 {dimension_numbers = #tpu.dot_dimension_numbers<[1], [0], [0], [1], [0, 0, 1, 1], [], []>} : vector<8x48xf32>, vector<48x128xf32>, vector<8x128xf32> -> vector<8x128xf32>
    %47 = arith.addf %46, %3 : vector<8x128xf32>
    %48 = arith.negf %47 : vector<8x128xf32>
    %49 = math.exp %48 : vector<8x128xf32>
    %cst_14 = arith.constant 1.000000e+00 : f32
    %50 = vector.broadcast %cst_14 : f32 to vector<8x128xf32>
    %51 = arith.addf %50, %49 : vector<8x128xf32>
    %52 = arith.divf %50, %51 : vector<8x128xf32>
    %53 = math.tanh %47 : vector<8x128xf32>
    %54 = vector.extract_strided_slice %52 {offsets = [0, 0], sizes = [8, 32], strides = [1, 1]} : vector<8x128xf32> to vector<8x32xf32>
    %55 = vector.extract_strided_slice %52 {offsets = [0, 32], sizes = [8, 32], strides = [1, 1]} : vector<8x128xf32> to vector<8x32xf32>
    %56 = vector.extract_strided_slice %53 {offsets = [0, 64], sizes = [8, 32], strides = [1, 1]} : vector<8x128xf32> to vector<8x32xf32>
    %57 = vector.extract_strided_slice %52 {offsets = [0, 96], sizes = [8, 32], strides = [1, 1]} : vector<8x128xf32> to vector<8x32xf32>
    %58 = arith.mulf %55, %22 : vector<8x32xf32>
    %59 = arith.mulf %54, %56 : vector<8x32xf32>
    %60 = arith.addf %58, %59 : vector<8x32xf32>
    %61 = math.tanh %60 : vector<8x32xf32>
    %62 = arith.mulf %57, %61 : vector<8x32xf32>
    %63 = tpu.concatenate %62, %42 in 1 : vector<8x32xf32>, vector<8x32xf32> -> vector<8x64xf32>
    %cst_15 = arith.constant dense<0.000000e+00> : vector<8x128xf32>
    %64 = tpu.matmul %63, %2, %cst_15 {dimension_numbers = #tpu.dot_dimension_numbers<[1], [0], [0], [1], [0, 0, 1, 1], [], []>} : vector<8x64xf32>, vector<64x128xf32>, vector<8x128xf32> -> vector<8x128xf32>
    %65 = arith.addf %64, %4 : vector<8x128xf32>
    %66 = arith.negf %65 : vector<8x128xf32>
    %67 = math.exp %66 : vector<8x128xf32>
    %cst_16 = arith.constant 1.000000e+00 : f32
    %68 = vector.broadcast %cst_16 : f32 to vector<8x128xf32>
    %69 = arith.addf %68, %67 : vector<8x128xf32>
    %70 = arith.divf %68, %69 : vector<8x128xf32>
    %71 = math.tanh %65 : vector<8x128xf32>
    %72 = vector.extract_strided_slice %70 {offsets = [0, 0], sizes = [8, 32], strides = [1, 1]} : vector<8x128xf32> to vector<8x32xf32>
    %73 = vector.extract_strided_slice %70 {offsets = [0, 32], sizes = [8, 32], strides = [1, 1]} : vector<8x128xf32> to vector<8x32xf32>
    %74 = vector.extract_strided_slice %71 {offsets = [0, 64], sizes = [8, 32], strides = [1, 1]} : vector<8x128xf32> to vector<8x32xf32>
    %75 = vector.extract_strided_slice %70 {offsets = [0, 96], sizes = [8, 32], strides = [1, 1]} : vector<8x128xf32> to vector<8x32xf32>
    %76 = arith.mulf %73, %40 : vector<8x32xf32>
    %77 = arith.mulf %72, %74 : vector<8x32xf32>
    %78 = arith.addf %76, %77 : vector<8x32xf32>
    %79 = math.tanh %78 : vector<8x32xf32>
    %80 = arith.mulf %75, %79 : vector<8x32xf32>
    %c2 = arith.constant 2 : index
    %c0_17 = arith.constant 0 : index
    %c0_18 = arith.constant 0 : index
    %81 = vector.load %arg1[%c2, %c0_17, %c0_18] : memref<8x8x16xf32, #tpu.memory_space<vmem>>, vector<1x8x16xf32>
    %82 = vector.shape_cast %81 : vector<1x8x16xf32> to vector<8x16xf32>
    %83 = tpu.concatenate %82, %62 in 1 : vector<8x16xf32>, vector<8x32xf32> -> vector<8x48xf32>
    %cst_19 = arith.constant dense<0.000000e+00> : vector<8x128xf32>
    %84 = tpu.matmul %83, %1, %cst_19 {dimension_numbers = #tpu.dot_dimension_numbers<[1], [0], [0], [1], [0, 0, 1, 1], [], []>} : vector<8x48xf32>, vector<48x128xf32>, vector<8x128xf32> -> vector<8x128xf32>
    %85 = arith.addf %84, %3 : vector<8x128xf32>
    %86 = arith.negf %85 : vector<8x128xf32>
    %87 = math.exp %86 : vector<8x128xf32>
    %cst_20 = arith.constant 1.000000e+00 : f32
    %88 = vector.broadcast %cst_20 : f32 to vector<8x128xf32>
    %89 = arith.addf %88, %87 : vector<8x128xf32>
    %90 = arith.divf %88, %89 : vector<8x128xf32>
    %91 = math.tanh %85 : vector<8x128xf32>
    %92 = vector.extract_strided_slice %90 {offsets = [0, 0], sizes = [8, 32], strides = [1, 1]} : vector<8x128xf32> to vector<8x32xf32>
    %93 = vector.extract_strided_slice %90 {offsets = [0, 32], sizes = [8, 32], strides = [1, 1]} : vector<8x128xf32> to vector<8x32xf32>
    %94 = vector.extract_strided_slice %91 {offsets = [0, 64], sizes = [8, 32], strides = [1, 1]} : vector<8x128xf32> to vector<8x32xf32>
    %95 = vector.extract_strided_slice %90 {offsets = [0, 96], sizes = [8, 32], strides = [1, 1]} : vector<8x128xf32> to vector<8x32xf32>
    %96 = arith.mulf %93, %60 : vector<8x32xf32>
    %97 = arith.mulf %92, %94 : vector<8x32xf32>
    %98 = arith.addf %96, %97 : vector<8x32xf32>
    %99 = math.tanh %98 : vector<8x32xf32>
    %100 = arith.mulf %95, %99 : vector<8x32xf32>
    %101 = tpu.concatenate %100, %80 in 1 : vector<8x32xf32>, vector<8x32xf32> -> vector<8x64xf32>
    %cst_21 = arith.constant dense<0.000000e+00> : vector<8x128xf32>
    %102 = tpu.matmul %101, %2, %cst_21 {dimension_numbers = #tpu.dot_dimension_numbers<[1], [0], [0], [1], [0, 0, 1, 1], [], []>} : vector<8x64xf32>, vector<64x128xf32>, vector<8x128xf32> -> vector<8x128xf32>
    %103 = arith.addf %102, %4 : vector<8x128xf32>
    %104 = arith.negf %103 : vector<8x128xf32>
    %105 = math.exp %104 : vector<8x128xf32>
    %cst_22 = arith.constant 1.000000e+00 : f32
    %106 = vector.broadcast %cst_22 : f32 to vector<8x128xf32>
    %107 = arith.addf %106, %105 : vector<8x128xf32>
    %108 = arith.divf %106, %107 : vector<8x128xf32>
    %109 = math.tanh %103 : vector<8x128xf32>
    %110 = vector.extract_strided_slice %108 {offsets = [0, 0], sizes = [8, 32], strides = [1, 1]} : vector<8x128xf32> to vector<8x32xf32>
    %111 = vector.extract_strided_slice %108 {offsets = [0, 32], sizes = [8, 32], strides = [1, 1]} : vector<8x128xf32> to vector<8x32xf32>
    %112 = vector.extract_strided_slice %109 {offsets = [0, 64], sizes = [8, 32], strides = [1, 1]} : vector<8x128xf32> to vector<8x32xf32>
    %113 = vector.extract_strided_slice %108 {offsets = [0, 96], sizes = [8, 32], strides = [1, 1]} : vector<8x128xf32> to vector<8x32xf32>
    %114 = arith.mulf %111, %78 : vector<8x32xf32>
    %115 = arith.mulf %110, %112 : vector<8x32xf32>
    %116 = arith.addf %114, %115 : vector<8x32xf32>
    %117 = math.tanh %116 : vector<8x32xf32>
    %118 = arith.mulf %113, %117 : vector<8x32xf32>
    %c3 = arith.constant 3 : index
    %c0_23 = arith.constant 0 : index
    %c0_24 = arith.constant 0 : index
    %119 = vector.load %arg1[%c3, %c0_23, %c0_24] : memref<8x8x16xf32, #tpu.memory_space<vmem>>, vector<1x8x16xf32>
    %120 = vector.shape_cast %119 : vector<1x8x16xf32> to vector<8x16xf32>
    %121 = tpu.concatenate %120, %100 in 1 : vector<8x16xf32>, vector<8x32xf32> -> vector<8x48xf32>
    %cst_25 = arith.constant dense<0.000000e+00> : vector<8x128xf32>
    %122 = tpu.matmul %121, %1, %cst_25 {dimension_numbers = #tpu.dot_dimension_numbers<[1], [0], [0], [1], [0, 0, 1, 1], [], []>} : vector<8x48xf32>, vector<48x128xf32>, vector<8x128xf32> -> vector<8x128xf32>
    %123 = arith.addf %122, %3 : vector<8x128xf32>
    %124 = arith.negf %123 : vector<8x128xf32>
    %125 = math.exp %124 : vector<8x128xf32>
    %cst_26 = arith.constant 1.000000e+00 : f32
    %126 = vector.broadcast %cst_26 : f32 to vector<8x128xf32>
    %127 = arith.addf %126, %125 : vector<8x128xf32>
    %128 = arith.divf %126, %127 : vector<8x128xf32>
    %129 = math.tanh %123 : vector<8x128xf32>
    %130 = vector.extract_strided_slice %128 {offsets = [0, 0], sizes = [8, 32], strides = [1, 1]} : vector<8x128xf32> to vector<8x32xf32>
    %131 = vector.extract_strided_slice %128 {offsets = [0, 32], sizes = [8, 32], strides = [1, 1]} : vector<8x128xf32> to vector<8x32xf32>
    %132 = vector.extract_strided_slice %129 {offsets = [0, 64], sizes = [8, 32], strides = [1, 1]} : vector<8x128xf32> to vector<8x32xf32>
    %133 = vector.extract_strided_slice %128 {offsets = [0, 96], sizes = [8, 32], strides = [1, 1]} : vector<8x128xf32> to vector<8x32xf32>
    %134 = arith.mulf %131, %98 : vector<8x32xf32>
    %135 = arith.mulf %130, %132 : vector<8x32xf32>
    %136 = arith.addf %134, %135 : vector<8x32xf32>
    %137 = math.tanh %136 : vector<8x32xf32>
    %138 = arith.mulf %133, %137 : vector<8x32xf32>
    %139 = tpu.concatenate %138, %118 in 1 : vector<8x32xf32>, vector<8x32xf32> -> vector<8x64xf32>
    %cst_27 = arith.constant dense<0.000000e+00> : vector<8x128xf32>
    %140 = tpu.matmul %139, %2, %cst_27 {dimension_numbers = #tpu.dot_dimension_numbers<[1], [0], [0], [1], [0, 0, 1, 1], [], []>} : vector<8x64xf32>, vector<64x128xf32>, vector<8x128xf32> -> vector<8x128xf32>
    %141 = arith.addf %140, %4 : vector<8x128xf32>
    %142 = arith.negf %141 : vector<8x128xf32>
    %143 = math.exp %142 : vector<8x128xf32>
    %cst_28 = arith.constant 1.000000e+00 : f32
    %144 = vector.broadcast %cst_28 : f32 to vector<8x128xf32>
    %145 = arith.addf %144, %143 : vector<8x128xf32>
    %146 = arith.divf %144, %145 : vector<8x128xf32>
    %147 = math.tanh %141 : vector<8x128xf32>
    %148 = vector.extract_strided_slice %146 {offsets = [0, 0], sizes = [8, 32], strides = [1, 1]} : vector<8x128xf32> to vector<8x32xf32>
    %149 = vector.extract_strided_slice %146 {offsets = [0, 32], sizes = [8, 32], strides = [1, 1]} : vector<8x128xf32> to vector<8x32xf32>
    %150 = vector.extract_strided_slice %147 {offsets = [0, 64], sizes = [8, 32], strides = [1, 1]} : vector<8x128xf32> to vector<8x32xf32>
    %151 = vector.extract_strided_slice %146 {offsets = [0, 96], sizes = [8, 32], strides = [1, 1]} : vector<8x128xf32> to vector<8x32xf32>
    %152 = arith.mulf %149, %116 : vector<8x32xf32>
    %153 = arith.mulf %148, %150 : vector<8x32xf32>
    %154 = arith.addf %152, %153 : vector<8x32xf32>
    %155 = math.tanh %154 : vector<8x32xf32>
    %156 = arith.mulf %151, %155 : vector<8x32xf32>
    %c4 = arith.constant 4 : index
    %c0_29 = arith.constant 0 : index
    %c0_30 = arith.constant 0 : index
    %157 = vector.load %arg1[%c4, %c0_29, %c0_30] : memref<8x8x16xf32, #tpu.memory_space<vmem>>, vector<1x8x16xf32>
    %158 = vector.shape_cast %157 : vector<1x8x16xf32> to vector<8x16xf32>
    %159 = tpu.concatenate %158, %138 in 1 : vector<8x16xf32>, vector<8x32xf32> -> vector<8x48xf32>
    %cst_31 = arith.constant dense<0.000000e+00> : vector<8x128xf32>
    %160 = tpu.matmul %159, %1, %cst_31 {dimension_numbers = #tpu.dot_dimension_numbers<[1], [0], [0], [1], [0, 0, 1, 1], [], []>} : vector<8x48xf32>, vector<48x128xf32>, vector<8x128xf32> -> vector<8x128xf32>
    %161 = arith.addf %160, %3 : vector<8x128xf32>
    %162 = arith.negf %161 : vector<8x128xf32>
    %163 = math.exp %162 : vector<8x128xf32>
    %cst_32 = arith.constant 1.000000e+00 : f32
    %164 = vector.broadcast %cst_32 : f32 to vector<8x128xf32>
    %165 = arith.addf %164, %163 : vector<8x128xf32>
    %166 = arith.divf %164, %165 : vector<8x128xf32>
    %167 = math.tanh %161 : vector<8x128xf32>
    %168 = vector.extract_strided_slice %166 {offsets = [0, 0], sizes = [8, 32], strides = [1, 1]} : vector<8x128xf32> to vector<8x32xf32>
    %169 = vector.extract_strided_slice %166 {offsets = [0, 32], sizes = [8, 32], strides = [1, 1]} : vector<8x128xf32> to vector<8x32xf32>
    %170 = vector.extract_strided_slice %167 {offsets = [0, 64], sizes = [8, 32], strides = [1, 1]} : vector<8x128xf32> to vector<8x32xf32>
    %171 = vector.extract_strided_slice %166 {offsets = [0, 96], sizes = [8, 32], strides = [1, 1]} : vector<8x128xf32> to vector<8x32xf32>
    %172 = arith.mulf %169, %136 : vector<8x32xf32>
    %173 = arith.mulf %168, %170 : vector<8x32xf32>
    %174 = arith.addf %172, %173 : vector<8x32xf32>
    %175 = math.tanh %174 : vector<8x32xf32>
    %176 = arith.mulf %171, %175 : vector<8x32xf32>
    %177 = tpu.concatenate %176, %156 in 1 : vector<8x32xf32>, vector<8x32xf32> -> vector<8x64xf32>
    %cst_33 = arith.constant dense<0.000000e+00> : vector<8x128xf32>
    %178 = tpu.matmul %177, %2, %cst_33 {dimension_numbers = #tpu.dot_dimension_numbers<[1], [0], [0], [1], [0, 0, 1, 1], [], []>} : vector<8x64xf32>, vector<64x128xf32>, vector<8x128xf32> -> vector<8x128xf32>
    %179 = arith.addf %178, %4 : vector<8x128xf32>
    %180 = arith.negf %179 : vector<8x128xf32>
    %181 = math.exp %180 : vector<8x128xf32>
    %cst_34 = arith.constant 1.000000e+00 : f32
    %182 = vector.broadcast %cst_34 : f32 to vector<8x128xf32>
    %183 = arith.addf %182, %181 : vector<8x128xf32>
    %184 = arith.divf %182, %183 : vector<8x128xf32>
    %185 = math.tanh %179 : vector<8x128xf32>
    %186 = vector.extract_strided_slice %184 {offsets = [0, 0], sizes = [8, 32], strides = [1, 1]} : vector<8x128xf32> to vector<8x32xf32>
    %187 = vector.extract_strided_slice %184 {offsets = [0, 32], sizes = [8, 32], strides = [1, 1]} : vector<8x128xf32> to vector<8x32xf32>
    %188 = vector.extract_strided_slice %185 {offsets = [0, 64], sizes = [8, 32], strides = [1, 1]} : vector<8x128xf32> to vector<8x32xf32>
    %189 = vector.extract_strided_slice %184 {offsets = [0, 96], sizes = [8, 32], strides = [1, 1]} : vector<8x128xf32> to vector<8x32xf32>
    %190 = arith.mulf %187, %154 : vector<8x32xf32>
    %191 = arith.mulf %186, %188 : vector<8x32xf32>
    %192 = arith.addf %190, %191 : vector<8x32xf32>
    %193 = math.tanh %192 : vector<8x32xf32>
    %194 = arith.mulf %189, %193 : vector<8x32xf32>
    %c5 = arith.constant 5 : index
    %c0_35 = arith.constant 0 : index
    %c0_36 = arith.constant 0 : index
    %195 = vector.load %arg1[%c5, %c0_35, %c0_36] : memref<8x8x16xf32, #tpu.memory_space<vmem>>, vector<1x8x16xf32>
    %196 = vector.shape_cast %195 : vector<1x8x16xf32> to vector<8x16xf32>
    %197 = tpu.concatenate %196, %176 in 1 : vector<8x16xf32>, vector<8x32xf32> -> vector<8x48xf32>
    %cst_37 = arith.constant dense<0.000000e+00> : vector<8x128xf32>
    %198 = tpu.matmul %197, %1, %cst_37 {dimension_numbers = #tpu.dot_dimension_numbers<[1], [0], [0], [1], [0, 0, 1, 1], [], []>} : vector<8x48xf32>, vector<48x128xf32>, vector<8x128xf32> -> vector<8x128xf32>
    %199 = arith.addf %198, %3 : vector<8x128xf32>
    %200 = arith.negf %199 : vector<8x128xf32>
    %201 = math.exp %200 : vector<8x128xf32>
    %cst_38 = arith.constant 1.000000e+00 : f32
    %202 = vector.broadcast %cst_38 : f32 to vector<8x128xf32>
    %203 = arith.addf %202, %201 : vector<8x128xf32>
    %204 = arith.divf %202, %203 : vector<8x128xf32>
    %205 = math.tanh %199 : vector<8x128xf32>
    %206 = vector.extract_strided_slice %204 {offsets = [0, 0], sizes = [8, 32], strides = [1, 1]} : vector<8x128xf32> to vector<8x32xf32>
    %207 = vector.extract_strided_slice %204 {offsets = [0, 32], sizes = [8, 32], strides = [1, 1]} : vector<8x128xf32> to vector<8x32xf32>
    %208 = vector.extract_strided_slice %205 {offsets = [0, 64], sizes = [8, 32], strides = [1, 1]} : vector<8x128xf32> to vector<8x32xf32>
    %209 = vector.extract_strided_slice %204 {offsets = [0, 96], sizes = [8, 32], strides = [1, 1]} : vector<8x128xf32> to vector<8x32xf32>
    %210 = arith.mulf %207, %174 : vector<8x32xf32>
    %211 = arith.mulf %206, %208 : vector<8x32xf32>
    %212 = arith.addf %210, %211 : vector<8x32xf32>
    %213 = math.tanh %212 : vector<8x32xf32>
    %214 = arith.mulf %209, %213 : vector<8x32xf32>
    %215 = tpu.concatenate %214, %194 in 1 : vector<8x32xf32>, vector<8x32xf32> -> vector<8x64xf32>
    %cst_39 = arith.constant dense<0.000000e+00> : vector<8x128xf32>
    %216 = tpu.matmul %215, %2, %cst_39 {dimension_numbers = #tpu.dot_dimension_numbers<[1], [0], [0], [1], [0, 0, 1, 1], [], []>} : vector<8x64xf32>, vector<64x128xf32>, vector<8x128xf32> -> vector<8x128xf32>
    %217 = arith.addf %216, %4 : vector<8x128xf32>
    %218 = arith.negf %217 : vector<8x128xf32>
    %219 = math.exp %218 : vector<8x128xf32>
    %cst_40 = arith.constant 1.000000e+00 : f32
    %220 = vector.broadcast %cst_40 : f32 to vector<8x128xf32>
    %221 = arith.addf %220, %219 : vector<8x128xf32>
    %222 = arith.divf %220, %221 : vector<8x128xf32>
    %223 = math.tanh %217 : vector<8x128xf32>
    %224 = vector.extract_strided_slice %222 {offsets = [0, 0], sizes = [8, 32], strides = [1, 1]} : vector<8x128xf32> to vector<8x32xf32>
    %225 = vector.extract_strided_slice %222 {offsets = [0, 32], sizes = [8, 32], strides = [1, 1]} : vector<8x128xf32> to vector<8x32xf32>
    %226 = vector.extract_strided_slice %223 {offsets = [0, 64], sizes = [8, 32], strides = [1, 1]} : vector<8x128xf32> to vector<8x32xf32>
    %227 = vector.extract_strided_slice %222 {offsets = [0, 96], sizes = [8, 32], strides = [1, 1]} : vector<8x128xf32> to vector<8x32xf32>
    %228 = arith.mulf %225, %192 : vector<8x32xf32>
    %229 = arith.mulf %224, %226 : vector<8x32xf32>
    %230 = arith.addf %228, %229 : vector<8x32xf32>
    %231 = math.tanh %230 : vector<8x32xf32>
    %232 = arith.mulf %227, %231 : vector<8x32xf32>
    %c6 = arith.constant 6 : index
    %c0_41 = arith.constant 0 : index
    %c0_42 = arith.constant 0 : index
    %233 = vector.load %arg1[%c6, %c0_41, %c0_42] : memref<8x8x16xf32, #tpu.memory_space<vmem>>, vector<1x8x16xf32>
    %234 = vector.shape_cast %233 : vector<1x8x16xf32> to vector<8x16xf32>
    %235 = tpu.concatenate %234, %214 in 1 : vector<8x16xf32>, vector<8x32xf32> -> vector<8x48xf32>
    %cst_43 = arith.constant dense<0.000000e+00> : vector<8x128xf32>
    %236 = tpu.matmul %235, %1, %cst_43 {dimension_numbers = #tpu.dot_dimension_numbers<[1], [0], [0], [1], [0, 0, 1, 1], [], []>} : vector<8x48xf32>, vector<48x128xf32>, vector<8x128xf32> -> vector<8x128xf32>
    %237 = arith.addf %236, %3 : vector<8x128xf32>
    %238 = arith.negf %237 : vector<8x128xf32>
    %239 = math.exp %238 : vector<8x128xf32>
    %cst_44 = arith.constant 1.000000e+00 : f32
    %240 = vector.broadcast %cst_44 : f32 to vector<8x128xf32>
    %241 = arith.addf %240, %239 : vector<8x128xf32>
    %242 = arith.divf %240, %241 : vector<8x128xf32>
    %243 = math.tanh %237 : vector<8x128xf32>
    %244 = vector.extract_strided_slice %242 {offsets = [0, 0], sizes = [8, 32], strides = [1, 1]} : vector<8x128xf32> to vector<8x32xf32>
    %245 = vector.extract_strided_slice %242 {offsets = [0, 32], sizes = [8, 32], strides = [1, 1]} : vector<8x128xf32> to vector<8x32xf32>
    %246 = vector.extract_strided_slice %243 {offsets = [0, 64], sizes = [8, 32], strides = [1, 1]} : vector<8x128xf32> to vector<8x32xf32>
    %247 = vector.extract_strided_slice %242 {offsets = [0, 96], sizes = [8, 32], strides = [1, 1]} : vector<8x128xf32> to vector<8x32xf32>
    %248 = arith.mulf %245, %212 : vector<8x32xf32>
    %249 = arith.mulf %244, %246 : vector<8x32xf32>
    %250 = arith.addf %248, %249 : vector<8x32xf32>
    %251 = math.tanh %250 : vector<8x32xf32>
    %252 = arith.mulf %247, %251 : vector<8x32xf32>
    %253 = tpu.concatenate %252, %232 in 1 : vector<8x32xf32>, vector<8x32xf32> -> vector<8x64xf32>
    %cst_45 = arith.constant dense<0.000000e+00> : vector<8x128xf32>
    %254 = tpu.matmul %253, %2, %cst_45 {dimension_numbers = #tpu.dot_dimension_numbers<[1], [0], [0], [1], [0, 0, 1, 1], [], []>} : vector<8x64xf32>, vector<64x128xf32>, vector<8x128xf32> -> vector<8x128xf32>
    %255 = arith.addf %254, %4 : vector<8x128xf32>
    %256 = arith.negf %255 : vector<8x128xf32>
    %257 = math.exp %256 : vector<8x128xf32>
    %cst_46 = arith.constant 1.000000e+00 : f32
    %258 = vector.broadcast %cst_46 : f32 to vector<8x128xf32>
    %259 = arith.addf %258, %257 : vector<8x128xf32>
    %260 = arith.divf %258, %259 : vector<8x128xf32>
    %261 = math.tanh %255 : vector<8x128xf32>
    %262 = vector.extract_strided_slice %260 {offsets = [0, 0], sizes = [8, 32], strides = [1, 1]} : vector<8x128xf32> to vector<8x32xf32>
    %263 = vector.extract_strided_slice %260 {offsets = [0, 32], sizes = [8, 32], strides = [1, 1]} : vector<8x128xf32> to vector<8x32xf32>
    %264 = vector.extract_strided_slice %261 {offsets = [0, 64], sizes = [8, 32], strides = [1, 1]} : vector<8x128xf32> to vector<8x32xf32>
    %265 = vector.extract_strided_slice %260 {offsets = [0, 96], sizes = [8, 32], strides = [1, 1]} : vector<8x128xf32> to vector<8x32xf32>
    %266 = arith.mulf %263, %230 : vector<8x32xf32>
    %267 = arith.mulf %262, %264 : vector<8x32xf32>
    %268 = arith.addf %266, %267 : vector<8x32xf32>
    %269 = math.tanh %268 : vector<8x32xf32>
    %270 = arith.mulf %265, %269 : vector<8x32xf32>
    %c7 = arith.constant 7 : index
    %c0_47 = arith.constant 0 : index
    %c0_48 = arith.constant 0 : index
    %271 = vector.load %arg1[%c7, %c0_47, %c0_48] : memref<8x8x16xf32, #tpu.memory_space<vmem>>, vector<1x8x16xf32>
    %272 = vector.shape_cast %271 : vector<1x8x16xf32> to vector<8x16xf32>
    %273 = tpu.concatenate %272, %252 in 1 : vector<8x16xf32>, vector<8x32xf32> -> vector<8x48xf32>
    %cst_49 = arith.constant dense<0.000000e+00> : vector<8x128xf32>
    %274 = tpu.matmul %273, %1, %cst_49 {dimension_numbers = #tpu.dot_dimension_numbers<[1], [0], [0], [1], [0, 0, 1, 1], [], []>} : vector<8x48xf32>, vector<48x128xf32>, vector<8x128xf32> -> vector<8x128xf32>
    %275 = arith.addf %274, %3 : vector<8x128xf32>
    %276 = arith.negf %275 : vector<8x128xf32>
    %277 = math.exp %276 : vector<8x128xf32>
    %cst_50 = arith.constant 1.000000e+00 : f32
    %278 = vector.broadcast %cst_50 : f32 to vector<8x128xf32>
    %279 = arith.addf %278, %277 : vector<8x128xf32>
    %280 = arith.divf %278, %279 : vector<8x128xf32>
    %281 = math.tanh %275 : vector<8x128xf32>
    %282 = vector.extract_strided_slice %280 {offsets = [0, 0], sizes = [8, 32], strides = [1, 1]} : vector<8x128xf32> to vector<8x32xf32>
    %283 = vector.extract_strided_slice %280 {offsets = [0, 32], sizes = [8, 32], strides = [1, 1]} : vector<8x128xf32> to vector<8x32xf32>
    %284 = vector.extract_strided_slice %281 {offsets = [0, 64], sizes = [8, 32], strides = [1, 1]} : vector<8x128xf32> to vector<8x32xf32>
    %285 = vector.extract_strided_slice %280 {offsets = [0, 96], sizes = [8, 32], strides = [1, 1]} : vector<8x128xf32> to vector<8x32xf32>
    %286 = arith.mulf %283, %250 : vector<8x32xf32>
    %287 = arith.mulf %282, %284 : vector<8x32xf32>
    %288 = arith.addf %286, %287 : vector<8x32xf32>
    %289 = math.tanh %288 : vector<8x32xf32>
    %290 = arith.mulf %285, %289 : vector<8x32xf32>
    %291 = tpu.concatenate %290, %270 in 1 : vector<8x32xf32>, vector<8x32xf32> -> vector<8x64xf32>
    %cst_51 = arith.constant dense<0.000000e+00> : vector<8x128xf32>
    %292 = tpu.matmul %291, %2, %cst_51 {dimension_numbers = #tpu.dot_dimension_numbers<[1], [0], [0], [1], [0, 0, 1, 1], [], []>} : vector<8x64xf32>, vector<64x128xf32>, vector<8x128xf32> -> vector<8x128xf32>
    %293 = arith.addf %292, %4 : vector<8x128xf32>
    %294 = arith.negf %293 : vector<8x128xf32>
    %295 = math.exp %294 : vector<8x128xf32>
    %cst_52 = arith.constant 1.000000e+00 : f32
    %296 = vector.broadcast %cst_52 : f32 to vector<8x128xf32>
    %297 = arith.addf %296, %295 : vector<8x128xf32>
    %298 = arith.divf %296, %297 : vector<8x128xf32>
    %299 = math.tanh %293 : vector<8x128xf32>
    %300 = vector.extract_strided_slice %298 {offsets = [0, 0], sizes = [8, 32], strides = [1, 1]} : vector<8x128xf32> to vector<8x32xf32>
    %301 = vector.extract_strided_slice %298 {offsets = [0, 32], sizes = [8, 32], strides = [1, 1]} : vector<8x128xf32> to vector<8x32xf32>
    %302 = vector.extract_strided_slice %299 {offsets = [0, 64], sizes = [8, 32], strides = [1, 1]} : vector<8x128xf32> to vector<8x32xf32>
    %303 = vector.extract_strided_slice %298 {offsets = [0, 96], sizes = [8, 32], strides = [1, 1]} : vector<8x128xf32> to vector<8x32xf32>
    %304 = arith.mulf %301, %268 : vector<8x32xf32>
    %305 = arith.mulf %300, %302 : vector<8x32xf32>
    %306 = arith.addf %304, %305 : vector<8x32xf32>
    %307 = math.tanh %306 : vector<8x32xf32>
    %308 = arith.mulf %303, %307 : vector<8x32xf32>
    %cst_53 = arith.constant 0.000000e+00 : f32
    %309 = vector.broadcast %cst_53 : f32 to vector<8x128xf32>
    %c0_54 = arith.constant 0 : index
    %c0_55 = arith.constant 0 : index
    %c0_56 = arith.constant 0 : index
    %310 = vector.load %arg4[%c0_54, %c0_55, %c0_56] : memref<8x8x128xf32, #tpu.memory_space<vmem>>, vector<1x8x128xf32>
    %311 = vector.shape_cast %310 : vector<1x8x128xf32> to vector<8x128xf32>
    %312 = vector.shape_cast %309 : vector<8x128xf32> to vector<1x8x128xf32>
    tpu.vector_store %arg4[%c0_54, %c0_55, %c0_56], %312 {strides = array<i32>} : memref<8x8x128xf32, #tpu.memory_space<vmem>>, vector<1x8x128xf32>,
    %c112 = arith.constant 112 : index
    %c0_57 = arith.constant 0 : index
    %313 = vector.load %arg3[%c112, %c0_57] : memref<328x128xf32, #tpu.memory_space<vmem>>, vector<48x128xf32>
    %c160 = arith.constant 160 : index
    %c0_58 = arith.constant 0 : index
    %314 = vector.load %arg3[%c160, %c0_58] : memref<328x128xf32, #tpu.memory_space<vmem>>, vector<64x128xf32>
    %c304 = arith.constant 304 : index
    %c0_59 = arith.constant 0 : index
    %315 = vector.load %arg3[%c304, %c0_59] : memref<328x128xf32, #tpu.memory_space<vmem>>, vector<8x128xf32>
    %c312 = arith.constant 312 : index
    %c0_60 = arith.constant 0 : index
    %316 = vector.load %arg3[%c312, %c0_60] : memref<328x128xf32, #tpu.memory_space<vmem>>, vector<8x128xf32>
    %c224 = arith.constant 224 : index
    %c0_61 = arith.constant 0 : index
    %317 = vector.load %arg3[%c224, %c0_61] : memref<328x128xf32, #tpu.memory_space<vmem>>, vector<32x128xf32>
    %c320 = arith.constant 320 : index
    %c0_62 = arith.constant 0 : index
    %318 = vector.load %arg3[%c320, %c0_62] : memref<328x128xf32, #tpu.memory_space<vmem>>, vector<8x128xf32>
    %c256 = arith.constant 256 : index
    %c0_63 = arith.constant 0 : index
    %319 = vector.load %arg3[%c256, %c0_63] : memref<328x128xf32, #tpu.memory_space<vmem>>, vector<32x128xf32>
    %320 = tpu.iota {dimensions = array<i32: 1>} : vector<8x128xi32>
    %321 = tpu.iota {dimensions = array<i32: 1>} : vector<8x32xi32>
    %c0_64 = arith.constant 0 : index
    %c0_65 = arith.constant 0 : index
    %c0_66 = arith.constant 0 : index
    %322 = vector.load %arg2[%c0_64, %c0_65, %c0_66] : memref<8x8x16xf32, #tpu.memory_space<vmem>>, vector<1x8x16xf32>
    %323 = vector.shape_cast %322 : vector<1x8x16xf32> to vector<8x16xf32>
    %c0_67 = arith.constant 0 : index
    %c0_68 = arith.constant 0 : index
    %324 = vector.load %arg5[%c0_67, %c0_68] : memref<8x16xf32, #tpu.memory_space<vmem>>, vector<8x16xf32>
    tpu.vector_store %arg5[%c0_67, %c0_68], %323 {strides = array<i32>} : memref<8x16xf32, #tpu.memory_space<vmem>>, vector<8x16xf32>,
    %c0_69 = arith.constant 0 : index
    %c0_70 = arith.constant 0 : index
    %325 = vector.load %arg5[%c0_69, %c0_70] : memref<8x16xf32, #tpu.memory_space<vmem>>, vector<8x16xf32>
    %326 = tpu.concatenate %325, %290 in 1 : vector<8x16xf32>, vector<8x32xf32> -> vector<8x48xf32>
    %cst_71 = arith.constant dense<0.000000e+00> : vector<8x128xf32>
    %327 = tpu.matmul %326, %313, %cst_71 {dimension_numbers = #tpu.dot_dimension_numbers<[1], [0], [0], [1], [0, 0, 1, 1], [], []>} : vector<8x48xf32>, vector<48x128xf32>, vector<8x128xf32> -> vector<8x128xf32>
    %328 = arith.addf %327, %315 : vector<8x128xf32>
    %329 = arith.negf %328 : vector<8x128xf32>
    %330 = math.exp %329 : vector<8x128xf32>
    %cst_72 = arith.constant 1.000000e+00 : f32
    %331 = vector.broadcast %cst_72 : f32 to vector<8x128xf32>
    %332 = arith.addf %331, %330 : vector<8x128xf32>
    %333 = arith.divf %331, %332 : vector<8x128xf32>
    %334 = math.tanh %328 : vector<8x128xf32>
    %335 = vector.extract_strided_slice %333 {offsets = [0, 0], sizes = [8, 32], strides = [1, 1]} : vector<8x128xf32> to vector<8x32xf32>
    %336 = vector.extract_strided_slice %333 {offsets = [0, 32], sizes = [8, 32], strides = [1, 1]} : vector<8x128xf32> to vector<8x32xf32>
    %337 = vector.extract_strided_slice %334 {offsets = [0, 64], sizes = [8, 32], strides = [1, 1]} : vector<8x128xf32> to vector<8x32xf32>
    %338 = vector.extract_strided_slice %333 {offsets = [0, 96], sizes = [8, 32], strides = [1, 1]} : vector<8x128xf32> to vector<8x32xf32>
    %339 = arith.mulf %336, %288 : vector<8x32xf32>
    %340 = arith.mulf %335, %337 : vector<8x32xf32>
    %341 = arith.addf %339, %340 : vector<8x32xf32>
    %342 = math.tanh %341 : vector<8x32xf32>
    %343 = arith.mulf %338, %342 : vector<8x32xf32>
    %344 = tpu.concatenate %343, %308 in 1 : vector<8x32xf32>, vector<8x32xf32> -> vector<8x64xf32>
    %cst_73 = arith.constant dense<0.000000e+00> : vector<8x128xf32>
    %345 = tpu.matmul %344, %314, %cst_73 {dimension_numbers = #tpu.dot_dimension_numbers<[1], [0], [0], [1], [0, 0, 1, 1], [], []>} : vector<8x64xf32>, vector<64x128xf32>, vector<8x128xf32> -> vector<8x128xf32>
    %346 = arith.addf %345, %316 : vector<8x128xf32>
    %347 = arith.negf %346 : vector<8x128xf32>
    %348 = math.exp %347 : vector<8x128xf32>
    %cst_74 = arith.constant 1.000000e+00 : f32
    %349 = vector.broadcast %cst_74 : f32 to vector<8x128xf32>
    %350 = arith.addf %349, %348 : vector<8x128xf32>
    %351 = arith.divf %349, %350 : vector<8x128xf32>
    %352 = math.tanh %346 : vector<8x128xf32>
    %353 = vector.extract_strided_slice %351 {offsets = [0, 0], sizes = [8, 32], strides = [1, 1]} : vector<8x128xf32> to vector<8x32xf32>
    %354 = vector.extract_strided_slice %351 {offsets = [0, 32], sizes = [8, 32], strides = [1, 1]} : vector<8x128xf32> to vector<8x32xf32>
    %355 = vector.extract_strided_slice %352 {offsets = [0, 64], sizes = [8, 32], strides = [1, 1]} : vector<8x128xf32> to vector<8x32xf32>
    %356 = vector.extract_strided_slice %351 {offsets = [0, 96], sizes = [8, 32], strides = [1, 1]} : vector<8x128xf32> to vector<8x32xf32>
    %357 = arith.mulf %354, %306 : vector<8x32xf32>
    %358 = arith.mulf %353, %355 : vector<8x32xf32>
    %359 = arith.addf %357, %358 : vector<8x32xf32>
    %360 = math.tanh %359 : vector<8x32xf32>
    %361 = arith.mulf %356, %360 : vector<8x32xf32>
    %cst_75 = arith.constant dense<0.000000e+00> : vector<8x128xf32>
    %362 = tpu.matmul %361, %317, %cst_75 {dimension_numbers = #tpu.dot_dimension_numbers<[1], [0], [0], [1], [0, 0, 1, 1], [], []>} : vector<8x32xf32>, vector<32x128xf32>, vector<8x128xf32> -> vector<8x128xf32>
    %363 = arith.addf %362, %318 : vector<8x128xf32>
    %c1_76 = arith.constant 1 : index
    %c0_77 = arith.constant 0 : index
    %c0_78 = arith.constant 0 : index
    %364 = vector.load %arg4[%c1_76, %c0_77, %c0_78] : memref<8x8x128xf32, #tpu.memory_space<vmem>>, vector<1x8x128xf32>
    %365 = vector.shape_cast %364 : vector<1x8x128xf32> to vector<8x128xf32>
    %366 = vector.shape_cast %363 : vector<8x128xf32> to vector<1x8x128xf32>
    tpu.vector_store %arg4[%c1_76, %c0_77, %c0_78], %366 {strides = array<i32>} : memref<8x8x128xf32, #tpu.memory_space<vmem>>, vector<1x8x128xf32>,
    %c1_79 = arith.constant 1 : index
    %367 = memref.load %arg0[%c1_79] : memref<8xi32, #tpu.memory_space<smem>>
    %c0_i32 = arith.constant 0 : i32
    %368 = arith.cmpi ne, %367, %c0_i32 : i32
    %369 = arith.extui %368 : i1 to i32
    %c0_i32_80 = arith.constant 0 : i32
    %370 = arith.cmpi ne, %369, %c0_i32_80 : i32
    scf.if %370 {
      %c1_174 = arith.constant 1 : index
      %c0_175 = arith.constant 0 : index
      %c0_176 = arith.constant 0 : index
      %667 = vector.load %arg2[%c1_174, %c0_175, %c0_176] : memref<8x8x16xf32, #tpu.memory_space<vmem>>, vector<1x8x16xf32>
      %668 = vector.shape_cast %667 : vector<1x8x16xf32> to vector<8x16xf32>
      %c0_177 = arith.constant 0 : index
      %c0_178 = arith.constant 0 : index
      %669 = vector.load %arg5[%c0_177, %c0_178] : memref<8x16xf32, #tpu.memory_space<vmem>>, vector<8x16xf32>
      tpu.vector_store %arg5[%c0_177, %c0_178], %668 {strides = array<i32>} : memref<8x16xf32, #tpu.memory_space<vmem>>, vector<8x16xf32>,
    } else {
    }
    %c1_81 = arith.constant 1 : index
    %371 = memref.load %arg0[%c1_81] : memref<8xi32, #tpu.memory_space<smem>>
    %c0_i32_82 = arith.constant 0 : i32
    %372 = arith.cmpi eq, %371, %c0_i32_82 : i32
    %373 = arith.extui %372 : i1 to i32
    %c0_i32_83 = arith.constant 0 : i32
    %374 = arith.cmpi ne, %373, %c0_i32_83 : i32
    scf.if %374 {
      %c32_i32 = arith.constant 32 : i32
      %667 = vector.broadcast %c32_i32 : i32 to vector<8x128xi32>
      %668 = arith.cmpi slt, %320, %667 : vector<8x128xi32>
      %cst_174 = arith.constant -1.000000e+30 : f32
      %669 = vector.broadcast %cst_174 : f32 to vector<8x128xf32>
      %670 = arith.select %668, %363, %669 : vector<8x128xi1>, vector<8x128xf32>
      %cst_175 = arith.constant dense<0xFF800000> : vector<8xf32>
      %671 = vector.multi_reduction <maximumf>, %670, %cst_175 [1] : vector<8x128xf32> to vector<8xf32>
      %672 = vector.shape_cast %671 : vector<8xf32> to vector<8x1xf32>
      %673 = vector.broadcast %672 : vector<8x1xf32> to vector<8x128xf32>
      %674 = arith.cmpf oeq, %670, %673 : vector<8x128xf32>
      %c128_i32 = arith.constant 128 : i32
      %675 = vector.broadcast %c128_i32 : i32 to vector<8x128xi32>
      %676 = arith.select %674, %320, %675 : vector<8x128xi1>, vector<8x128xi32>
      %cst_176 = arith.constant dense<2147483647> : vector<8xi32>
      %677 = vector.multi_reduction <minsi>, %676, %cst_176 [1] : vector<8x128xi32> to vector<8xi32>
      %678 = vector.shape_cast %677 : vector<8xi32> to vector<8x1xi32>
      %679 = vector.broadcast %678 : vector<8x1xi32> to vector<8x32xi32>
      %680 = arith.cmpi eq, %321, %679 : vector<8x32xi32>
      %681 = arith.extui %680 : vector<8x32xi1> to vector<8x32xi32>
      %682 = arith.sitofp %681 : vector<8x32xi32> to vector<8x32xf32>
      %cst_177 = arith.constant dense<0.000000e+00> : vector<8x128xf32>
      %683 = tpu.matmul %682, %319, %cst_177 {dimension_numbers = #tpu.dot_dimension_numbers<[1], [0], [0], [1], [0, 0, 1, 1], [], []>} : vector<8x32xf32>, vector<32x128xf32>, vector<8x128xf32> -> vector<8x128xf32>
      %684 = vector.extract_strided_slice %683 {offsets = [0, 0], sizes = [8, 16], strides = [1, 1]} : vector<8x128xf32> to vector<8x16xf32>
      %c0_178 = arith.constant 0 : index
      %c0_179 = arith.constant 0 : index
      %685 = vector.load %arg5[%c0_178, %c0_179] : memref<8x16xf32, #tpu.memory_space<vmem>>, vector<8x16xf32>
      tpu.vector_store %arg5[%c0_178, %c0_179], %684 {strides = array<i32>} : memref<8x16xf32, #tpu.memory_space<vmem>>, vector<8x16xf32>,
    } else {
    }
    %c0_84 = arith.constant 0 : index
    %c0_85 = arith.constant 0 : index
    %375 = vector.load %arg5[%c0_84, %c0_85] : memref<8x16xf32, #tpu.memory_space<vmem>>, vector<8x16xf32>
    %376 = tpu.concatenate %375, %343 in 1 : vector<8x16xf32>, vector<8x32xf32> -> vector<8x48xf32>
    %cst_86 = arith.constant dense<0.000000e+00> : vector<8x128xf32>
    %377 = tpu.matmul %376, %313, %cst_86 {dimension_numbers = #tpu.dot_dimension_numbers<[1], [0], [0], [1], [0, 0, 1, 1], [], []>} : vector<8x48xf32>, vector<48x128xf32>, vector<8x128xf32> -> vector<8x128xf32>
    %378 = arith.addf %377, %315 : vector<8x128xf32>
    %379 = arith.negf %378 : vector<8x128xf32>
    %380 = math.exp %379 : vector<8x128xf32>
    %cst_87 = arith.constant 1.000000e+00 : f32
    %381 = vector.broadcast %cst_87 : f32 to vector<8x128xf32>
    %382 = arith.addf %381, %380 : vector<8x128xf32>
    %383 = arith.divf %381, %382 : vector<8x128xf32>
    %384 = math.tanh %378 : vector<8x128xf32>
    %385 = vector.extract_strided_slice %383 {offsets = [0, 0], sizes = [8, 32], strides = [1, 1]} : vector<8x128xf32> to vector<8x32xf32>
    %386 = vector.extract_strided_slice %383 {offsets = [0, 32], sizes = [8, 32], strides = [1, 1]} : vector<8x128xf32> to vector<8x32xf32>
    %387 = vector.extract_strided_slice %384 {offsets = [0, 64], sizes = [8, 32], strides = [1, 1]} : vector<8x128xf32> to vector<8x32xf32>
    %388 = vector.extract_strided_slice %383 {offsets = [0, 96], sizes = [8, 32], strides = [1, 1]} : vector<8x128xf32> to vector<8x32xf32>
    %389 = arith.mulf %386, %341 : vector<8x32xf32>
    %390 = arith.mulf %385, %387 : vector<8x32xf32>
    %391 = arith.addf %389, %390 : vector<8x32xf32>
    %392 = math.tanh %391 : vector<8x32xf32>
    %393 = arith.mulf %388, %392 : vector<8x32xf32>
    %394 = tpu.concatenate %393, %361 in 1 : vector<8x32xf32>, vector<8x32xf32> -> vector<8x64xf32>
    %cst_88 = arith.constant dense<0.000000e+00> : vector<8x128xf32>
    %395 = tpu.matmul %394, %314, %cst_88 {dimension_numbers = #tpu.dot_dimension_numbers<[1], [0], [0], [1], [0, 0, 1, 1], [], []>} : vector<8x64xf32>, vector<64x128xf32>, vector<8x128xf32> -> vector<8x128xf32>
    %396 = arith.addf %395, %316 : vector<8x128xf32>
    %397 = arith.negf %396 : vector<8x128xf32>
    %398 = math.exp %397 : vector<8x128xf32>
    %cst_89 = arith.constant 1.000000e+00 : f32
    %399 = vector.broadcast %cst_89 : f32 to vector<8x128xf32>
    %400 = arith.addf %399, %398 : vector<8x128xf32>
    %401 = arith.divf %399, %400 : vector<8x128xf32>
    %402 = math.tanh %396 : vector<8x128xf32>
    %403 = vector.extract_strided_slice %401 {offsets = [0, 0], sizes = [8, 32], strides = [1, 1]} : vector<8x128xf32> to vector<8x32xf32>
    %404 = vector.extract_strided_slice %401 {offsets = [0, 32], sizes = [8, 32], strides = [1, 1]} : vector<8x128xf32> to vector<8x32xf32>
    %405 = vector.extract_strided_slice %402 {offsets = [0, 64], sizes = [8, 32], strides = [1, 1]} : vector<8x128xf32> to vector<8x32xf32>
    %406 = vector.extract_strided_slice %401 {offsets = [0, 96], sizes = [8, 32], strides = [1, 1]} : vector<8x128xf32> to vector<8x32xf32>
    %407 = arith.mulf %404, %359 : vector<8x32xf32>
    %408 = arith.mulf %403, %405 : vector<8x32xf32>
    %409 = arith.addf %407, %408 : vector<8x32xf32>
    %410 = math.tanh %409 : vector<8x32xf32>
    %411 = arith.mulf %406, %410 : vector<8x32xf32>
    %cst_90 = arith.constant dense<0.000000e+00> : vector<8x128xf32>
    %412 = tpu.matmul %411, %317, %cst_90 {dimension_numbers = #tpu.dot_dimension_numbers<[1], [0], [0], [1], [0, 0, 1, 1], [], []>} : vector<8x32xf32>, vector<32x128xf32>, vector<8x128xf32> -> vector<8x128xf32>
    %413 = arith.addf %412, %318 : vector<8x128xf32>
    %c2_91 = arith.constant 2 : index
    %c0_92 = arith.constant 0 : index
    %c0_93 = arith.constant 0 : index
    %414 = vector.load %arg4[%c2_91, %c0_92, %c0_93] : memref<8x8x128xf32, #tpu.memory_space<vmem>>, vector<1x8x128xf32>
    %415 = vector.shape_cast %414 : vector<1x8x128xf32> to vector<8x128xf32>
    %416 = vector.shape_cast %413 : vector<8x128xf32> to vector<1x8x128xf32>
    tpu.vector_store %arg4[%c2_91, %c0_92, %c0_93], %416 {strides = array<i32>} : memref<8x8x128xf32, #tpu.memory_space<vmem>>, vector<1x8x128xf32>,
    %c2_94 = arith.constant 2 : index
    %417 = memref.load %arg0[%c2_94] : memref<8xi32, #tpu.memory_space<smem>>
    %c0_i32_95 = arith.constant 0 : i32
    %418 = arith.cmpi ne, %417, %c0_i32_95 : i32
    %419 = arith.extui %418 : i1 to i32
    %c0_i32_96 = arith.constant 0 : i32
    %420 = arith.cmpi ne, %419, %c0_i32_96 : i32
    scf.if %420 {
      %c2_174 = arith.constant 2 : index
      %c0_175 = arith.constant 0 : index
      %c0_176 = arith.constant 0 : index
      %667 = vector.load %arg2[%c2_174, %c0_175, %c0_176] : memref<8x8x16xf32, #tpu.memory_space<vmem>>, vector<1x8x16xf32>
      %668 = vector.shape_cast %667 : vector<1x8x16xf32> to vector<8x16xf32>
      %c0_177 = arith.constant 0 : index
      %c0_178 = arith.constant 0 : index
      %669 = vector.load %arg5[%c0_177, %c0_178] : memref<8x16xf32, #tpu.memory_space<vmem>>, vector<8x16xf32>
      tpu.vector_store %arg5[%c0_177, %c0_178], %668 {strides = array<i32>} : memref<8x16xf32, #tpu.memory_space<vmem>>, vector<8x16xf32>,
    } else {
    }
    %c2_97 = arith.constant 2 : index
    %421 = memref.load %arg0[%c2_97] : memref<8xi32, #tpu.memory_space<smem>>
    %c0_i32_98 = arith.constant 0 : i32
    %422 = arith.cmpi eq, %421, %c0_i32_98 : i32
    %423 = arith.extui %422 : i1 to i32
    %c0_i32_99 = arith.constant 0 : i32
    %424 = arith.cmpi ne, %423, %c0_i32_99 : i32
    scf.if %424 {
      %c32_i32 = arith.constant 32 : i32
      %667 = vector.broadcast %c32_i32 : i32 to vector<8x128xi32>
      %668 = arith.cmpi slt, %320, %667 : vector<8x128xi32>
      %cst_174 = arith.constant -1.000000e+30 : f32
      %669 = vector.broadcast %cst_174 : f32 to vector<8x128xf32>
      %670 = arith.select %668, %413, %669 : vector<8x128xi1>, vector<8x128xf32>
      %cst_175 = arith.constant dense<0xFF800000> : vector<8xf32>
      %671 = vector.multi_reduction <maximumf>, %670, %cst_175 [1] : vector<8x128xf32> to vector<8xf32>
      %672 = vector.shape_cast %671 : vector<8xf32> to vector<8x1xf32>
      %673 = vector.broadcast %672 : vector<8x1xf32> to vector<8x128xf32>
      %674 = arith.cmpf oeq, %670, %673 : vector<8x128xf32>
      %c128_i32 = arith.constant 128 : i32
      %675 = vector.broadcast %c128_i32 : i32 to vector<8x128xi32>
      %676 = arith.select %674, %320, %675 : vector<8x128xi1>, vector<8x128xi32>
      %cst_176 = arith.constant dense<2147483647> : vector<8xi32>
      %677 = vector.multi_reduction <minsi>, %676, %cst_176 [1] : vector<8x128xi32> to vector<8xi32>
      %678 = vector.shape_cast %677 : vector<8xi32> to vector<8x1xi32>
      %679 = vector.broadcast %678 : vector<8x1xi32> to vector<8x32xi32>
      %680 = arith.cmpi eq, %321, %679 : vector<8x32xi32>
      %681 = arith.extui %680 : vector<8x32xi1> to vector<8x32xi32>
      %682 = arith.sitofp %681 : vector<8x32xi32> to vector<8x32xf32>
      %cst_177 = arith.constant dense<0.000000e+00> : vector<8x128xf32>
      %683 = tpu.matmul %682, %319, %cst_177 {dimension_numbers = #tpu.dot_dimension_numbers<[1], [0], [0], [1], [0, 0, 1, 1], [], []>} : vector<8x32xf32>, vector<32x128xf32>, vector<8x128xf32> -> vector<8x128xf32>
      %684 = vector.extract_strided_slice %683 {offsets = [0, 0], sizes = [8, 16], strides = [1, 1]} : vector<8x128xf32> to vector<8x16xf32>
      %c0_178 = arith.constant 0 : index
      %c0_179 = arith.constant 0 : index
      %685 = vector.load %arg5[%c0_178, %c0_179] : memref<8x16xf32, #tpu.memory_space<vmem>>, vector<8x16xf32>
      tpu.vector_store %arg5[%c0_178, %c0_179], %684 {strides = array<i32>} : memref<8x16xf32, #tpu.memory_space<vmem>>, vector<8x16xf32>,
    } else {
    }
    %c0_100 = arith.constant 0 : index
    %c0_101 = arith.constant 0 : index
    %425 = vector.load %arg5[%c0_100, %c0_101] : memref<8x16xf32, #tpu.memory_space<vmem>>, vector<8x16xf32>
    %426 = tpu.concatenate %425, %393 in 1 : vector<8x16xf32>, vector<8x32xf32> -> vector<8x48xf32>
    %cst_102 = arith.constant dense<0.000000e+00> : vector<8x128xf32>
    %427 = tpu.matmul %426, %313, %cst_102 {dimension_numbers = #tpu.dot_dimension_numbers<[1], [0], [0], [1], [0, 0, 1, 1], [], []>} : vector<8x48xf32>, vector<48x128xf32>, vector<8x128xf32> -> vector<8x128xf32>
    %428 = arith.addf %427, %315 : vector<8x128xf32>
    %429 = arith.negf %428 : vector<8x128xf32>
    %430 = math.exp %429 : vector<8x128xf32>
    %cst_103 = arith.constant 1.000000e+00 : f32
    %431 = vector.broadcast %cst_103 : f32 to vector<8x128xf32>
    %432 = arith.addf %431, %430 : vector<8x128xf32>
    %433 = arith.divf %431, %432 : vector<8x128xf32>
    %434 = math.tanh %428 : vector<8x128xf32>
    %435 = vector.extract_strided_slice %433 {offsets = [0, 0], sizes = [8, 32], strides = [1, 1]} : vector<8x128xf32> to vector<8x32xf32>
    %436 = vector.extract_strided_slice %433 {offsets = [0, 32], sizes = [8, 32], strides = [1, 1]} : vector<8x128xf32> to vector<8x32xf32>
    %437 = vector.extract_strided_slice %434 {offsets = [0, 64], sizes = [8, 32], strides = [1, 1]} : vector<8x128xf32> to vector<8x32xf32>
    %438 = vector.extract_strided_slice %433 {offsets = [0, 96], sizes = [8, 32], strides = [1, 1]} : vector<8x128xf32> to vector<8x32xf32>
    %439 = arith.mulf %436, %391 : vector<8x32xf32>
    %440 = arith.mulf %435, %437 : vector<8x32xf32>
    %441 = arith.addf %439, %440 : vector<8x32xf32>
    %442 = math.tanh %441 : vector<8x32xf32>
    %443 = arith.mulf %438, %442 : vector<8x32xf32>
    %444 = tpu.concatenate %443, %411 in 1 : vector<8x32xf32>, vector<8x32xf32> -> vector<8x64xf32>
    %cst_104 = arith.constant dense<0.000000e+00> : vector<8x128xf32>
    %445 = tpu.matmul %444, %314, %cst_104 {dimension_numbers = #tpu.dot_dimension_numbers<[1], [0], [0], [1], [0, 0, 1, 1], [], []>} : vector<8x64xf32>, vector<64x128xf32>, vector<8x128xf32> -> vector<8x128xf32>
    %446 = arith.addf %445, %316 : vector<8x128xf32>
    %447 = arith.negf %446 : vector<8x128xf32>
    %448 = math.exp %447 : vector<8x128xf32>
    %cst_105 = arith.constant 1.000000e+00 : f32
    %449 = vector.broadcast %cst_105 : f32 to vector<8x128xf32>
    %450 = arith.addf %449, %448 : vector<8x128xf32>
    %451 = arith.divf %449, %450 : vector<8x128xf32>
    %452 = math.tanh %446 : vector<8x128xf32>
    %453 = vector.extract_strided_slice %451 {offsets = [0, 0], sizes = [8, 32], strides = [1, 1]} : vector<8x128xf32> to vector<8x32xf32>
    %454 = vector.extract_strided_slice %451 {offsets = [0, 32], sizes = [8, 32], strides = [1, 1]} : vector<8x128xf32> to vector<8x32xf32>
    %455 = vector.extract_strided_slice %452 {offsets = [0, 64], sizes = [8, 32], strides = [1, 1]} : vector<8x128xf32> to vector<8x32xf32>
    %456 = vector.extract_strided_slice %451 {offsets = [0, 96], sizes = [8, 32], strides = [1, 1]} : vector<8x128xf32> to vector<8x32xf32>
    %457 = arith.mulf %454, %409 : vector<8x32xf32>
    %458 = arith.mulf %453, %455 : vector<8x32xf32>
    %459 = arith.addf %457, %458 : vector<8x32xf32>
    %460 = math.tanh %459 : vector<8x32xf32>
    %461 = arith.mulf %456, %460 : vector<8x32xf32>
    %cst_106 = arith.constant dense<0.000000e+00> : vector<8x128xf32>
    %462 = tpu.matmul %461, %317, %cst_106 {dimension_numbers = #tpu.dot_dimension_numbers<[1], [0], [0], [1], [0, 0, 1, 1], [], []>} : vector<8x32xf32>, vector<32x128xf32>, vector<8x128xf32> -> vector<8x128xf32>
    %463 = arith.addf %462, %318 : vector<8x128xf32>
    %c3_107 = arith.constant 3 : index
    %c0_108 = arith.constant 0 : index
    %c0_109 = arith.constant 0 : index
    %464 = vector.load %arg4[%c3_107, %c0_108, %c0_109] : memref<8x8x128xf32, #tpu.memory_space<vmem>>, vector<1x8x128xf32>
    %465 = vector.shape_cast %464 : vector<1x8x128xf32> to vector<8x128xf32>
    %466 = vector.shape_cast %463 : vector<8x128xf32> to vector<1x8x128xf32>
    tpu.vector_store %arg4[%c3_107, %c0_108, %c0_109], %466 {strides = array<i32>} : memref<8x8x128xf32, #tpu.memory_space<vmem>>, vector<1x8x128xf32>,
    %c3_110 = arith.constant 3 : index
    %467 = memref.load %arg0[%c3_110] : memref<8xi32, #tpu.memory_space<smem>>
    %c0_i32_111 = arith.constant 0 : i32
    %468 = arith.cmpi ne, %467, %c0_i32_111 : i32
    %469 = arith.extui %468 : i1 to i32
    %c0_i32_112 = arith.constant 0 : i32
    %470 = arith.cmpi ne, %469, %c0_i32_112 : i32
    scf.if %470 {
      %c3_174 = arith.constant 3 : index
      %c0_175 = arith.constant 0 : index
      %c0_176 = arith.constant 0 : index
      %667 = vector.load %arg2[%c3_174, %c0_175, %c0_176] : memref<8x8x16xf32, #tpu.memory_space<vmem>>, vector<1x8x16xf32>
      %668 = vector.shape_cast %667 : vector<1x8x16xf32> to vector<8x16xf32>
      %c0_177 = arith.constant 0 : index
      %c0_178 = arith.constant 0 : index
      %669 = vector.load %arg5[%c0_177, %c0_178] : memref<8x16xf32, #tpu.memory_space<vmem>>, vector<8x16xf32>
      tpu.vector_store %arg5[%c0_177, %c0_178], %668 {strides = array<i32>} : memref<8x16xf32, #tpu.memory_space<vmem>>, vector<8x16xf32>,
    } else {
    }
    %c3_113 = arith.constant 3 : index
    %471 = memref.load %arg0[%c3_113] : memref<8xi32, #tpu.memory_space<smem>>
    %c0_i32_114 = arith.constant 0 : i32
    %472 = arith.cmpi eq, %471, %c0_i32_114 : i32
    %473 = arith.extui %472 : i1 to i32
    %c0_i32_115 = arith.constant 0 : i32
    %474 = arith.cmpi ne, %473, %c0_i32_115 : i32
    scf.if %474 {
      %c32_i32 = arith.constant 32 : i32
      %667 = vector.broadcast %c32_i32 : i32 to vector<8x128xi32>
      %668 = arith.cmpi slt, %320, %667 : vector<8x128xi32>
      %cst_174 = arith.constant -1.000000e+30 : f32
      %669 = vector.broadcast %cst_174 : f32 to vector<8x128xf32>
      %670 = arith.select %668, %463, %669 : vector<8x128xi1>, vector<8x128xf32>
      %cst_175 = arith.constant dense<0xFF800000> : vector<8xf32>
      %671 = vector.multi_reduction <maximumf>, %670, %cst_175 [1] : vector<8x128xf32> to vector<8xf32>
      %672 = vector.shape_cast %671 : vector<8xf32> to vector<8x1xf32>
      %673 = vector.broadcast %672 : vector<8x1xf32> to vector<8x128xf32>
      %674 = arith.cmpf oeq, %670, %673 : vector<8x128xf32>
      %c128_i32 = arith.constant 128 : i32
      %675 = vector.broadcast %c128_i32 : i32 to vector<8x128xi32>
      %676 = arith.select %674, %320, %675 : vector<8x128xi1>, vector<8x128xi32>
      %cst_176 = arith.constant dense<2147483647> : vector<8xi32>
      %677 = vector.multi_reduction <minsi>, %676, %cst_176 [1] : vector<8x128xi32> to vector<8xi32>
      %678 = vector.shape_cast %677 : vector<8xi32> to vector<8x1xi32>
      %679 = vector.broadcast %678 : vector<8x1xi32> to vector<8x32xi32>
      %680 = arith.cmpi eq, %321, %679 : vector<8x32xi32>
      %681 = arith.extui %680 : vector<8x32xi1> to vector<8x32xi32>
      %682 = arith.sitofp %681 : vector<8x32xi32> to vector<8x32xf32>
      %cst_177 = arith.constant dense<0.000000e+00> : vector<8x128xf32>
      %683 = tpu.matmul %682, %319, %cst_177 {dimension_numbers = #tpu.dot_dimension_numbers<[1], [0], [0], [1], [0, 0, 1, 1], [], []>} : vector<8x32xf32>, vector<32x128xf32>, vector<8x128xf32> -> vector<8x128xf32>
      %684 = vector.extract_strided_slice %683 {offsets = [0, 0], sizes = [8, 16], strides = [1, 1]} : vector<8x128xf32> to vector<8x16xf32>
      %c0_178 = arith.constant 0 : index
      %c0_179 = arith.constant 0 : index
      %685 = vector.load %arg5[%c0_178, %c0_179] : memref<8x16xf32, #tpu.memory_space<vmem>>, vector<8x16xf32>
      tpu.vector_store %arg5[%c0_178, %c0_179], %684 {strides = array<i32>} : memref<8x16xf32, #tpu.memory_space<vmem>>, vector<8x16xf32>,
    } else {
    }
    %c0_116 = arith.constant 0 : index
    %c0_117 = arith.constant 0 : index
    %475 = vector.load %arg5[%c0_116, %c0_117] : memref<8x16xf32, #tpu.memory_space<vmem>>, vector<8x16xf32>
    %476 = tpu.concatenate %475, %443 in 1 : vector<8x16xf32>, vector<8x32xf32> -> vector<8x48xf32>
    %cst_118 = arith.constant dense<0.000000e+00> : vector<8x128xf32>
    %477 = tpu.matmul %476, %313, %cst_118 {dimension_numbers = #tpu.dot_dimension_numbers<[1], [0], [0], [1], [0, 0, 1, 1], [], []>} : vector<8x48xf32>, vector<48x128xf32>, vector<8x128xf32> -> vector<8x128xf32>
    %478 = arith.addf %477, %315 : vector<8x128xf32>
    %479 = arith.negf %478 : vector<8x128xf32>
    %480 = math.exp %479 : vector<8x128xf32>
    %cst_119 = arith.constant 1.000000e+00 : f32
    %481 = vector.broadcast %cst_119 : f32 to vector<8x128xf32>
    %482 = arith.addf %481, %480 : vector<8x128xf32>
    %483 = arith.divf %481, %482 : vector<8x128xf32>
    %484 = math.tanh %478 : vector<8x128xf32>
    %485 = vector.extract_strided_slice %483 {offsets = [0, 0], sizes = [8, 32], strides = [1, 1]} : vector<8x128xf32> to vector<8x32xf32>
    %486 = vector.extract_strided_slice %483 {offsets = [0, 32], sizes = [8, 32], strides = [1, 1]} : vector<8x128xf32> to vector<8x32xf32>
    %487 = vector.extract_strided_slice %484 {offsets = [0, 64], sizes = [8, 32], strides = [1, 1]} : vector<8x128xf32> to vector<8x32xf32>
    %488 = vector.extract_strided_slice %483 {offsets = [0, 96], sizes = [8, 32], strides = [1, 1]} : vector<8x128xf32> to vector<8x32xf32>
    %489 = arith.mulf %486, %441 : vector<8x32xf32>
    %490 = arith.mulf %485, %487 : vector<8x32xf32>
    %491 = arith.addf %489, %490 : vector<8x32xf32>
    %492 = math.tanh %491 : vector<8x32xf32>
    %493 = arith.mulf %488, %492 : vector<8x32xf32>
    %494 = tpu.concatenate %493, %461 in 1 : vector<8x32xf32>, vector<8x32xf32> -> vector<8x64xf32>
    %cst_120 = arith.constant dense<0.000000e+00> : vector<8x128xf32>
    %495 = tpu.matmul %494, %314, %cst_120 {dimension_numbers = #tpu.dot_dimension_numbers<[1], [0], [0], [1], [0, 0, 1, 1], [], []>} : vector<8x64xf32>, vector<64x128xf32>, vector<8x128xf32> -> vector<8x128xf32>
    %496 = arith.addf %495, %316 : vector<8x128xf32>
    %497 = arith.negf %496 : vector<8x128xf32>
    %498 = math.exp %497 : vector<8x128xf32>
    %cst_121 = arith.constant 1.000000e+00 : f32
    %499 = vector.broadcast %cst_121 : f32 to vector<8x128xf32>
    %500 = arith.addf %499, %498 : vector<8x128xf32>
    %501 = arith.divf %499, %500 : vector<8x128xf32>
    %502 = math.tanh %496 : vector<8x128xf32>
    %503 = vector.extract_strided_slice %501 {offsets = [0, 0], sizes = [8, 32], strides = [1, 1]} : vector<8x128xf32> to vector<8x32xf32>
    %504 = vector.extract_strided_slice %501 {offsets = [0, 32], sizes = [8, 32], strides = [1, 1]} : vector<8x128xf32> to vector<8x32xf32>
    %505 = vector.extract_strided_slice %502 {offsets = [0, 64], sizes = [8, 32], strides = [1, 1]} : vector<8x128xf32> to vector<8x32xf32>
    %506 = vector.extract_strided_slice %501 {offsets = [0, 96], sizes = [8, 32], strides = [1, 1]} : vector<8x128xf32> to vector<8x32xf32>
    %507 = arith.mulf %504, %459 : vector<8x32xf32>
    %508 = arith.mulf %503, %505 : vector<8x32xf32>
    %509 = arith.addf %507, %508 : vector<8x32xf32>
    %510 = math.tanh %509 : vector<8x32xf32>
    %511 = arith.mulf %506, %510 : vector<8x32xf32>
    %cst_122 = arith.constant dense<0.000000e+00> : vector<8x128xf32>
    %512 = tpu.matmul %511, %317, %cst_122 {dimension_numbers = #tpu.dot_dimension_numbers<[1], [0], [0], [1], [0, 0, 1, 1], [], []>} : vector<8x32xf32>, vector<32x128xf32>, vector<8x128xf32> -> vector<8x128xf32>
    %513 = arith.addf %512, %318 : vector<8x128xf32>
    %c4_123 = arith.constant 4 : index
    %c0_124 = arith.constant 0 : index
    %c0_125 = arith.constant 0 : index
    %514 = vector.load %arg4[%c4_123, %c0_124, %c0_125] : memref<8x8x128xf32, #tpu.memory_space<vmem>>, vector<1x8x128xf32>
    %515 = vector.shape_cast %514 : vector<1x8x128xf32> to vector<8x128xf32>
    %516 = vector.shape_cast %513 : vector<8x128xf32> to vector<1x8x128xf32>
    tpu.vector_store %arg4[%c4_123, %c0_124, %c0_125], %516 {strides = array<i32>} : memref<8x8x128xf32, #tpu.memory_space<vmem>>, vector<1x8x128xf32>,
    %c4_126 = arith.constant 4 : index
    %517 = memref.load %arg0[%c4_126] : memref<8xi32, #tpu.memory_space<smem>>
    %c0_i32_127 = arith.constant 0 : i32
    %518 = arith.cmpi ne, %517, %c0_i32_127 : i32
    %519 = arith.extui %518 : i1 to i32
    %c0_i32_128 = arith.constant 0 : i32
    %520 = arith.cmpi ne, %519, %c0_i32_128 : i32
    scf.if %520 {
      %c4_174 = arith.constant 4 : index
      %c0_175 = arith.constant 0 : index
      %c0_176 = arith.constant 0 : index
      %667 = vector.load %arg2[%c4_174, %c0_175, %c0_176] : memref<8x8x16xf32, #tpu.memory_space<vmem>>, vector<1x8x16xf32>
      %668 = vector.shape_cast %667 : vector<1x8x16xf32> to vector<8x16xf32>
      %c0_177 = arith.constant 0 : index
      %c0_178 = arith.constant 0 : index
      %669 = vector.load %arg5[%c0_177, %c0_178] : memref<8x16xf32, #tpu.memory_space<vmem>>, vector<8x16xf32>
      tpu.vector_store %arg5[%c0_177, %c0_178], %668 {strides = array<i32>} : memref<8x16xf32, #tpu.memory_space<vmem>>, vector<8x16xf32>,
    } else {
    }
    %c4_129 = arith.constant 4 : index
    %521 = memref.load %arg0[%c4_129] : memref<8xi32, #tpu.memory_space<smem>>
    %c0_i32_130 = arith.constant 0 : i32
    %522 = arith.cmpi eq, %521, %c0_i32_130 : i32
    %523 = arith.extui %522 : i1 to i32
    %c0_i32_131 = arith.constant 0 : i32
    %524 = arith.cmpi ne, %523, %c0_i32_131 : i32
    scf.if %524 {
      %c32_i32 = arith.constant 32 : i32
      %667 = vector.broadcast %c32_i32 : i32 to vector<8x128xi32>
      %668 = arith.cmpi slt, %320, %667 : vector<8x128xi32>
      %cst_174 = arith.constant -1.000000e+30 : f32
      %669 = vector.broadcast %cst_174 : f32 to vector<8x128xf32>
      %670 = arith.select %668, %513, %669 : vector<8x128xi1>, vector<8x128xf32>
      %cst_175 = arith.constant dense<0xFF800000> : vector<8xf32>
      %671 = vector.multi_reduction <maximumf>, %670, %cst_175 [1] : vector<8x128xf32> to vector<8xf32>
      %672 = vector.shape_cast %671 : vector<8xf32> to vector<8x1xf32>
      %673 = vector.broadcast %672 : vector<8x1xf32> to vector<8x128xf32>
      %674 = arith.cmpf oeq, %670, %673 : vector<8x128xf32>
      %c128_i32 = arith.constant 128 : i32
      %675 = vector.broadcast %c128_i32 : i32 to vector<8x128xi32>
      %676 = arith.select %674, %320, %675 : vector<8x128xi1>, vector<8x128xi32>
      %cst_176 = arith.constant dense<2147483647> : vector<8xi32>
      %677 = vector.multi_reduction <minsi>, %676, %cst_176 [1] : vector<8x128xi32> to vector<8xi32>
      %678 = vector.shape_cast %677 : vector<8xi32> to vector<8x1xi32>
      %679 = vector.broadcast %678 : vector<8x1xi32> to vector<8x32xi32>
      %680 = arith.cmpi eq, %321, %679 : vector<8x32xi32>
      %681 = arith.extui %680 : vector<8x32xi1> to vector<8x32xi32>
      %682 = arith.sitofp %681 : vector<8x32xi32> to vector<8x32xf32>
      %cst_177 = arith.constant dense<0.000000e+00> : vector<8x128xf32>
      %683 = tpu.matmul %682, %319, %cst_177 {dimension_numbers = #tpu.dot_dimension_numbers<[1], [0], [0], [1], [0, 0, 1, 1], [], []>} : vector<8x32xf32>, vector<32x128xf32>, vector<8x128xf32> -> vector<8x128xf32>
      %684 = vector.extract_strided_slice %683 {offsets = [0, 0], sizes = [8, 16], strides = [1, 1]} : vector<8x128xf32> to vector<8x16xf32>
      %c0_178 = arith.constant 0 : index
      %c0_179 = arith.constant 0 : index
      %685 = vector.load %arg5[%c0_178, %c0_179] : memref<8x16xf32, #tpu.memory_space<vmem>>, vector<8x16xf32>
      tpu.vector_store %arg5[%c0_178, %c0_179], %684 {strides = array<i32>} : memref<8x16xf32, #tpu.memory_space<vmem>>, vector<8x16xf32>,
    } else {
    }
    %c0_132 = arith.constant 0 : index
    %c0_133 = arith.constant 0 : index
    %525 = vector.load %arg5[%c0_132, %c0_133] : memref<8x16xf32, #tpu.memory_space<vmem>>, vector<8x16xf32>
    %526 = tpu.concatenate %525, %493 in 1 : vector<8x16xf32>, vector<8x32xf32> -> vector<8x48xf32>
    %cst_134 = arith.constant dense<0.000000e+00> : vector<8x128xf32>
    %527 = tpu.matmul %526, %313, %cst_134 {dimension_numbers = #tpu.dot_dimension_numbers<[1], [0], [0], [1], [0, 0, 1, 1], [], []>} : vector<8x48xf32>, vector<48x128xf32>, vector<8x128xf32> -> vector<8x128xf32>
    %528 = arith.addf %527, %315 : vector<8x128xf32>
    %529 = arith.negf %528 : vector<8x128xf32>
    %530 = math.exp %529 : vector<8x128xf32>
    %cst_135 = arith.constant 1.000000e+00 : f32
    %531 = vector.broadcast %cst_135 : f32 to vector<8x128xf32>
    %532 = arith.addf %531, %530 : vector<8x128xf32>
    %533 = arith.divf %531, %532 : vector<8x128xf32>
    %534 = math.tanh %528 : vector<8x128xf32>
    %535 = vector.extract_strided_slice %533 {offsets = [0, 0], sizes = [8, 32], strides = [1, 1]} : vector<8x128xf32> to vector<8x32xf32>
    %536 = vector.extract_strided_slice %533 {offsets = [0, 32], sizes = [8, 32], strides = [1, 1]} : vector<8x128xf32> to vector<8x32xf32>
    %537 = vector.extract_strided_slice %534 {offsets = [0, 64], sizes = [8, 32], strides = [1, 1]} : vector<8x128xf32> to vector<8x32xf32>
    %538 = vector.extract_strided_slice %533 {offsets = [0, 96], sizes = [8, 32], strides = [1, 1]} : vector<8x128xf32> to vector<8x32xf32>
    %539 = arith.mulf %536, %491 : vector<8x32xf32>
    %540 = arith.mulf %535, %537 : vector<8x32xf32>
    %541 = arith.addf %539, %540 : vector<8x32xf32>
    %542 = math.tanh %541 : vector<8x32xf32>
    %543 = arith.mulf %538, %542 : vector<8x32xf32>
    %544 = tpu.concatenate %543, %511 in 1 : vector<8x32xf32>, vector<8x32xf32> -> vector<8x64xf32>
    %cst_136 = arith.constant dense<0.000000e+00> : vector<8x128xf32>
    %545 = tpu.matmul %544, %314, %cst_136 {dimension_numbers = #tpu.dot_dimension_numbers<[1], [0], [0], [1], [0, 0, 1, 1], [], []>} : vector<8x64xf32>, vector<64x128xf32>, vector<8x128xf32> -> vector<8x128xf32>
    %546 = arith.addf %545, %316 : vector<8x128xf32>
    %547 = arith.negf %546 : vector<8x128xf32>
    %548 = math.exp %547 : vector<8x128xf32>
    %cst_137 = arith.constant 1.000000e+00 : f32
    %549 = vector.broadcast %cst_137 : f32 to vector<8x128xf32>
    %550 = arith.addf %549, %548 : vector<8x128xf32>
    %551 = arith.divf %549, %550 : vector<8x128xf32>
    %552 = math.tanh %546 : vector<8x128xf32>
    %553 = vector.extract_strided_slice %551 {offsets = [0, 0], sizes = [8, 32], strides = [1, 1]} : vector<8x128xf32> to vector<8x32xf32>
    %554 = vector.extract_strided_slice %551 {offsets = [0, 32], sizes = [8, 32], strides = [1, 1]} : vector<8x128xf32> to vector<8x32xf32>
    %555 = vector.extract_strided_slice %552 {offsets = [0, 64], sizes = [8, 32], strides = [1, 1]} : vector<8x128xf32> to vector<8x32xf32>
    %556 = vector.extract_strided_slice %551 {offsets = [0, 96], sizes = [8, 32], strides = [1, 1]} : vector<8x128xf32> to vector<8x32xf32>
    %557 = arith.mulf %554, %509 : vector<8x32xf32>
    %558 = arith.mulf %553, %555 : vector<8x32xf32>
    %559 = arith.addf %557, %558 : vector<8x32xf32>
    %560 = math.tanh %559 : vector<8x32xf32>
    %561 = arith.mulf %556, %560 : vector<8x32xf32>
    %cst_138 = arith.constant dense<0.000000e+00> : vector<8x128xf32>
    %562 = tpu.matmul %561, %317, %cst_138 {dimension_numbers = #tpu.dot_dimension_numbers<[1], [0], [0], [1], [0, 0, 1, 1], [], []>} : vector<8x32xf32>, vector<32x128xf32>, vector<8x128xf32> -> vector<8x128xf32>
    %563 = arith.addf %562, %318 : vector<8x128xf32>
    %c5_139 = arith.constant 5 : index
    %c0_140 = arith.constant 0 : index
    %c0_141 = arith.constant 0 : index
    %564 = vector.load %arg4[%c5_139, %c0_140, %c0_141] : memref<8x8x128xf32, #tpu.memory_space<vmem>>, vector<1x8x128xf32>
    %565 = vector.shape_cast %564 : vector<1x8x128xf32> to vector<8x128xf32>
    %566 = vector.shape_cast %563 : vector<8x128xf32> to vector<1x8x128xf32>
    tpu.vector_store %arg4[%c5_139, %c0_140, %c0_141], %566 {strides = array<i32>} : memref<8x8x128xf32, #tpu.memory_space<vmem>>, vector<1x8x128xf32>,
    %c5_142 = arith.constant 5 : index
    %567 = memref.load %arg0[%c5_142] : memref<8xi32, #tpu.memory_space<smem>>
    %c0_i32_143 = arith.constant 0 : i32
    %568 = arith.cmpi ne, %567, %c0_i32_143 : i32
    %569 = arith.extui %568 : i1 to i32
    %c0_i32_144 = arith.constant 0 : i32
    %570 = arith.cmpi ne, %569, %c0_i32_144 : i32
    scf.if %570 {
      %c5_174 = arith.constant 5 : index
      %c0_175 = arith.constant 0 : index
      %c0_176 = arith.constant 0 : index
      %667 = vector.load %arg2[%c5_174, %c0_175, %c0_176] : memref<8x8x16xf32, #tpu.memory_space<vmem>>, vector<1x8x16xf32>
      %668 = vector.shape_cast %667 : vector<1x8x16xf32> to vector<8x16xf32>
      %c0_177 = arith.constant 0 : index
      %c0_178 = arith.constant 0 : index
      %669 = vector.load %arg5[%c0_177, %c0_178] : memref<8x16xf32, #tpu.memory_space<vmem>>, vector<8x16xf32>
      tpu.vector_store %arg5[%c0_177, %c0_178], %668 {strides = array<i32>} : memref<8x16xf32, #tpu.memory_space<vmem>>, vector<8x16xf32>,
    } else {
    }
    %c5_145 = arith.constant 5 : index
    %571 = memref.load %arg0[%c5_145] : memref<8xi32, #tpu.memory_space<smem>>
    %c0_i32_146 = arith.constant 0 : i32
    %572 = arith.cmpi eq, %571, %c0_i32_146 : i32
    %573 = arith.extui %572 : i1 to i32
    %c0_i32_147 = arith.constant 0 : i32
    %574 = arith.cmpi ne, %573, %c0_i32_147 : i32
    scf.if %574 {
      %c32_i32 = arith.constant 32 : i32
      %667 = vector.broadcast %c32_i32 : i32 to vector<8x128xi32>
      %668 = arith.cmpi slt, %320, %667 : vector<8x128xi32>
      %cst_174 = arith.constant -1.000000e+30 : f32
      %669 = vector.broadcast %cst_174 : f32 to vector<8x128xf32>
      %670 = arith.select %668, %563, %669 : vector<8x128xi1>, vector<8x128xf32>
      %cst_175 = arith.constant dense<0xFF800000> : vector<8xf32>
      %671 = vector.multi_reduction <maximumf>, %670, %cst_175 [1] : vector<8x128xf32> to vector<8xf32>
      %672 = vector.shape_cast %671 : vector<8xf32> to vector<8x1xf32>
      %673 = vector.broadcast %672 : vector<8x1xf32> to vector<8x128xf32>
      %674 = arith.cmpf oeq, %670, %673 : vector<8x128xf32>
      %c128_i32 = arith.constant 128 : i32
      %675 = vector.broadcast %c128_i32 : i32 to vector<8x128xi32>
      %676 = arith.select %674, %320, %675 : vector<8x128xi1>, vector<8x128xi32>
      %cst_176 = arith.constant dense<2147483647> : vector<8xi32>
      %677 = vector.multi_reduction <minsi>, %676, %cst_176 [1] : vector<8x128xi32> to vector<8xi32>
      %678 = vector.shape_cast %677 : vector<8xi32> to vector<8x1xi32>
      %679 = vector.broadcast %678 : vector<8x1xi32> to vector<8x32xi32>
      %680 = arith.cmpi eq, %321, %679 : vector<8x32xi32>
      %681 = arith.extui %680 : vector<8x32xi1> to vector<8x32xi32>
      %682 = arith.sitofp %681 : vector<8x32xi32> to vector<8x32xf32>
      %cst_177 = arith.constant dense<0.000000e+00> : vector<8x128xf32>
      %683 = tpu.matmul %682, %319, %cst_177 {dimension_numbers = #tpu.dot_dimension_numbers<[1], [0], [0], [1], [0, 0, 1, 1], [], []>} : vector<8x32xf32>, vector<32x128xf32>, vector<8x128xf32> -> vector<8x128xf32>
      %684 = vector.extract_strided_slice %683 {offsets = [0, 0], sizes = [8, 16], strides = [1, 1]} : vector<8x128xf32> to vector<8x16xf32>
      %c0_178 = arith.constant 0 : index
      %c0_179 = arith.constant 0 : index
      %685 = vector.load %arg5[%c0_178, %c0_179] : memref<8x16xf32, #tpu.memory_space<vmem>>, vector<8x16xf32>
      tpu.vector_store %arg5[%c0_178, %c0_179], %684 {strides = array<i32>} : memref<8x16xf32, #tpu.memory_space<vmem>>, vector<8x16xf32>,
    } else {
    }
    %c0_148 = arith.constant 0 : index
    %c0_149 = arith.constant 0 : index
    %575 = vector.load %arg5[%c0_148, %c0_149] : memref<8x16xf32, #tpu.memory_space<vmem>>, vector<8x16xf32>
    %576 = tpu.concatenate %575, %543 in 1 : vector<8x16xf32>, vector<8x32xf32> -> vector<8x48xf32>
    %cst_150 = arith.constant dense<0.000000e+00> : vector<8x128xf32>
    %577 = tpu.matmul %576, %313, %cst_150 {dimension_numbers = #tpu.dot_dimension_numbers<[1], [0], [0], [1], [0, 0, 1, 1], [], []>} : vector<8x48xf32>, vector<48x128xf32>, vector<8x128xf32> -> vector<8x128xf32>
    %578 = arith.addf %577, %315 : vector<8x128xf32>
    %579 = arith.negf %578 : vector<8x128xf32>
    %580 = math.exp %579 : vector<8x128xf32>
    %cst_151 = arith.constant 1.000000e+00 : f32
    %581 = vector.broadcast %cst_151 : f32 to vector<8x128xf32>
    %582 = arith.addf %581, %580 : vector<8x128xf32>
    %583 = arith.divf %581, %582 : vector<8x128xf32>
    %584 = math.tanh %578 : vector<8x128xf32>
    %585 = vector.extract_strided_slice %583 {offsets = [0, 0], sizes = [8, 32], strides = [1, 1]} : vector<8x128xf32> to vector<8x32xf32>
    %586 = vector.extract_strided_slice %583 {offsets = [0, 32], sizes = [8, 32], strides = [1, 1]} : vector<8x128xf32> to vector<8x32xf32>
    %587 = vector.extract_strided_slice %584 {offsets = [0, 64], sizes = [8, 32], strides = [1, 1]} : vector<8x128xf32> to vector<8x32xf32>
    %588 = vector.extract_strided_slice %583 {offsets = [0, 96], sizes = [8, 32], strides = [1, 1]} : vector<8x128xf32> to vector<8x32xf32>
    %589 = arith.mulf %586, %541 : vector<8x32xf32>
    %590 = arith.mulf %585, %587 : vector<8x32xf32>
    %591 = arith.addf %589, %590 : vector<8x32xf32>
    %592 = math.tanh %591 : vector<8x32xf32>
    %593 = arith.mulf %588, %592 : vector<8x32xf32>
    %594 = tpu.concatenate %593, %561 in 1 : vector<8x32xf32>, vector<8x32xf32> -> vector<8x64xf32>
    %cst_152 = arith.constant dense<0.000000e+00> : vector<8x128xf32>
    %595 = tpu.matmul %594, %314, %cst_152 {dimension_numbers = #tpu.dot_dimension_numbers<[1], [0], [0], [1], [0, 0, 1, 1], [], []>} : vector<8x64xf32>, vector<64x128xf32>, vector<8x128xf32> -> vector<8x128xf32>
    %596 = arith.addf %595, %316 : vector<8x128xf32>
    %597 = arith.negf %596 : vector<8x128xf32>
    %598 = math.exp %597 : vector<8x128xf32>
    %cst_153 = arith.constant 1.000000e+00 : f32
    %599 = vector.broadcast %cst_153 : f32 to vector<8x128xf32>
    %600 = arith.addf %599, %598 : vector<8x128xf32>
    %601 = arith.divf %599, %600 : vector<8x128xf32>
    %602 = math.tanh %596 : vector<8x128xf32>
    %603 = vector.extract_strided_slice %601 {offsets = [0, 0], sizes = [8, 32], strides = [1, 1]} : vector<8x128xf32> to vector<8x32xf32>
    %604 = vector.extract_strided_slice %601 {offsets = [0, 32], sizes = [8, 32], strides = [1, 1]} : vector<8x128xf32> to vector<8x32xf32>
    %605 = vector.extract_strided_slice %602 {offsets = [0, 64], sizes = [8, 32], strides = [1, 1]} : vector<8x128xf32> to vector<8x32xf32>
    %606 = vector.extract_strided_slice %601 {offsets = [0, 96], sizes = [8, 32], strides = [1, 1]} : vector<8x128xf32> to vector<8x32xf32>
    %607 = arith.mulf %604, %559 : vector<8x32xf32>
    %608 = arith.mulf %603, %605 : vector<8x32xf32>
    %609 = arith.addf %607, %608 : vector<8x32xf32>
    %610 = math.tanh %609 : vector<8x32xf32>
    %611 = arith.mulf %606, %610 : vector<8x32xf32>
    %cst_154 = arith.constant dense<0.000000e+00> : vector<8x128xf32>
    %612 = tpu.matmul %611, %317, %cst_154 {dimension_numbers = #tpu.dot_dimension_numbers<[1], [0], [0], [1], [0, 0, 1, 1], [], []>} : vector<8x32xf32>, vector<32x128xf32>, vector<8x128xf32> -> vector<8x128xf32>
    %613 = arith.addf %612, %318 : vector<8x128xf32>
    %c6_155 = arith.constant 6 : index
    %c0_156 = arith.constant 0 : index
    %c0_157 = arith.constant 0 : index
    %614 = vector.load %arg4[%c6_155, %c0_156, %c0_157] : memref<8x8x128xf32, #tpu.memory_space<vmem>>, vector<1x8x128xf32>
    %615 = vector.shape_cast %614 : vector<1x8x128xf32> to vector<8x128xf32>
    %616 = vector.shape_cast %613 : vector<8x128xf32> to vector<1x8x128xf32>
    tpu.vector_store %arg4[%c6_155, %c0_156, %c0_157], %616 {strides = array<i32>} : memref<8x8x128xf32, #tpu.memory_space<vmem>>, vector<1x8x128xf32>,
    %c6_158 = arith.constant 6 : index
    %617 = memref.load %arg0[%c6_158] : memref<8xi32, #tpu.memory_space<smem>>
    %c0_i32_159 = arith.constant 0 : i32
    %618 = arith.cmpi ne, %617, %c0_i32_159 : i32
    %619 = arith.extui %618 : i1 to i32
    %c0_i32_160 = arith.constant 0 : i32
    %620 = arith.cmpi ne, %619, %c0_i32_160 : i32
    scf.if %620 {
      %c6_174 = arith.constant 6 : index
      %c0_175 = arith.constant 0 : index
      %c0_176 = arith.constant 0 : index
      %667 = vector.load %arg2[%c6_174, %c0_175, %c0_176] : memref<8x8x16xf32, #tpu.memory_space<vmem>>, vector<1x8x16xf32>
      %668 = vector.shape_cast %667 : vector<1x8x16xf32> to vector<8x16xf32>
      %c0_177 = arith.constant 0 : index
      %c0_178 = arith.constant 0 : index
      %669 = vector.load %arg5[%c0_177, %c0_178] : memref<8x16xf32, #tpu.memory_space<vmem>>, vector<8x16xf32>
      tpu.vector_store %arg5[%c0_177, %c0_178], %668 {strides = array<i32>} : memref<8x16xf32, #tpu.memory_space<vmem>>, vector<8x16xf32>,
    } else {
    }
    %c6_161 = arith.constant 6 : index
    %621 = memref.load %arg0[%c6_161] : memref<8xi32, #tpu.memory_space<smem>>
    %c0_i32_162 = arith.constant 0 : i32
    %622 = arith.cmpi eq, %621, %c0_i32_162 : i32
    %623 = arith.extui %622 : i1 to i32
    %c0_i32_163 = arith.constant 0 : i32
    %624 = arith.cmpi ne, %623, %c0_i32_163 : i32
    scf.if %624 {
      %c32_i32 = arith.constant 32 : i32
      %667 = vector.broadcast %c32_i32 : i32 to vector<8x128xi32>
      %668 = arith.cmpi slt, %320, %667 : vector<8x128xi32>
      %cst_174 = arith.constant -1.000000e+30 : f32
      %669 = vector.broadcast %cst_174 : f32 to vector<8x128xf32>
      %670 = arith.select %668, %613, %669 : vector<8x128xi1>, vector<8x128xf32>
      %cst_175 = arith.constant dense<0xFF800000> : vector<8xf32>
      %671 = vector.multi_reduction <maximumf>, %670, %cst_175 [1] : vector<8x128xf32> to vector<8xf32>
      %672 = vector.shape_cast %671 : vector<8xf32> to vector<8x1xf32>
      %673 = vector.broadcast %672 : vector<8x1xf32> to vector<8x128xf32>
      %674 = arith.cmpf oeq, %670, %673 : vector<8x128xf32>
      %c128_i32 = arith.constant 128 : i32
      %675 = vector.broadcast %c128_i32 : i32 to vector<8x128xi32>
      %676 = arith.select %674, %320, %675 : vector<8x128xi1>, vector<8x128xi32>
      %cst_176 = arith.constant dense<2147483647> : vector<8xi32>
      %677 = vector.multi_reduction <minsi>, %676, %cst_176 [1] : vector<8x128xi32> to vector<8xi32>
      %678 = vector.shape_cast %677 : vector<8xi32> to vector<8x1xi32>
      %679 = vector.broadcast %678 : vector<8x1xi32> to vector<8x32xi32>
      %680 = arith.cmpi eq, %321, %679 : vector<8x32xi32>
      %681 = arith.extui %680 : vector<8x32xi1> to vector<8x32xi32>
      %682 = arith.sitofp %681 : vector<8x32xi32> to vector<8x32xf32>
      %cst_177 = arith.constant dense<0.000000e+00> : vector<8x128xf32>
      %683 = tpu.matmul %682, %319, %cst_177 {dimension_numbers = #tpu.dot_dimension_numbers<[1], [0], [0], [1], [0, 0, 1, 1], [], []>} : vector<8x32xf32>, vector<32x128xf32>, vector<8x128xf32> -> vector<8x128xf32>
      %684 = vector.extract_strided_slice %683 {offsets = [0, 0], sizes = [8, 16], strides = [1, 1]} : vector<8x128xf32> to vector<8x16xf32>
      %c0_178 = arith.constant 0 : index
      %c0_179 = arith.constant 0 : index
      %685 = vector.load %arg5[%c0_178, %c0_179] : memref<8x16xf32, #tpu.memory_space<vmem>>, vector<8x16xf32>
      tpu.vector_store %arg5[%c0_178, %c0_179], %684 {strides = array<i32>} : memref<8x16xf32, #tpu.memory_space<vmem>>, vector<8x16xf32>,
    } else {
    }
    %c0_164 = arith.constant 0 : index
    %c0_165 = arith.constant 0 : index
    %625 = vector.load %arg5[%c0_164, %c0_165] : memref<8x16xf32, #tpu.memory_space<vmem>>, vector<8x16xf32>
    %626 = tpu.concatenate %625, %593 in 1 : vector<8x16xf32>, vector<8x32xf32> -> vector<8x48xf32>
    %cst_166 = arith.constant dense<0.000000e+00> : vector<8x128xf32>
    %627 = tpu.matmul %626, %313, %cst_166 {dimension_numbers = #tpu.dot_dimension_numbers<[1], [0], [0], [1], [0, 0, 1, 1], [], []>} : vector<8x48xf32>, vector<48x128xf32>, vector<8x128xf32> -> vector<8x128xf32>
    %628 = arith.addf %627, %315 : vector<8x128xf32>
    %629 = arith.negf %628 : vector<8x128xf32>
    %630 = math.exp %629 : vector<8x128xf32>
    %cst_167 = arith.constant 1.000000e+00 : f32
    %631 = vector.broadcast %cst_167 : f32 to vector<8x128xf32>
    %632 = arith.addf %631, %630 : vector<8x128xf32>
    %633 = arith.divf %631, %632 : vector<8x128xf32>
    %634 = math.tanh %628 : vector<8x128xf32>
    %635 = vector.extract_strided_slice %633 {offsets = [0, 0], sizes = [8, 32], strides = [1, 1]} : vector<8x128xf32> to vector<8x32xf32>
    %636 = vector.extract_strided_slice %633 {offsets = [0, 32], sizes = [8, 32], strides = [1, 1]} : vector<8x128xf32> to vector<8x32xf32>
    %637 = vector.extract_strided_slice %634 {offsets = [0, 64], sizes = [8, 32], strides = [1, 1]} : vector<8x128xf32> to vector<8x32xf32>
    %638 = vector.extract_strided_slice %633 {offsets = [0, 96], sizes = [8, 32], strides = [1, 1]} : vector<8x128xf32> to vector<8x32xf32>
    %639 = arith.mulf %636, %591 : vector<8x32xf32>
    %640 = arith.mulf %635, %637 : vector<8x32xf32>
    %641 = arith.addf %639, %640 : vector<8x32xf32>
    %642 = math.tanh %641 : vector<8x32xf32>
    %643 = arith.mulf %638, %642 : vector<8x32xf32>
    %644 = tpu.concatenate %643, %611 in 1 : vector<8x32xf32>, vector<8x32xf32> -> vector<8x64xf32>
    %cst_168 = arith.constant dense<0.000000e+00> : vector<8x128xf32>
    %645 = tpu.matmul %644, %314, %cst_168 {dimension_numbers = #tpu.dot_dimension_numbers<[1], [0], [0], [1], [0, 0, 1, 1], [], []>} : vector<8x64xf32>, vector<64x128xf32>, vector<8x128xf32> -> vector<8x128xf32>
    %646 = arith.addf %645, %316 : vector<8x128xf32>
    %647 = arith.negf %646 : vector<8x128xf32>
    %648 = math.exp %647 : vector<8x128xf32>
    %cst_169 = arith.constant 1.000000e+00 : f32
    %649 = vector.broadcast %cst_169 : f32 to vector<8x128xf32>
    %650 = arith.addf %649, %648 : vector<8x128xf32>
    %651 = arith.divf %649, %650 : vector<8x128xf32>
    %652 = math.tanh %646 : vector<8x128xf32>
    %653 = vector.extract_strided_slice %651 {offsets = [0, 0], sizes = [8, 32], strides = [1, 1]} : vector<8x128xf32> to vector<8x32xf32>
    %654 = vector.extract_strided_slice %651 {offsets = [0, 32], sizes = [8, 32], strides = [1, 1]} : vector<8x128xf32> to vector<8x32xf32>
    %655 = vector.extract_strided_slice %652 {offsets = [0, 64], sizes = [8, 32], strides = [1, 1]} : vector<8x128xf32> to vector<8x32xf32>
    %656 = vector.extract_strided_slice %651 {offsets = [0, 96], sizes = [8, 32], strides = [1, 1]} : vector<8x128xf32> to vector<8x32xf32>
    %657 = arith.mulf %654, %609 : vector<8x32xf32>
    %658 = arith.mulf %653, %655 : vector<8x32xf32>
    %659 = arith.addf %657, %658 : vector<8x32xf32>
    %660 = math.tanh %659 : vector<8x32xf32>
    %661 = arith.mulf %656, %660 : vector<8x32xf32>
    %cst_170 = arith.constant dense<0.000000e+00> : vector<8x128xf32>
    %662 = tpu.matmul %661, %317, %cst_170 {dimension_numbers = #tpu.dot_dimension_numbers<[1], [0], [0], [1], [0, 0, 1, 1], [], []>} : vector<8x32xf32>, vector<32x128xf32>, vector<8x128xf32> -> vector<8x128xf32>
    %663 = arith.addf %662, %318 : vector<8x128xf32>
    %c7_171 = arith.constant 7 : index
    %c0_172 = arith.constant 0 : index
    %c0_173 = arith.constant 0 : index
    %664 = vector.load %arg4[%c7_171, %c0_172, %c0_173] : memref<8x8x128xf32, #tpu.memory_space<vmem>>, vector<1x8x128xf32>
    %665 = vector.shape_cast %664 : vector<1x8x128xf32> to vector<8x128xf32>
    %666 = vector.shape_cast %663 : vector<8x128xf32> to vector<1x8x128xf32>
    tpu.vector_store %arg4[%c7_171, %c0_172, %c0_173], %666 {strides = array<i32>} : memref<8x8x128xf32, #tpu.memory_space<vmem>>, vector<1x8x128xf32>,
    return
  }
}

</mosaic_0001>

<bundles_post_ra>
// kernel: seq2seq_forward.1
= control target key start
LH: loop header
LB: loop body
LE: loop exit
PB: predicated region body
PF: predicated region fallthrough
CT: control target
= control target key end

     0   :  { %9 = vsyncpa [#allocation4], 0  ;;  %s7145_s0 = inlined_call_operand.vmem [shape: s32[8], index: 0, kind: input, shape index: {}]   ;;  %s7146_s1 = inlined_call_operand.vmem [shape: f32[8,8,16], index: 1, kind: input, shape index: {}]   ;;  %s7147_s2 = inlined_call_operand.vmem [shape: f32[8,8,16], index: 2, kind: input, shape index: {}]   ;;  %s7148_s3 = inlined_call_operand.vmem [shape: f32[328,128], index: 3, kind: input, shape index: {}]   ;;  %s7149_s4 = inlined_call_operand.vmem [shape: f32[8,8,128], index: 4, kind: output, shape index: {}]  }
   0x1   :  { %s16_s17 = sshll.u32 %s7145_s0, 4  ;;  %s17_s17 = int_to_ptr.vmem [resolvable:$true] %s16_s17 }
   0x2   :  { %s5754_s18 = scalar_lea.vmem %s17_s17, 16  ;;  %p5759_p1 = scmp.lt.s32.totalorder %s17_s17, %s17_s17 }
   0x3   :  { %p5755_p0 = scmp.ne.s32.totalorder %s17_s17, %s5754_s18  ;;  %p5760_p2 = scmp.lt.s32.totalorder %s5754_s18, %s5754_s18 }
   0x5   :  { %p5761_p3 = por %p5760_p2, %p5759_p1 }
   0x7   :  { %p5762_p4 = pnand %p5761_p3, %p5755_p0 }
   0x9   :  { %5765 = shalt.err (!%p5762_p4)
}
   0xa   :  { %s5768_s19 = smov [#allocation3]  }
   0xb   :  { %19 = dma.vmem_to_smem %s17_s17, 16, %s5768_s19, [#allocation4]  }
   0xc   :  { %5766 = dma.done.wait [#allocation4], 16  }
   0xd   :  { %5767 = vsyncadd [#allocation4], 4294967280 }
   0xe   :  { %29 = sfence }
   0xf   :  { %v5817_v0 = vld [vmem:[%s7148_s3 + $0x28] sm:$0xff]  ;;  %v5769_v1 = vmov 0.0   ;;  %v5827_v2 = vld [vmem:[%s7148_s3 + $0x20] sm:$0xff]  ;;  %vm5770_vm0 = vmmov 0   ;;  %v5837_v3 = vld [vmem:[%s7148_s3 + $0x18] sm:$0xff]  ;;  %vm47_vm1 = vcmask 130048  }
  0x10   :  { %4826 = vmatprep.subr.mxu0 %v5769_v1  ;;  %1714 = vst [vmem:[%s7149_s4] sm:$0xff] %v5769_v1  ;;  %4838 = vmatprep.mubr.msk.f32.mxu0 %vm5770_vm0, %v5769_v1  ;;  %v5846_v4 = vld [vmem:[%s7148_s3 + $0x10] sm:$0xff]  ;;  %v5853_v5 = vld [vmem:[%s7148_s3 + $0x8] sm:$0xff]  ;;  %v46_v6 = vld [vmem:[%s7146_s1] sm:$0xff]  ;;  %vm49_vm2 = vcmask 392192   ;;  %s5771_s11 = smov 64   ;;  %s5772_s12 = smov 32  }
  0x11   :  { %4827 = vmatpush3.msra.mxu0 %v5817_v0  ;;  %4841 = vmatprep.subr.mxu1 %v5769_v1  ;;  %v5863_v7 = vld [vmem:[%s7148_s3] sm:$0xff]  ;;  %v48_v8 = vsel %vm47_vm1, %v46_v6, 0.0  ;;  %v5899_v23 = vld [vmem:[%s7148_s3 + $0x68] sm:$0xff]  ;;  %v5911_v25 = vld [vmem:[%s7148_s3 + $0x58] sm:$0xff]  ;;  %s5773_s28 = smov 48   ;;  %vm151_vm3 = vcmask 261120  }
  0x12   :  { %4828 = vmatprep.subr.mxu0 %v5769_v1  ;;  %4857 = vmatprep.mubr.msk.f32.mxu1 %vm5770_vm0, %v5769_v1  ;;  %v5888_v9 = vld [vmem:[%s7148_s3 + $0x120] sm:$0xff]  ;;  %v5918_v26 = vld [vmem:[%s7148_s3 + $0x50] sm:$0xff]  ;;  %v5925_v27 = vld [vmem:[%s7148_s3 + $0x48] sm:$0xff]  ;;  %vm153_vm4 = vcmask 523264   ;;  %s4443_s30 = sld [smem:[#allocation3 + $0x1]] }
  0x13   :  { %4829 = vmatpush3.msra.mxu0 %v5827_v2  ;;  %v5904_v24 = vld [vmem:[%s7148_s3 + $0x60] sm:$0xff]  ;;  %4842 = vmatpush3.msra.mxu1 %v5899_v23  ;;  %v5939_v30 = vld [vmem:[%s7148_s3 + $0x38] sm:$0xff]  ;;  %v5949_v31 = vld [vmem:[%s7148_s3 + $0x30] sm:$0xff] }
  0x14   :  { %4830 = vmatprep.subr.mxu0 %v5769_v1  ;;  %4843 = vmatprep.subr.mxu1 %v5769_v1  ;;  %v5932_v28 = vld [vmem:[%s7148_s3 + $0x40] sm:$0xff]  ;;  %v4402_v34 = vld [vmem:[%s7146_s1 + $0x8] sm:$0xff] }
  0x15   :  { %4831 = vmatpush3.msra.mxu0 %v5837_v3  ;;  %4844 = vmatpush3.msra.mxu1 %v5904_v24  ;;  %v5997_v39 = vld [vmem:[%s7148_s3 + $0x128] sm:$0xff] }
  0x16   :  { %4832 = vmatprep.subr.mxu0 %v5769_v1  ;;  %4845 = vmatprep.subr.mxu1 %v5769_v1 }
  0x17   :  { %4833 = vmatpush3.msra.mxu0 %v5846_v4  ;;  %4846 = vmatpush3.msra.mxu1 %v5911_v25 }
  0x18   :  { %4834 = vmatprep.subr.mxu0 %v5769_v1  ;;  %4847 = vmatprep.subr.mxu1 %v5769_v1  ;;  %p4444_p5 = scmp.eq.s32.totalorder %s4443_s30, 0 }
  0x19   :  { %4835 = vmatpush3.msra.mxu0 %v5853_v5  ;;  %4848 = vmatpush3.msra.mxu1 %v5918_v26 }
  0x1a   :  { %4836 = vmatprep.subr.mxu0 %v5769_v1  ;;  %4849 = vmatprep.subr.mxu1 %v5769_v1 }
  0x1b   :  { %4837 = vmatpush3.msra.mxu0 %v5863_v7  ;;  %4850 = vmatpush3.msra.mxu1 %v5925_v27 }
  0x1c   :  { %4839 = vmatmul.mubr.msk.f32.vlgmr.msra.gmra.mxu0 %vm49_vm2, %v48_v8  ;;  %4860 = vmatprep.subr.mxu0 %v5769_v1 }
  0x1d   :  { %4861 = vmatpush3.msra.mxu0 %v5817_v0  ;;  %4872 = vmatprep.mubr.msk.f32.mxu0 %vm5770_vm0, %v5769_v1 }
  0x1e   :  { %4862 = vmatprep.subr.mxu0 %v5769_v1  ;;  %4851 = vmatprep.subr.mxu1 %v5769_v1 }
  0x1f   :  { %4863 = vmatpush3.msra.mxu0 %v5827_v2  ;;  %4852 = vmatpush3.msra.mxu1 %v5932_v28 }
  0x20   :  { %4864 = vmatprep.subr.mxu0 %v5769_v1  ;;  %4853 = vmatprep.subr.mxu1 %v5769_v1 }
  0x21   :  { %4865 = vmatpush3.msra.mxu0 %v5837_v3  ;;  %4854 = vmatpush3.msra.mxu1 %v5939_v30 }
  0x22   :  { %4866 = vmatprep.subr.mxu0 %v5769_v1  ;;  %4855 = vmatprep.subr.mxu1 %v5769_v1 }
  0x23   :  { %4867 = vmatpush3.msra.mxu0 %v5846_v4  ;;  %4856 = vmatpush3.msra.mxu1 %v5949_v31 }
  0x24   :  { %4868 = vmatprep.subr.mxu0 %v5769_v1  ;;  %4875 = vmatprep.subr.mxu1 %v5769_v1 }
  0x25   :  { %4869 = vmatpush3.msra.mxu0 %v5853_v5 }
  0x26   :  { %4870 = vmatprep.subr.mxu0 %v5769_v1 }
  0x27   :  { %4871 = vmatpush3.msra.mxu0 %v5863_v7 }
  0x28   :  { %4894 = vmatprep.subr.mxu0 %v5769_v1 }
  0xdc   :  { %v119_v10 = vpop.f32.mrf.mxu0 }
  0xdd   :  { %v120_v11 = vadd.f32 %v119_v10, %v5888_v9 }
  0xde   :  { %v4840_v12 = vpop.f32.mrf.mxu0 }
  0xdf   :  { %5497 = vtanh.f32 %v120_v11  ;;  %v4399_v14 = vmul.f32 -1.442695, %v120_v11 }
  0xe1   :  { %5499 = vpow2.f32 %v4399_v14 }
  0xec   :  { %v5498_v13 = vpop.eup %5497 }
  0xed   :  { %132 = vrot.lane.b32.xlu0 %v5498_v13, %s5771_s11 }
  0xee   :  { %v5500_v15 = vpop.eup %5499 }
  0xef   :  { %v126_v16 = vadd.f32 1.0, %v5500_v15 }
  0xf1   :  { %5501 = vrcp.f32 %v126_v16 }
  0xfe   :  { %v5502_v17 = vpop.eup %5501 }
  0xff   :  { %v130_v20 = vmul.f32 0.0, %v5502_v17 }
 0x15f   :  { %v133_v18 = vpop.permute.xlu0 %132 }
 0x160   :  { %v135_v19 = vmul.f32 %v5502_v17, %v133_v18 }
 0x162   :  { %137 = vrot.lane.b32.xlu0 %v135_v19, %s5772_s12  ;;  %v4407_v19 = vld [vmem:[%s7146_s1 + $0x10] sm:$0xff] }
 0x1d4   :  { %v138_v21 = vpop.permute.xlu0 %137 }
 0x1d5   :  { %v5893_v22 = vadd.f32 %v138_v21, %v130_v20 }
 0x1d7   :  { %5503 = vtanh.f32 %v5893_v22 }
 0x1e4   :  { %v5504_v29 = vpop.eup %5503 }
 0x1e5   :  { %143 = vrot.lane.b32.xlu1 %v5504_v29, %s5771_s11 }
 0x257   :  { %v144_v32 = vpop.permute.xlu1 %143 }
 0x258   :  { %v146_v33 = vmul.f32 %v5502_v17, %v144_v32 }
 0x25a   :  { %253 = vrot.lane.b32.xlu0 %v146_v33, %s5773_s28  ;;  %148 = vrot.lane.b32.xlu1 %v146_v33, %s5772_s12 }
 0x2cc   :  { %v254_v35 = vpop.permute.xlu0 %253  ;;  %v149_v36 = vpop.permute.xlu1 %148 }
 0x2cd   :  { %v256_v37 = vsel %vm47_vm1, %v4402_v34, %v254_v35  ;;  %v152_v38 = vsel %vm151_vm3, %v149_v36, 0.0 }
 0x2ce   :  { %4858 = vmatmul.mubr.msk.f32.vlgmr.msra.gmra.mxu1 %vm153_vm4, %v152_v38  ;;  %4873 = vmatmul.mubr.msk.f32.vlgmr.msra.gmra.mxu0 %vm49_vm2, %v256_v37 }
 0x2cf   :  { %4876 = vmatpush3.msra.mxu1 %v5899_v23  ;;  %4895 = vmatpush3.msra.mxu0 %v5817_v0 }
 0x2d0   :  { %4877 = vmatprep.subr.mxu1 %v5769_v1  ;;  %4896 = vmatprep.subr.mxu0 %v5769_v1 }
 0x2d1   :  { %4878 = vmatpush3.msra.mxu1 %v5904_v24  ;;  %4897 = vmatpush3.msra.mxu0 %v5827_v2 }
 0x2d2   :  { %4879 = vmatprep.subr.mxu1 %v5769_v1  ;;  %4898 = vmatprep.subr.mxu0 %v5769_v1 }
 0x2d3   :  { %4880 = vmatpush3.msra.mxu1 %v5911_v25  ;;  %4899 = vmatpush3.msra.mxu0 %v5837_v3 }
 0x2d4   :  { %4881 = vmatprep.subr.mxu1 %v5769_v1  ;;  %4900 = vmatprep.subr.mxu0 %v5769_v1 }
 0x2d5   :  { %4882 = vmatpush3.msra.mxu1 %v5918_v26  ;;  %4891 = vmatprep.mubr.msk.f32.mxu1 %vm5770_vm0, %v5769_v1 }
 0x2d6   :  { %4883 = vmatprep.subr.mxu1 %v5769_v1  ;;  %4901 = vmatpush3.msra.mxu0 %v5846_v4 }
 0x2d7   :  { %4884 = vmatpush3.msra.mxu1 %v5925_v27  ;;  %4902 = vmatprep.subr.mxu0 %v5769_v1 }
 0x2d8   :  { %4885 = vmatprep.subr.mxu1 %v5769_v1  ;;  %4903 = vmatpush3.msra.mxu0 %v5853_v5 }
 0x2d9   :  { %4886 = vmatpush3.msra.mxu1 %v5932_v28  ;;  %4904 = vmatprep.subr.mxu0 %v5769_v1 }
 0x2da   :  { %4887 = vmatprep.subr.mxu1 %v5769_v1  ;;  %4905 = vmatpush3.msra.mxu0 %v5863_v7 }
 0x2db   :  { %4888 = vmatpush3.msra.mxu1 %v5939_v30  ;;  %4906 = vmatprep.mubr.msk.f32.mxu0 %vm5770_vm0, %v5769_v1 }
 0x2dc   :  { %4889 = vmatprep.subr.mxu1 %v5769_v1  ;;  %4928 = vmatprep.subr.mxu0 %v5769_v1 }
 0x2dd   :  { %4890 = vmatpush3.msra.mxu1 %v5949_v31 }
 0x2de   :  { %4909 = vmatprep.subr.mxu1 %v5769_v1 }
 0x38e   :  { %v223_v40 = vpop.f32.mrf.mxu1  ;;  %v326_v41 = vpop.f32.mrf.mxu0 }
 0x38f   :  { %v224_v42 = vadd.f32 %v223_v40, %v5997_v39  ;;  %v327_v43 = vadd.f32 %v326_v41, %v5888_v9 }
 0x390   :  { %v4859_v44 = vpop.f32.mrf.mxu1  ;;  %v4874_v45 = vpop.f32.mrf.mxu0 }
 0x391   :  { %5505 = vtanh.f32 %v224_v42  ;;  %v4401_v48 = vmul.f32 -1.442695, %v224_v42  ;;  %v4404_v49 = vmul.f32 -1.442695, %v327_v43 }
 0x392   :  { %5507 = vtanh.f32 %v327_v43 }
 0x393   :  { %5509 = vpow2.f32 %v4401_v48 }
 0x394   :  { %5511 = vpow2.f32 %v4404_v49 }
 0x39e   :  { %v5506_v46 = vpop.eup %5505 }
 0x39f   :  { %v5508_v47 = vpop.eup %5507  ;;  %236 = vrot.lane.b32.xlu1 %v5506_v46, %s5771_s11 }
 0x3a0   :  { %339 = vrot.lane.b32.xlu0 %v5508_v47, %s5771_s11  ;;  %v5510_v50 = vpop.eup %5509 }
 0x3a1   :  { %v5512_v51 = vpop.eup %5511  ;;  %v230_v52 = vadd.f32 1.0, %v5510_v50 }
 0x3a2   :  { %v333_v53 = vadd.f32 1.0, %v5512_v51 }
 0x3a3   :  { %5513 = vrcp.f32 %v230_v52 }
 0x3a4   :  { %5515 = vrcp.f32 %v333_v53 }
 0x3b0   :  { %v5514_v54 = vpop.eup %5513 }
 0x3b1   :  { %v5516_v56 = vpop.eup %5515  ;;  %v234_v60 = vmul.f32 0.0, %v5514_v54 }
 0x3b2   :  { %v337_v62 = vmul.f32 %v5516_v56, %v5893_v22 }
 0x411   :  { %v237_v55 = vpop.permute.xlu1 %236 }
 0x412   :  { %v239_v57 = vmul.f32 %v5514_v54, %v237_v55  ;;  %v340_v58 = vpop.permute.xlu0 %339 }
 0x413   :  { %v342_v59 = vmul.f32 %v5516_v56, %v340_v58 }
 0x414   :  { %241 = vrot.lane.b32.xlu1 %v239_v57, %s5772_s12 }
 0x415   :  { %344 = vrot.lane.b32.xlu0 %v342_v59, %s5772_s12 }
 0x486   :  { %v242_v61 = vpop.permute.xlu1 %241 }
 0x487   :  { %v6006_v63 = vadd.f32 %v242_v61, %v234_v60  ;;  %v345_v6 = vpop.permute.xlu0 %344 }
 0x488   :  { %v6008_v8 = vadd.f32 %v345_v6, %v337_v62 }
 0x489   :  { %5517 = vtanh.f32 %v6006_v63 }
 0x48a   :  { %5519 = vtanh.f32 %v6008_v8 }
 0x496   :  { %v5518_v10 = vpop.eup %5517 }
 0x497   :  { %v5520_v11 = vpop.eup %5519  ;;  %247 = vrot.lane.b32.xlu1 %v5518_v10, %s5771_s11  ;;  %v4412_v10 = vld [vmem:[%s7146_s1 + $0x18] sm:$0xff] }
 0x498   :  { %350 = vrot.lane.b32.xlu0 %v5520_v11, %s5771_s11 }
 0x509   :  { %v248_v12 = vpop.permute.xlu1 %247 }
 0x50a   :  { %v250_v13 = vmul.f32 %v5514_v54, %v248_v12  ;;  %v351_v14 = vpop.permute.xlu0 %350 }
 0x50b   :  { %v353_v15 = vmul.f32 %v5516_v56, %v351_v14 }
 0x50c   :  { %359 = vrot.lane.b32.xlu0 %v250_v13, %s5771_s11 }
 0x50d   :  { %355 = vrot.lane.b32.xlu1 %v353_v15, %s5772_s12 }
 0x511   :  { %462 = vrot.lane.b32.xlu1 %v353_v15, %s5773_s28 }
 0x57e   :  { %v360_v16 = vpop.permute.xlu0 %359 }
 0x57f   :  { %v356_v17 = vpop.permute.xlu1 %355 }
 0x580   :  { %v362_v18 = vsel %vm151_vm3, %v356_v17, %v360_v16 }
 0x581   :  { %4892 = vmatmul.mubr.msk.f32.vlgmr.msra.gmra.mxu1 %vm153_vm4, %v362_v18 }
 0x582   :  { %4910 = vmatpush3.msra.mxu1 %v5899_v23  ;;  %4925 = vmatprep.mubr.msk.f32.mxu1 %vm5770_vm0, %v5769_v1 }
 0x583   :  { %v463_v20 = vpop.permute.xlu1 %462  ;;  %4911 = vmatprep.subr.mxu1 %v5769_v1 }
 0x584   :  { %v465_v21 = vsel %vm47_vm1, %v4407_v19, %v463_v20  ;;  %4912 = vmatpush3.msra.mxu1 %v5904_v24 }
 0x585   :  { %4907 = vmatmul.mubr.msk.f32.vlgmr.msra.gmra.mxu0 %vm49_vm2, %v465_v21  ;;  %4913 = vmatprep.subr.mxu1 %v5769_v1 }
 0x586   :  { %4914 = vmatpush3.msra.mxu1 %v5911_v25  ;;  %4929 = vmatpush3.msra.mxu0 %v5817_v0 }
 0x587   :  { %4915 = vmatprep.subr.mxu1 %v5769_v1  ;;  %4930 = vmatprep.subr.mxu0 %v5769_v1 }
 0x588   :  { %4916 = vmatpush3.msra.mxu1 %v5918_v26  ;;  %4931 = vmatpush3.msra.mxu0 %v5827_v2 }
 0x589   :  { %4917 = vmatprep.subr.mxu1 %v5769_v1  ;;  %4932 = vmatprep.subr.mxu0 %v5769_v1 }
 0x58a   :  { %4918 = vmatpush3.msra.mxu1 %v5925_v27  ;;  %4933 = vmatpush3.msra.mxu0 %v5837_v3 }
 0x58b   :  { %4919 = vmatprep.subr.mxu1 %v5769_v1  ;;  %4934 = vmatprep.subr.mxu0 %v5769_v1 }
 0x58c   :  { %4920 = vmatpush3.msra.mxu1 %v5932_v28  ;;  %4935 = vmatpush3.msra.mxu0 %v5846_v4 }
 0x58d   :  { %4921 = vmatprep.subr.mxu1 %v5769_v1  ;;  %4936 = vmatprep.subr.mxu0 %v5769_v1 }
 0x58e   :  { %4922 = vmatpush3.msra.mxu1 %v5939_v30  ;;  %4937 = vmatpush3.msra.mxu0 %v5853_v5 }
 0x58f   :  { %4923 = vmatprep.subr.mxu1 %v5769_v1  ;;  %4938 = vmatprep.subr.mxu0 %v5769_v1 }
 0x590   :  { %4924 = vmatpush3.msra.mxu1 %v5949_v31  ;;  %4939 = vmatpush3.msra.mxu0 %v5863_v7 }
 0x591   :  { %4940 = vmatprep.mubr.msk.f32.mxu0 %vm5770_vm0, %v5769_v1  ;;  %4943 = vmatprep.subr.mxu0 %v5769_v1 }
 0x592   :  { %4962 = vmatprep.subr.mxu1 %v5769_v1 }
 0x641   :  { %v432_v22 = vpop.f32.mrf.mxu1 }
 0x642   :  { %v433_v29 = vadd.f32 %v432_v22, %v5997_v39 }
 0x643   :  { %v4893_v32 = vpop.f32.mrf.mxu1 }
 0x644   :  { %5521 = vtanh.f32 %v433_v29  ;;  %v4406_v38 = vmul.f32 -1.442695, %v433_v29 }
 0x645   :  { %v535_v33 = vpop.f32.mrf.mxu0 }
 0x646   :  { %v536_v34 = vadd.f32 %v535_v33, %v5888_v9 }
 0x647   :  { %v4908_v35 = vpop.f32.mrf.mxu0 }
 0x648   :  { %5523 = vtanh.f32 %v536_v34  ;;  %v4409_v40 = vmul.f32 -1.442695, %v536_v34 }
 0x649   :  { %5525 = vpow2.f32 %v4406_v38 }
 0x64a   :  { %5527 = vpow2.f32 %v4409_v40 }
 0x651   :  { %v5522_v36 = vpop.eup %5521 }
 0x652   :  { %445 = vrot.lane.b32.xlu0 %v5522_v36, %s5771_s11 }
 0x655   :  { %v5524_v37 = vpop.eup %5523 }
 0x656   :  { %548 = vrot.lane.b32.xlu1 %v5524_v37, %s5771_s11  ;;  %v5526_v41 = vpop.eup %5525 }
 0x657   :  { %v439_v42 = vadd.f32 1.0, %v5526_v41  ;;  %v5528_v43 = vpop.eup %5527 }
 0x658   :  { %v542_v44 = vadd.f32 1.0, %v5528_v43 }
 0x659   :  { %5529 = vrcp.f32 %v439_v42 }
 0x65a   :  { %5531 = vrcp.f32 %v542_v44 }
 0x666   :  { %v5530_v45 = vpop.eup %5529 }
 0x667   :  { %v5532_v48 = vpop.eup %5531  ;;  %v443_v51 = vmul.f32 %v5530_v45, %v6006_v63 }
 0x668   :  { %v546_v54 = vmul.f32 %v5532_v48, %v6008_v8 }
 0x6c4   :  { %v446_v46 = vpop.permute.xlu0 %445 }
 0x6c5   :  { %v448_v47 = vmul.f32 %v5530_v45, %v446_v46 }
 0x6c7   :  { %450 = vrot.lane.b32.xlu0 %v448_v47, %s5772_s12 }
 0x6c8   :  { %v549_v49 = vpop.permute.xlu1 %548 }
 0x6c9   :  { %v551_v50 = vmul.f32 %v5532_v48, %v549_v49 }
 0x6cb   :  { %553 = vrot.lane.b32.xlu1 %v551_v50, %s5772_s12 }
 0x739   :  { %v451_v52 = vpop.permute.xlu0 %450 }
 0x73a   :  { %v6063_v53 = vadd.f32 %v451_v52, %v443_v51 }
 0x73c   :  { %5533 = vtanh.f32 %v6063_v53 }
 0x73d   :  { %v554_v55 = vpop.permute.xlu1 %553 }
 0x73e   :  { %v6067_v56 = vadd.f32 %v554_v55, %v546_v54 }
 0x740   :  { %5535 = vtanh.f32 %v6067_v56 }
 0x749   :  { %v5534_v57 = vpop.eup %5533 }
 0x74a   :  { %456 = vrot.lane.b32.xlu0 %v5534_v57, %s5771_s11  ;;  %v4417_v57 = vld [vmem:[%s7146_s1 + $0x20] sm:$0xff] }
 0x74d   :  { %v5536_v58 = vpop.eup %5535 }
 0x74e   :  { %559 = vrot.lane.b32.xlu1 %v5536_v58, %s5771_s11 }
 0x7bc   :  { %v457_v59 = vpop.permute.xlu0 %456 }
 0x7bd   :  { %v459_v60 = vmul.f32 %v5530_v45, %v457_v59 }
 0x7bf   :  { %568 = vrot.lane.b32.xlu1 %v459_v60, %s5771_s11 }
 0x7c0   :  { %v560_v61 = vpop.permute.xlu1 %559 }
 0x7c1   :  { %v562_v62 = vmul.f32 %v5532_v48, %v560_v61 }
 0x7c3   :  { %564 = vrot.lane.b32.xlu0 %v562_v62, %s5772_s12 }
 0x7c7   :  { %671 = vrot.lane.b32.xlu0 %v562_v62, %s5773_s28 }
 0x831   :  { %v569_v63 = vpop.permute.xlu1 %568 }
 0x835   :  { %v565_v6 = vpop.permute.xlu0 %564 }
 0x836   :  { %v571_v8 = vsel %vm151_vm3, %v565_v6, %v569_v63 }
 0x837   :  { %4926 = vmatmul.mubr.msk.f32.vlgmr.msra.gmra.mxu1 %vm153_vm4, %v571_v8 }
 0x838   :  { %4963 = vmatpush3.msra.mxu1 %v5817_v0  ;;  %4974 = vmatprep.mubr.msk.f32.mxu1 %vm5770_vm0, %v5769_v1 }
 0x839   :  { %v672_v11 = vpop.permute.xlu0 %671  ;;  %4964 = vmatprep.subr.mxu1 %v5769_v1 }
 0x83a   :  { %v674_v12 = vsel %vm47_vm1, %v4412_v10, %v672_v11  ;;  %4965 = vmatpush3.msra.mxu1 %v5827_v2 }
 0x83b   :  { %4941 = vmatmul.mubr.msk.f32.vlgmr.msra.gmra.mxu0 %vm49_vm2, %v674_v12  ;;  %4966 = vmatprep.subr.mxu1 %v5769_v1 }
 0x83c   :  { %4944 = vmatpush3.msra.mxu0 %v5899_v23  ;;  %4967 = vmatpush3.msra.mxu1 %v5837_v3 }
 0x83d   :  { %4945 = vmatprep.subr.mxu0 %v5769_v1  ;;  %4968 = vmatprep.subr.mxu1 %v5769_v1 }
 0x83e   :  { %4946 = vmatpush3.msra.mxu0 %v5904_v24  ;;  %4959 = vmatprep.mubr.msk.f32.mxu0 %vm5770_vm0, %v5769_v1 }
 0x83f   :  { %4947 = vmatprep.subr.mxu0 %v5769_v1  ;;  %4969 = vmatpush3.msra.mxu1 %v5846_v4 }
 0x840   :  { %4948 = vmatpush3.msra.mxu0 %v5911_v25  ;;  %4970 = vmatprep.subr.mxu1 %v5769_v1 }
 0x841   :  { %4949 = vmatprep.subr.mxu0 %v5769_v1  ;;  %4971 = vmatpush3.msra.mxu1 %v5853_v5 }
 0x842   :  { %4950 = vmatpush3.msra.mxu0 %v5918_v26  ;;  %4972 = vmatprep.subr.mxu1 %v5769_v1 }
 0x843   :  { %4951 = vmatprep.subr.mxu0 %v5769_v1  ;;  %4973 = vmatpush3.msra.mxu1 %v5863_v7 }
 0x844   :  { %4952 = vmatpush3.msra.mxu0 %v5925_v27  ;;  %4977 = vmatprep.subr.mxu1 %v5769_v1 }
 0x845   :  { %4953 = vmatprep.subr.mxu0 %v5769_v1 }
 0x846   :  { %4954 = vmatpush3.msra.mxu0 %v5932_v28 }
 0x847   :  { %4955 = vmatprep.subr.mxu0 %v5769_v1 }
 0x848   :  { %4956 = vmatpush3.msra.mxu0 %v5939_v30 }
 0x849   :  { %4957 = vmatprep.subr.mxu0 %v5769_v1 }
 0x84a   :  { %4958 = vmatpush3.msra.mxu0 %v5949_v31 }
 0x84b   :  { %4996 = vmatprep.subr.mxu0 %v5769_v1 }
 0x8f7   :  { %v641_v13 = vpop.f32.mrf.mxu1 }
 0x8f8   :  { %v642_v14 = vadd.f32 %v641_v13, %v5997_v39 }
 0x8f9   :  { %v4927_v15 = vpop.f32.mrf.mxu1 }
 0x8fa   :  { %5537 = vtanh.f32 %v642_v14  ;;  %v4411_v21 = vmul.f32 -1.442695, %v642_v14 }
 0x8fb   :  { %v744_v16 = vpop.f32.mrf.mxu0 }
 0x8fc   :  { %v745_v17 = vadd.f32 %v744_v16, %v5888_v9 }
 0x8fd   :  { %v4942_v18 = vpop.f32.mrf.mxu0 }
 0x8fe   :  { %5539 = vtanh.f32 %v745_v17  ;;  %v4414_v22 = vmul.f32 -1.442695, %v745_v17 }
 0x8ff   :  { %5541 = vpow2.f32 %v4411_v21 }
 0x900   :  { %5543 = vpow2.f32 %v4414_v22 }
 0x907   :  { %v5538_v19 = vpop.eup %5537 }
 0x908   :  { %654 = vrot.lane.b32.xlu1 %v5538_v19, %s5771_s11 }
 0x90b   :  { %v5540_v20 = vpop.eup %5539 }
 0x90c   :  { %757 = vrot.lane.b32.xlu0 %v5540_v20, %s5771_s11  ;;  %v5542_v29 = vpop.eup %5541 }
 0x90d   :  { %v648_v32 = vadd.f32 1.0, %v5542_v29  ;;  %v5544_v33 = vpop.eup %5543 }
 0x90e   :  { %v751_v34 = vadd.f32 1.0, %v5544_v33 }
 0x90f   :  { %5545 = vrcp.f32 %v648_v32 }
 0x910   :  { %5547 = vrcp.f32 %v751_v34 }
 0x91c   :  { %v5546_v35 = vpop.eup %5545 }
 0x91d   :  { %v5548_v38 = vpop.eup %5547  ;;  %v652_v42 = vmul.f32 %v5546_v35, %v6063_v53 }
 0x91e   :  { %v755_v45 = vmul.f32 %v5548_v38, %v6067_v56 }
 0x97a   :  { %v655_v36 = vpop.permute.xlu1 %654 }
 0x97b   :  { %v657_v37 = vmul.f32 %v5546_v35, %v655_v36 }
 0x97d   :  { %659 = vrot.lane.b32.xlu1 %v657_v37, %s5772_s12 }
 0x97e   :  { %v758_v40 = vpop.permute.xlu0 %757 }
 0x97f   :  { %v760_v41 = vmul.f32 %v5548_v38, %v758_v40 }
 0x981   :  { %762 = vrot.lane.b32.xlu0 %v760_v41, %s5772_s12 }
 0x9ef   :  { %v660_v43 = vpop.permute.xlu1 %659 }
 0x9f0   :  { %v6121_v44 = vadd.f32 %v660_v43, %v652_v42 }
 0x9f2   :  { %5549 = vtanh.f32 %v6121_v44 }
 0x9f3   :  { %v763_v46 = vpop.permute.xlu0 %762 }
 0x9f4   :  { %v6125_v47 = vadd.f32 %v763_v46, %v755_v45 }
 0x9f6   :  { %5551 = vtanh.f32 %v6125_v47 }
 0x9ff   :  { %v5550_v48 = vpop.eup %5549 }
 0xa00   :  { %665 = vrot.lane.b32.xlu1 %v5550_v48, %s5771_s11  ;;  %v4422_v48 = vld [vmem:[%s7146_s1 + $0x28] sm:$0xff] }
 0xa03   :  { %v5552_v49 = vpop.eup %5551 }
 0xa04   :  { %768 = vrot.lane.b32.xlu0 %v5552_v49, %s5771_s11 }
 0xa72   :  { %v666_v50 = vpop.permute.xlu1 %665 }
 0xa73   :  { %v668_v51 = vmul.f32 %v5546_v35, %v666_v50 }
 0xa75   :  { %777 = vrot.lane.b32.xlu0 %v668_v51, %s5771_s11 }
 0xa76   :  { %v769_v52 = vpop.permute.xlu0 %768 }
 0xa77   :  { %v771_v53 = vmul.f32 %v5548_v38, %v769_v52 }
 0xa79   :  { %773 = vrot.lane.b32.xlu1 %v771_v53, %s5772_s12 }
 0xa7d   :  { %880 = vrot.lane.b32.xlu1 %v771_v53, %s5773_s28 }
 0xae7   :  { %v778_v54 = vpop.permute.xlu0 %777 }
 0xaeb   :  { %v774_v55 = vpop.permute.xlu1 %773 }
 0xaec   :  { %v780_v56 = vsel %vm151_vm3, %v774_v55, %v778_v54 }
 0xaed   :  { %4960 = vmatmul.mubr.msk.f32.vlgmr.msra.gmra.mxu0 %vm153_vm4, %v780_v56 }
 0xaee   :  { %4997 = vmatpush3.msra.mxu0 %v5817_v0  ;;  %5008 = vmatprep.mubr.msk.f32.mxu0 %vm5770_vm0, %v5769_v1 }
 0xaef   :  { %v881_v58 = vpop.permute.xlu1 %880  ;;  %4998 = vmatprep.subr.mxu0 %v5769_v1 }
 0xaf0   :  { %v883_v59 = vsel %vm47_vm1, %v4417_v57, %v881_v58  ;;  %4999 = vmatpush3.msra.mxu0 %v5827_v2 }
 0xaf1   :  { %4975 = vmatmul.mubr.msk.f32.vlgmr.msra.gmra.mxu1 %vm49_vm2, %v883_v59  ;;  %5000 = vmatprep.subr.mxu0 %v5769_v1 }
 0xaf2   :  { %4978 = vmatpush3.msra.mxu1 %v5899_v23  ;;  %5001 = vmatpush3.msra.mxu0 %v5837_v3 }
 0xaf3   :  { %4979 = vmatprep.subr.mxu1 %v5769_v1  ;;  %5002 = vmatprep.subr.mxu0 %v5769_v1 }
 0xaf4   :  { %4980 = vmatpush3.msra.mxu1 %v5904_v24  ;;  %4993 = vmatprep.mubr.msk.f32.mxu1 %vm5770_vm0, %v5769_v1 }
 0xaf5   :  { %4981 = vmatprep.subr.mxu1 %v5769_v1  ;;  %5003 = vmatpush3.msra.mxu0 %v5846_v4 }
 0xaf6   :  { %4982 = vmatpush3.msra.mxu1 %v5911_v25  ;;  %5004 = vmatprep.subr.mxu0 %v5769_v1 }
 0xaf7   :  { %4983 = vmatprep.subr.mxu1 %v5769_v1  ;;  %5005 = vmatpush3.msra.mxu0 %v5853_v5 }
 0xaf8   :  { %4984 = vmatpush3.msra.mxu1 %v5918_v26  ;;  %5006 = vmatprep.subr.mxu0 %v5769_v1 }
 0xaf9   :  { %4985 = vmatprep.subr.mxu1 %v5769_v1  ;;  %5007 = vmatpush3.msra.mxu0 %v5863_v7 }
 0xafa   :  { %4986 = vmatpush3.msra.mxu1 %v5925_v27  ;;  %5011 = vmatprep.subr.mxu0 %v5769_v1 }
 0xafb   :  { %4987 = vmatprep.subr.mxu1 %v5769_v1 }
 0xafc   :  { %4988 = vmatpush3.msra.mxu1 %v5932_v28 }
 0xafd   :  { %4989 = vmatprep.subr.mxu1 %v5769_v1 }
 0xafe   :  { %4990 = vmatpush3.msra.mxu1 %v5939_v30 }
 0xaff   :  { %4991 = vmatprep.subr.mxu1 %v5769_v1 }
 0xb00   :  { %4992 = vmatpush3.msra.mxu1 %v5949_v31 }
 0xb01   :  { %5030 = vmatprep.subr.mxu1 %v5769_v1 }
 0xbad   :  { %v850_v60 = vpop.f32.mrf.mxu0 }
 0xbae   :  { %v851_v61 = vadd.f32 %v850_v60, %v5997_v39 }
 0xbaf   :  { %v4961_v62 = vpop.f32.mrf.mxu0 }
 0xbb0   :  { %5553 = vtanh.f32 %v851_v61  ;;  %v4416_v12 = vmul.f32 -1.442695, %v851_v61 }
 0xbb1   :  { %v953_v63 = vpop.f32.mrf.mxu1 }
 0xbb2   :  { %v954_v6 = vadd.f32 %v953_v63, %v5888_v9 }
 0xbb3   :  { %v4976_v8 = vpop.f32.mrf.mxu1 }
 0xbb4   :  { %5555 = vtanh.f32 %v954_v6  ;;  %v4419_v13 = vmul.f32 -1.442695, %v954_v6 }
 0xbb5   :  { %5557 = vpow2.f32 %v4416_v12 }
 0xbb6   :  { %5559 = vpow2.f32 %v4419_v13 }
 0xbbd   :  { %v5554_v10 = vpop.eup %5553 }
 0xbbe   :  { %863 = vrot.lane.b32.xlu0 %v5554_v10, %s5771_s11 }
 0xbc1   :  { %v5556_v11 = vpop.eup %5555 }
 0xbc2   :  { %966 = vrot.lane.b32.xlu1 %v5556_v11, %s5771_s11  ;;  %v5558_v14 = vpop.eup %5557 }
 0xbc3   :  { %v857_v15 = vadd.f32 1.0, %v5558_v14  ;;  %v5560_v16 = vpop.eup %5559 }
 0xbc4   :  { %v960_v17 = vadd.f32 1.0, %v5560_v16 }
 0xbc5   :  { %5561 = vrcp.f32 %v857_v15 }
 0xbc6   :  { %5563 = vrcp.f32 %v960_v17 }
 0xbd2   :  { %v5562_v18 = vpop.eup %5561 }
 0xbd3   :  { %v5564_v21 = vpop.eup %5563  ;;  %v861_v32 = vmul.f32 %v5562_v18, %v6121_v44 }
 0xbd4   :  { %v964_v35 = vmul.f32 %v5564_v21, %v6125_v47 }
 0xc30   :  { %v864_v19 = vpop.permute.xlu0 %863 }
 0xc31   :  { %v866_v20 = vmul.f32 %v5562_v18, %v864_v19 }
 0xc33   :  { %868 = vrot.lane.b32.xlu0 %v866_v20, %s5772_s12 }
 0xc34   :  { %v967_v22 = vpop.permute.xlu1 %966 }
 0xc35   :  { %v969_v29 = vmul.f32 %v5564_v21, %v967_v22 }
 0xc37   :  { %971 = vrot.lane.b32.xlu1 %v969_v29, %s5772_s12  ;;  %v4427_v29 = vld [vmem:[%s7146_s1 + $0x30] sm:$0xff] }
 0xca5   :  { %v869_v33 = vpop.permute.xlu0 %868 }
 0xca6   :  { %v6179_v34 = vadd.f32 %v869_v33, %v861_v32  ;;  %v5641_v32 = vld [vmem:[%s7148_s3 + $0x28] sm:$0xff]  ;;  %v6260_v33 = vld [vmem:[%s7149_s4] sm:$0xff] }
 0xca8   :  { %5565 = vtanh.f32 %v6179_v34 }
 0xca9   :  { %v972_v36 = vpop.permute.xlu1 %971 }
 0xcaa   :  { %v6183_v37 = vadd.f32 %v972_v36, %v964_v35  ;;  %v5643_v36 = vld [vmem:[%s7148_s3 + $0x20] sm:$0xff] }
 0xcac   :  { %5567 = vtanh.f32 %v6183_v37 }
 0xcb5   :  { %v5566_v38 = vpop.eup %5565 }
 0xcb6   :  { %874 = vrot.lane.b32.xlu0 %v5566_v38, %s5771_s11  ;;  %v5647_v38 = vld [vmem:[%s7148_s3] sm:$0xff] }
 0xcb9   :  { %v5568_v40 = vpop.eup %5567 }
 0xcba   :  { %977 = vrot.lane.b32.xlu1 %v5568_v40, %s5771_s11 }
 0xd28   :  { %v875_v41 = vpop.permute.xlu0 %874 }
 0xd29   :  { %v877_v42 = vmul.f32 %v5562_v18, %v875_v41 }
 0xd2b   :  { %986 = vrot.lane.b32.xlu1 %v877_v42, %s5771_s11 }
 0xd2c   :  { %v978_v43 = vpop.permute.xlu1 %977 }
 0xd2d   :  { %v980_v44 = vmul.f32 %v5564_v21, %v978_v43 }
 0xd2f   :  { %982 = vrot.lane.b32.xlu0 %v980_v44, %s5772_s12 }
 0xd33   :  { %1089 = vrot.lane.b32.xlu0 %v980_v44, %s5773_s28 }
 0xd9d   :  { %v987_v45 = vpop.permute.xlu1 %986 }
 0xda1   :  { %v983_v46 = vpop.permute.xlu0 %982 }
 0xda2   :  { %v989_v47 = vsel %vm151_vm3, %v983_v46, %v987_v45 }
 0xda3   :  { %4994 = vmatmul.mubr.msk.f32.vlgmr.msra.gmra.mxu1 %vm153_vm4, %v989_v47 }
 0xda4   :  { %5031 = vmatpush3.msra.mxu1 %v5817_v0  ;;  %5042 = vmatprep.mubr.msk.f32.mxu1 %vm5770_vm0, %v5769_v1 }
 0xda5   :  { %v1090_v49 = vpop.permute.xlu0 %1089  ;;  %5032 = vmatprep.subr.mxu1 %v5769_v1 }
 0xda6   :  { %v1092_v50 = vsel %vm47_vm1, %v4422_v48, %v1090_v49  ;;  %5033 = vmatpush3.msra.mxu1 %v5827_v2 }
 0xda7   :  { %5009 = vmatmul.mubr.msk.f32.vlgmr.msra.gmra.mxu0 %vm49_vm2, %v1092_v50  ;;  %5034 = vmatprep.subr.mxu1 %v5769_v1 }
 0xda8   :  { %5012 = vmatpush3.msra.mxu0 %v5899_v23  ;;  %5035 = vmatpush3.msra.mxu1 %v5837_v3 }
 0xda9   :  { %5013 = vmatprep.subr.mxu0 %v5769_v1  ;;  %5036 = vmatprep.subr.mxu1 %v5769_v1 }
 0xdaa   :  { %5014 = vmatpush3.msra.mxu0 %v5904_v24  ;;  %5027 = vmatprep.mubr.msk.f32.mxu0 %vm5770_vm0, %v5769_v1 }
 0xdab   :  { %5015 = vmatprep.subr.mxu0 %v5769_v1  ;;  %5037 = vmatpush3.msra.mxu1 %v5846_v4 }
 0xdac   :  { %5016 = vmatpush3.msra.mxu0 %v5911_v25  ;;  %5038 = vmatprep.subr.mxu1 %v5769_v1 }
 0xdad   :  { %5017 = vmatprep.subr.mxu0 %v5769_v1  ;;  %5039 = vmatpush3.msra.mxu1 %v5853_v5 }
 0xdae   :  { %5018 = vmatpush3.msra.mxu0 %v5918_v26  ;;  %5040 = vmatprep.subr.mxu1 %v5769_v1 }
 0xdaf   :  { %5019 = vmatprep.subr.mxu0 %v5769_v1  ;;  %5041 = vmatpush3.msra.mxu1 %v5863_v7 }
 0xdb0   :  { %5020 = vmatpush3.msra.mxu0 %v5925_v27  ;;  %5045 = vmatprep.subr.mxu1 %v5769_v1 }
 0xdb1   :  { %5021 = vmatprep.subr.mxu0 %v5769_v1 }
 0xdb2   :  { %5022 = vmatpush3.msra.mxu0 %v5932_v28 }
 0xdb3   :  { %5023 = vmatprep.subr.mxu0 %v5769_v1 }
 0xdb4   :  { %5024 = vmatpush3.msra.mxu0 %v5939_v30 }
 0xdb5   :  { %5025 = vmatprep.subr.mxu0 %v5769_v1 }
 0xdb6   :  { %5026 = vmatpush3.msra.mxu0 %v5949_v31 }
 0xdb7   :  { %5064 = vmatprep.subr.mxu0 %v5769_v1 }
 0xe63   :  { %v1059_v0 = vpop.f32.mrf.mxu1 }
 0xe64   :  { %v1060_v2 = vadd.f32 %v1059_v0, %v5997_v39 }
 0xe65   :  { %v4995_v3 = vpop.f32.mrf.mxu1 }
 0xe66   :  { %5569 = vtanh.f32 %v1060_v2  ;;  %v4421_v53 = vmul.f32 -1.442695, %v1060_v2 }
 0xe67   :  { %v1162_v4 = vpop.f32.mrf.mxu0 }
 0xe68   :  { %v1163_v5 = vadd.f32 %v1162_v4, %v5888_v9 }
 0xe69   :  { %v5010_v7 = vpop.f32.mrf.mxu0 }
 0xe6a   :  { %5571 = vtanh.f32 %v1163_v5  ;;  %v4424_v54 = vmul.f32 -1.442695, %v1163_v5 }
 0xe6b   :  { %5573 = vpow2.f32 %v4421_v53 }
 0xe6c   :  { %5575 = vpow2.f32 %v4424_v54 }
 0xe73   :  { %v5570_v51 = vpop.eup %5569 }
 0xe74   :  { %1072 = vrot.lane.b32.xlu1 %v5570_v51, %s5771_s11 }
 0xe77   :  { %v5572_v52 = vpop.eup %5571 }
 0xe78   :  { %1175 = vrot.lane.b32.xlu0 %v5572_v52, %s5771_s11  ;;  %v5574_v55 = vpop.eup %5573 }
 0xe79   :  { %v1066_v56 = vadd.f32 1.0, %v5574_v55  ;;  %v5576_v57 = vpop.eup %5575 }
 0xe7a   :  { %v1169_v58 = vadd.f32 1.0, %v5576_v57 }
 0xe7b   :  { %5577 = vrcp.f32 %v1066_v56 }
 0xe7c   :  { %5579 = vrcp.f32 %v1169_v58 }
 0xe88   :  { %v5578_v59 = vpop.eup %5577 }
 0xe89   :  { %v5580_v61 = vpop.eup %5579  ;;  %v1070_v6 = vmul.f32 %v5578_v59, %v6179_v34 }
 0xe8a   :  { %v1173_v11 = vmul.f32 %v5580_v61, %v6183_v37  ;;  %v5644_v37 = vld [vmem:[%s7148_s3 + $0x18] sm:$0xff] }
 0xee6   :  { %v1073_v9 = vpop.permute.xlu1 %1072 }
 0xee7   :  { %v1075_v60 = vmul.f32 %v5578_v59, %v1073_v9 }
 0xee9   :  { %1077 = vrot.lane.b32.xlu1 %v1075_v60, %s5772_s12 }
 0xeea   :  { %v1176_v62 = vpop.permute.xlu0 %1175 }
 0xeeb   :  { %v1178_v63 = vmul.f32 %v5580_v61, %v1176_v62  ;;  %v4432_v62 = vld [vmem:[%s7146_s1 + $0x38] sm:$0xff] }
 0xeed   :  { %1180 = vrot.lane.b32.xlu0 %v1178_v63, %s5772_s12 }
 0xf5b   :  { %v1078_v8 = vpop.permute.xlu1 %1077 }
 0xf5c   :  { %v6237_v10 = vadd.f32 %v1078_v8, %v1070_v6  ;;  %v5649_v8 = vld [vmem:[%s7148_s3 + $0x68] sm:$0xff] }
 0xf5e   :  { %5581 = vtanh.f32 %v6237_v10 }
 0xf5f   :  { %v1181_v12 = vpop.permute.xlu0 %1180 }
 0xf60   :  { %v6241_v13 = vadd.f32 %v1181_v12, %v1173_v11  ;;  %v5651_v11 = vld [vmem:[%s7148_s3 + $0x58] sm:$0xff]  ;;  %v5652_v12 = vld [vmem:[%s7148_s3 + $0x50] sm:$0xff] }
 0xf62   :  { %5583 = vtanh.f32 %v6241_v13 }
 0xf6b   :  { %v5582_v14 = vpop.eup %5581 }
 0xf6c   :  { %1083 = vrot.lane.b32.xlu1 %v5582_v14, %s5771_s11  ;;  %v5654_v14 = vld [vmem:[%s7148_s3 + $0x40] sm:$0xff] }
 0xf6f   :  { %v5584_v15 = vpop.eup %5583 }
 0xf70   :  { %1186 = vrot.lane.b32.xlu0 %v5584_v15, %s5771_s11  ;;  %v5655_v15 = vld [vmem:[%s7148_s3 + $0x38] sm:$0xff] }
 0xfde   :  { %v1084_v16 = vpop.permute.xlu1 %1083 }
 0xfdf   :  { %v1086_v17 = vmul.f32 %v5578_v59, %v1084_v16  ;;  %v5656_v16 = vld [vmem:[%s7148_s3 + $0x30] sm:$0xff] }
 0xfe1   :  { %1195 = vrot.lane.b32.xlu0 %v1086_v17, %s5771_s11 }
 0xfe2   :  { %v1187_v18 = vpop.permute.xlu0 %1186 }
 0xfe3   :  { %v1189_v19 = vmul.f32 %v5580_v61, %v1187_v18  ;;  %v6375_v18 = vld [vmem:[%s7148_s3 + $0x128] sm:$0xff] }
 0xfe5   :  { %1191 = vrot.lane.b32.xlu1 %v1189_v19, %s5772_s12 }
 0xfe9   :  { %1298 = vrot.lane.b32.xlu1 %v1189_v19, %s5773_s28 }
0x1053   :  { %v1196_v20 = vpop.permute.xlu0 %1195 }
0x1057   :  { %v1192_v21 = vpop.permute.xlu1 %1191 }
0x1058   :  { %v1198_v22 = vsel %vm151_vm3, %v1192_v21, %v1196_v20 }
0x1059   :  { %5028 = vmatmul.mubr.msk.f32.vlgmr.msra.gmra.mxu0 %vm153_vm4, %v1198_v22 }
0x105a   :  { %5065 = vmatpush3.msra.mxu0 %v5641_v32  ;;  %5076 = vmatprep.mubr.msk.f32.mxu0 %vm5770_vm0, %v6260_v33 }
0x105b   :  { %v1299_v34 = vpop.permute.xlu1 %1298  ;;  %5066 = vmatprep.subr.mxu0 %v6260_v33 }
0x105c   :  { %v1301_v35 = vsel %vm47_vm1, %v4427_v29, %v1299_v34  ;;  %5067 = vmatpush3.msra.mxu0 %v5643_v36 }
0x105d   :  { %5043 = vmatmul.mubr.msk.f32.vlgmr.msra.gmra.mxu1 %vm49_vm2, %v1301_v35  ;;  %5068 = vmatprep.subr.mxu0 %v6260_v33 }
0x105e   :  { %5046 = vmatpush3.msra.mxu1 %v5899_v23  ;;  %5069 = vmatpush3.msra.mxu0 %v5644_v37  ;;  %v5645_v23 = vld [vmem:[%s7148_s3 + $0x10] sm:$0xff] }
0x105f   :  { %5047 = vmatprep.subr.mxu1 %v6260_v33  ;;  %5070 = vmatprep.subr.mxu0 %v6260_v33 }
0x1060   :  { %5048 = vmatpush3.msra.mxu1 %v5904_v24  ;;  %5061 = vmatprep.mubr.msk.f32.mxu1 %vm5770_vm0, %v6260_v33  ;;  %v5646_v24 = vld [vmem:[%s7148_s3 + $0x8] sm:$0xff] }
0x1061   :  { %5049 = vmatprep.subr.mxu1 %v6260_v33  ;;  %5071 = vmatpush3.msra.mxu0 %v5645_v23 }
0x1062   :  { %5050 = vmatpush3.msra.mxu1 %v5911_v25  ;;  %5072 = vmatprep.subr.mxu0 %v6260_v33 }
0x1063   :  { %5051 = vmatprep.subr.mxu1 %v6260_v33  ;;  %5073 = vmatpush3.msra.mxu0 %v5646_v24 }
0x1064   :  { %5052 = vmatpush3.msra.mxu1 %v5918_v26  ;;  %5074 = vmatprep.subr.mxu0 %v6260_v33 }
0x1065   :  { %5053 = vmatprep.subr.mxu1 %v6260_v33  ;;  %5075 = vmatpush3.msra.mxu0 %v5647_v38 }
0x1066   :  { %5054 = vmatpush3.msra.mxu1 %v5925_v27  ;;  %5079 = vmatprep.subr.mxu0 %v6260_v33 }
0x1067   :  { %5055 = vmatprep.subr.mxu1 %v6260_v33 }
0x1068   :  { %5056 = vmatpush3.msra.mxu1 %v5932_v28  ;;  %v6309_v28 = vld [vmem:[%s7148_s3 + $0x120] sm:$0xff] }
0x1069   :  { %5057 = vmatprep.subr.mxu1 %v6260_v33 }
0x106a   :  { %5058 = vmatpush3.msra.mxu1 %v5939_v30 }
0x106b   :  { %5059 = vmatprep.subr.mxu1 %v6260_v33 }
0x106c   :  { %5060 = vmatpush3.msra.mxu1 %v5949_v31 }
0x106d   :  { %5098 = vmatprep.subr.mxu1 %v6260_v33 }
0x1119   :  { %v1268_v25 = vpop.f32.mrf.mxu0 }
0x111a   :  { %v1269_v26 = vadd.f32 %v1268_v25, %v5997_v39 }
0x111b   :  { %v5029_v27 = vpop.f32.mrf.mxu0 }
0x111c   :  { %5585 = vtanh.f32 %v1269_v26  ;;  %v4426_v43 = vmul.f32 -1.442695, %v1269_v26 }
0x111d   :  { %v1371_v40 = vpop.f32.mrf.mxu1 }
0x111e   :  { %v1372_v41 = vadd.f32 %v6309_v28, %v1371_v40 }
0x111f   :  { %v5044_v30 = vpop.f32.mrf.mxu1 }
0x1120   :  { %5587 = vtanh.f32 %v1372_v41  ;;  %v4429_v39 = vmul.f32 -1.442695, %v1372_v41 }
0x1121   :  { %5589 = vpow2.f32 %v4426_v43 }
0x1122   :  { %5591 = vpow2.f32 %v4429_v39 }
0x1129   :  { %v5586_v42 = vpop.eup %5585 }
0x112a   :  { %1281 = vrot.lane.b32.xlu0 %v5586_v42, %s5771_s11 }
0x112d   :  { %v5588_v31 = vpop.eup %5587 }
0x112e   :  { %1384 = vrot.lane.b32.xlu1 %v5588_v31, %s5771_s11  ;;  %v5590_v44 = vpop.eup %5589 }
0x112f   :  { %v1275_v45 = vadd.f32 1.0, %v5590_v44  ;;  %v5592_v46 = vpop.eup %5591 }
0x1130   :  { %v1378_v47 = vadd.f32 1.0, %v5592_v46  ;;  %v6399_v46 = vld [vmem:[%s7148_s3 + $0x108] sm:$0xff] }
0x1131   :  { %5593 = vrcp.f32 %v1275_v45  ;;  %v6394_v45 = vld [vmem:[%s7148_s3 + $0x100] sm:$0xff] }
0x1132   :  { %5595 = vrcp.f32 %v1378_v47  ;;  %v6404_v47 = vld [vmem:[%s7148_s3 + $0x110] sm:$0xff] }
0x113e   :  { %v5594_v48 = vpop.eup %5593 }
0x113f   :  { %v5596_v0 = vpop.eup %5595  ;;  %v1279_v4 = vmul.f32 %v5594_v48, %v6237_v10  ;;  %v5650_v10 = vld [vmem:[%s7148_s3 + $0x60] sm:$0xff] }
0x1140   :  { %v1382_v51 = vmul.f32 %v5596_v0, %v6241_v13  ;;  %v5653_v13 = vld [vmem:[%s7148_s3 + $0x48] sm:$0xff] }
0x119c   :  { %v1282_v49 = vpop.permute.xlu0 %1281 }
0x119d   :  { %v1284_v50 = vmul.f32 %v5594_v48, %v1282_v49  ;;  %v6409_v49 = vld [vmem:[%s7148_s3 + $0x118] sm:$0xff] }
0x119f   :  { %1286 = vrot.lane.b32.xlu0 %v1284_v50, %s5772_s12  ;;  %v6414_v50 = vld [vmem:[%s7148_s3 + $0x98] sm:$0xff] }
0x11a0   :  { %v1385_v2 = vpop.permute.xlu1 %1384 }
0x11a1   :  { %v1387_v3 = vmul.f32 %v5596_v0, %v1385_v2 }
0x11a3   :  { %1389 = vrot.lane.b32.xlu1 %v1387_v3, %s5772_s12 }
0x1211   :  { %v1287_v5 = vpop.permute.xlu0 %1286 }
0x1212   :  { %v6317_v7 = vadd.f32 %v1287_v5, %v1279_v4  ;;  %v6425_v4 = vld [vmem:[%s7148_s3 + $0x90] sm:$0xff]  ;;  %v6430_v5 = vld [vmem:[%s7148_s3 + $0x88] sm:$0xff] }
0x1214   :  { %5597 = vtanh.f32 %v6317_v7 }
0x1215   :  { %v1390_v52 = vpop.permute.xlu1 %1389 }
0x1216   :  { %v6321_v53 = vadd.f32 %v1390_v52, %v1382_v51  ;;  %v6443_v51 = vld [vmem:[%s7148_s3 + $0x80] sm:$0xff]  ;;  %v6450_v52 = vld [vmem:[%s7148_s3 + $0x78] sm:$0xff] }
0x1218   :  { %5599 = vtanh.f32 %v6321_v53 }
0x1221   :  { %v5598_v54 = vpop.eup %5597 }
0x1222   :  { %1292 = vrot.lane.b32.xlu0 %v5598_v54, %s5771_s11 }
0x1225   :  { %v5600_v55 = vpop.eup %5599 }
0x1226   :  { %1395 = vrot.lane.b32.xlu1 %v5600_v55, %s5771_s11 }
0x1294   :  { %v1293_v56 = vpop.permute.xlu0 %1292 }
0x1295   :  { %v1295_v57 = vmul.f32 %v5594_v48, %v1293_v56  ;;  %v1740_v48 = vlaneseq }
0x1297   :  { %1404 = vrot.lane.b32.xlu1 %v1295_v57, %s5771_s11  ;;  %v6416_v2 = vand.u32 127, %v1740_v48 }
0x1298   :  { %v1396_v58 = vpop.permute.xlu1 %1395 }
0x1299   :  { %v1398_v59 = vmul.f32 %v5596_v0, %v1396_v58 }
0x129b   :  { %1400 = vrot.lane.b32.xlu0 %v1398_v59, %s5772_s12 }
0x129f   :  { %1507 = vrot.lane.b32.xlu0 %v1398_v59, %s5773_s28 }
0x1309   :  { %v1405_v9 = vpop.permute.xlu1 %1404 }
0x130d   :  { %v1401_v60 = vpop.permute.xlu0 %1400 }
0x130e   :  { %v1407_v61 = vsel %vm151_vm3, %v1401_v60, %v1405_v9 }
0x130f   :  { %5062 = vmatmul.mubr.msk.f32.vlgmr.msra.gmra.mxu1 %vm153_vm4, %v1407_v61 }
0x1310   :  { %5110 = vmatprep.mubr.msk.f32.mxu1 %vm5770_vm0, %v6260_v33  ;;  %5099 = vmatpush3.msra.mxu1 %v6414_v50 }
0x1311   :  { %v1508_v63 = vpop.permute.xlu0 %1507  ;;  %5100 = vmatprep.subr.mxu1 %v6260_v33 }
0x1312   :  { %v1510_v6 = vsel %vm47_vm1, %v4432_v62, %v1508_v63  ;;  %5101 = vmatpush3.msra.mxu1 %v6425_v4 }
0x1313   :  { %5077 = vmatmul.mubr.msk.f32.vlgmr.msra.gmra.mxu0 %vm49_vm2, %v1510_v6  ;;  %5102 = vmatprep.subr.mxu1 %v6260_v33 }
0x1314   :  { %5080 = vmatpush3.msra.mxu0 %v5649_v8  ;;  %5095 = vmatprep.mubr.msk.f32.mxu0 %vm5770_vm0, %v6260_v33 }
0x1315   :  { %5081 = vmatprep.subr.mxu0 %v6260_v33  ;;  %5103 = vmatpush3.msra.mxu1 %v6430_v5 }
0x1316   :  { %5082 = vmatpush3.msra.mxu0 %v5650_v10  ;;  %5104 = vmatprep.subr.mxu1 %v6260_v33  ;;  %v6476_v10 = vld [vmem:[%s7148_s3 + $0x130] sm:$0xff] }
0x1317   :  { %5083 = vmatprep.subr.mxu0 %v6260_v33  ;;  %5105 = vmatpush3.msra.mxu1 %v6443_v51 }
0x1318   :  { %5084 = vmatpush3.msra.mxu0 %v5651_v11  ;;  %5106 = vmatprep.subr.mxu1 %v6260_v33 }
0x1319   :  { %5085 = vmatprep.subr.mxu0 %v6260_v33  ;;  %5107 = vmatpush3.msra.mxu1 %v6450_v52 }
0x131a   :  { %5086 = vmatpush3.msra.mxu0 %v5652_v12  ;;  %5108 = vmatprep.subr.mxu1 %v6260_v33 }
0x131b   :  { %5087 = vmatprep.subr.mxu0 %v6260_v33 }
0x131c   :  { %5088 = vmatpush3.msra.mxu0 %v5653_v13 }
0x131d   :  { %5089 = vmatprep.subr.mxu0 %v6260_v33 }
0x131e   :  { %5090 = vmatpush3.msra.mxu0 %v5654_v14 }
0x131f   :  { %5091 = vmatprep.subr.mxu0 %v6260_v33 }
0x1320   :  { %5092 = vmatpush3.msra.mxu0 %v5655_v15 }
0x1321   :  { %5093 = vmatprep.subr.mxu0 %v6260_v33 }
0x1322   :  { %5094 = vmatpush3.msra.mxu0 %v5656_v16 }
0x1323   :  { %5132 = vmatprep.subr.mxu0 %v6260_v33 }
0x13cf   :  { %v1477_v17 = vpop.f32.mrf.mxu1 }
0x13d0   :  { %v1478_v19 = vadd.f32 %v6375_v18, %v1477_v17 }
0x13d1   :  { %v5063_v20 = vpop.f32.mrf.mxu1 }
0x13d2   :  { %5601 = vtanh.f32 %v1478_v19  ;;  %v4431_v35 = vmul.f32 -1.442695, %v1478_v19 }
0x13d3   :  { %v1580_v21 = vpop.f32.mrf.mxu0 }
0x13d4   :  { %v1581_v22 = vadd.f32 %v6309_v28, %v1580_v21 }
0x13d5   :  { %v5078_v29 = vpop.f32.mrf.mxu0 }
0x13d6   :  { %5603 = vtanh.f32 %v1581_v22  ;;  %v4434_v36 = vmul.f32 -1.442695, %v1581_v22 }
0x13d7   :  { %5605 = vpow2.f32 %v4431_v35 }
0x13d8   :  { %5607 = vpow2.f32 %v4434_v36 }
0x13df   :  { %v5602_v32 = vpop.eup %5601 }
0x13e0   :  { %1490 = vrot.lane.b32.xlu1 %v5602_v32, %s5771_s11 }
0x13e3   :  { %v5604_v34 = vpop.eup %5603 }
0x13e4   :  { %1593 = vrot.lane.b32.xlu0 %v5604_v34, %s5771_s11  ;;  %v5606_v37 = vpop.eup %5605 }
0x13e5   :  { %v1484_v23 = vadd.f32 1.0, %v5606_v37  ;;  %v5608_v24 = vpop.eup %5607 }
0x13e6   :  { %v1587_v38 = vadd.f32 1.0, %v5608_v24 }
0x13e7   :  { %5609 = vrcp.f32 %v1484_v23 }
0x13e8   :  { %5611 = vrcp.f32 %v1587_v38 }
0x13f4   :  { %v5610_v25 = vpop.eup %5609 }
0x13f5   :  { %v5612_v40 = vpop.eup %5611  ;;  %v1488_v30 = vmul.f32 %v5610_v25, %v6317_v7  ;;  %v1742_v7 = vld [vmem:[%s7147_s2] sm:$0xff] }
0x13f6   :  { %v1591_v43 = vmul.f32 %v5612_v40, %v6321_v53  ;;  %1743 = vst.msk [vmem:[#allocation2] sm:$0xff] %vm47_vm1, %v1742_v7  ;;  %v6457_v53 = vld [vmem:[%s7148_s3 + $0x70] sm:$0xff] }
0x13f7   :  { %5109 = vmatpush3.msra.mxu1 %v6457_v53 }
0x13f8   :  { %5113 = vmatprep.subr.mxu1 %v6260_v33 }
0x13fd   :  { %v1744_v60 = vld [vmem:[#allocation2] sm:$0xff] }
0x1452   :  { %v1491_v26 = vpop.permute.xlu1 %1490 }
0x1453   :  { %v1493_v27 = vmul.f32 %v5610_v25, %v1491_v26 }
0x1455   :  { %1495 = vrot.lane.b32.xlu1 %v1493_v27, %s5772_s12  ;;  %v6491_v27 = vld [vmem:[%s7148_s3 + $0xd8] sm:$0xff] }
0x1456   :  { %v1594_v28 = vpop.permute.xlu0 %1593 }
0x1457   :  { %v1596_v41 = vmul.f32 %v5612_v40, %v1594_v28  ;;  %v6503_v28 = vld [vmem:[%s7148_s3 + $0xc8] sm:$0xff] }
0x1459   :  { %1598 = vrot.lane.b32.xlu0 %v1596_v41, %s5772_s12  ;;  %v6510_v41 = vld [vmem:[%s7148_s3 + $0xc0] sm:$0xff] }
0x14c7   :  { %v1496_v42 = vpop.permute.xlu1 %1495 }
0x14c8   :  { %v6384_v31 = vadd.f32 %v1496_v42, %v1488_v30  ;;  %v6517_v42 = vld [vmem:[%s7148_s3 + $0xb8] sm:$0xff] }
0x14ca   :  { %5613 = vtanh.f32 %v6384_v31 }
0x14cb   :  { %v1599_v39 = vpop.permute.xlu0 %1598 }
0x14cc   :  { %v6388_v44 = vadd.f32 %v1599_v39, %v1591_v43  ;;  %v6528_v43 = vld [vmem:[%s7148_s3 + $0xb0] sm:$0xff]  ;;  %v6533_v39 = vld [vmem:[%s7148_s3 + $0xa8] sm:$0xff] }
0x14ce   :  { %5615 = vtanh.f32 %v6388_v44 }
0x14d7   :  { %v5614_v0 = vpop.eup %5613 }
0x14d8   :  { %1501 = vrot.lane.b32.xlu1 %v5614_v0, %s5771_s11 }
0x14db   :  { %v5616_v3 = vpop.eup %5615 }
0x14dc   :  { %1604 = vrot.lane.b32.xlu0 %v5616_v3, %s5771_s11 }
0x154a   :  { %v1502_v54 = vpop.permute.xlu1 %1501 }
0x154b   :  { %v1504_v55 = vmul.f32 %v5610_v25, %v1502_v54 }
0x154d   :  { %1613 = vrot.lane.b32.xlu0 %v1504_v55, %s5771_s11 }
0x154e   :  { %v1605_v56 = vpop.permute.xlu0 %1604 }
0x154f   :  { %v1607_v57 = vmul.f32 %v5612_v40, %v1605_v56  ;;  %v6496_v40 = vld [vmem:[%s7148_s3 + $0xd0] sm:$0xff] }
0x1551   :  { %1609 = vrot.lane.b32.xlu1 %v1607_v57, %s5772_s12 }
0x1555   :  { %1745 = vrot.lane.b32.xlu1 %v1607_v57, %s5773_s28  ;;  %v6555_v57 = vld [vmem:[%s7148_s3 + $0x138] sm:$0xff] }
0x15bf   :  { %v1614_v58 = vpop.permute.xlu0 %1613 }
0x15c3   :  { %v1610_v59 = vpop.permute.xlu1 %1609 }
0x15c4   :  { %v1616_v9 = vsel %vm151_vm3, %v1610_v59, %v1614_v58 }
0x15c5   :  { %5096 = vmatmul.mubr.msk.f32.vlgmr.msra.gmra.mxu0 %vm153_vm4, %v1616_v9 }
0x15c6   :  { %5140 = vmatprep.mubr.msk.f32.mxu0 %vm5770_vm0, %v6260_v33 }
0x15c7   :  { %v1746_v61 = vpop.permute.xlu1 %1745 }
0x15c8   :  { %v1748_v62 = vsel %vm47_vm1, %v1744_v60, %v1746_v61 }
0x15c9   :  { %5111 = vmatmul.mubr.msk.f32.vlgmr.msra.gmra.mxu1 %vm49_vm2, %v1748_v62 }
0x15ca   :  { %5129 = vmatprep.mubr.msk.f32.mxu1 %vm5770_vm0, %v6260_v33  ;;  %5114 = vmatpush3.msra.mxu1 %v6491_v27 }
0x15cb   :  { %5115 = vmatprep.subr.mxu1 %v6260_v33 }
0x15cc   :  { %5116 = vmatpush3.msra.mxu1 %v6496_v40 }
0x15cd   :  { %5117 = vmatprep.subr.mxu1 %v6260_v33 }
0x15ce   :  { %5118 = vmatpush3.msra.mxu1 %v6503_v28 }
0x15cf   :  { %5119 = vmatprep.subr.mxu1 %v6260_v33 }
0x15d0   :  { %5120 = vmatpush3.msra.mxu1 %v6510_v41 }
0x15d1   :  { %5121 = vmatprep.subr.mxu1 %v6260_v33 }
0x15d2   :  { %5122 = vmatpush3.msra.mxu1 %v6517_v42 }
0x15d3   :  { %5123 = vmatprep.subr.mxu1 %v6260_v33 }
0x15d4   :  { %5124 = vmatpush3.msra.mxu1 %v6528_v43 }
0x15d5   :  { %5125 = vmatprep.subr.mxu1 %v6260_v33 }
0x15d6   :  { %5126 = vmatpush3.msra.mxu1 %v6533_v39 }
0x15d7   :  { %5127 = vmatprep.subr.mxu1 %v6260_v33 }
0x1685   :  { %v1686_v63 = vpop.f32.mrf.mxu0 }
0x1686   :  { %v1687_v6 = vadd.f32 %v6375_v18, %v1686_v63 }
0x1687   :  { %v5097_v8 = vpop.f32.mrf.mxu0 }
0x1688   :  { %5617 = vtanh.f32 %v1687_v6  ;;  %v4436_v16 = vmul.f32 -1.442695, %v1687_v6 }
0x1689   :  { %v1818_v11 = vpop.f32.mrf.mxu1 }
0x168a   :  { %v1819_v12 = vadd.f32 %v1818_v11, %v6476_v10 }
0x168b   :  { %v5112_v13 = vpop.f32.mrf.mxu1 }
0x168c   :  { %5619 = vtanh.f32 %v1819_v12  ;;  %v4438_v17 = vmul.f32 -1.442695, %v1819_v12 }
0x168d   :  { %5621 = vpow2.f32 %v4436_v16  ;;  %v6571_v16 = vld [vmem:[%s7148_s3 + $0xf0] sm:$0xff] }
0x168e   :  { %5623 = vpow2.f32 %v4438_v17  ;;  %v6578_v17 = vld [vmem:[%s7148_s3 + $0xe8] sm:$0xff] }
0x1695   :  { %v5618_v14 = vpop.eup %5617 }
0x1696   :  { %1699 = vrot.lane.b32.xlu0 %v5618_v14, %s5771_s11 }
0x1699   :  { %v5620_v15 = vpop.eup %5619 }
0x169a   :  { %1831 = vrot.lane.b32.xlu1 %v5620_v15, %s5771_s11  ;;  %v5622_v18 = vpop.eup %5621  ;;  %v6566_v15 = vld [vmem:[%s7148_s3 + $0xf8] sm:$0xff] }
0x169b   :  { %v1693_v19 = vadd.f32 1.0, %v5622_v18  ;;  %v5624_v20 = vpop.eup %5623  ;;  %5133 = vmatpush3.msra.mxu0 %v6566_v15  ;;  %v6585_v18 = vld [vmem:[%s7148_s3 + $0xe0] sm:$0xff] }
0x169c   :  { %v1825_v21 = vadd.f32 1.0, %v5624_v20  ;;  %5134 = vmatprep.subr.mxu0 %v6260_v33 }
0x169d   :  { %5625 = vrcp.f32 %v1693_v19  ;;  %5135 = vmatpush3.msra.mxu0 %v6571_v16 }
0x169e   :  { %5627 = vrcp.f32 %v1825_v21  ;;  %5136 = vmatprep.subr.mxu0 %v6260_v33 }
0x169f   :  { %5137 = vmatpush3.msra.mxu0 %v6578_v17 }
0x16a0   :  { %5138 = vmatprep.subr.mxu0 %v6260_v33 }
0x16a1   :  { %5139 = vmatpush3.msra.mxu0 %v6585_v18 }
0x16aa   :  { %v5626_v22 = vpop.eup %5625 }
0x16ab   :  { %v5628_v34 = vpop.eup %5627  ;;  %v1697_v37 = vmul.f32 %v5626_v22, %v6384_v31 }
0x16ac   :  { %v1829_v38 = vmul.f32 %v5628_v34, %v6388_v44  ;;  %v6542_v44 = vld [vmem:[%s7148_s3 + $0xa0] sm:$0xff] }
0x16ad   :  { %5128 = vmatpush3.msra.mxu1 %v6542_v44 }
0x1708   :  { %v1700_v29 = vpop.permute.xlu0 %1699 }
0x1709   :  { %v1702_v32 = vmul.f32 %v5626_v22, %v1700_v29  ;;  %v6599_v29 = vld [vmem:[%s7148_s3 + $0x140] sm:$0xff] }
0x170b   :  { %1704 = vrot.lane.b32.xlu0 %v1702_v32, %s5772_s12 }
0x170c   :  { %v1832_v35 = vpop.permute.xlu1 %1831 }
0x170d   :  { %v1834_v36 = vmul.f32 %v5628_v34, %v1832_v35 }
0x170f   :  { %1836 = vrot.lane.b32.xlu1 %v1834_v36, %s5772_s12 }
0x177d   :  { %v1705_v23 = vpop.permute.xlu0 %1704 }
0x177e   :  { %v1707_v24 = vadd.f32 %v1705_v23, %v1697_v37 }
0x1780   :  { %5629 = vtanh.f32 %v1707_v24 }
0x1781   :  { %v1837_v25 = vpop.permute.xlu1 %1836 }
0x1782   :  { %v6485_v26 = vadd.f32 %v1837_v25, %v1829_v38 }
0x1784   :  { %5631 = vtanh.f32 %v6485_v26 }
0x178d   :  { %v5630_v30 = vpop.eup %5629 }
0x178e   :  { %1710 = vrot.lane.b32.xlu0 %v5630_v30, %s5771_s11 }
0x1791   :  { %v5632_v31 = vpop.eup %5631 }
0x1792   :  { %1842 = vrot.lane.b32.xlu1 %v5632_v31, %s5771_s11 }
0x1800   :  { %v1711_v48 = vpop.permute.xlu0 %1710 }
0x1801   :  { %v1713_v0 = vmul.f32 %v5626_v22, %v1711_v48 }
0x1803   :  { %1851 = vrot.lane.b32.xlu1 %v1713_v0, %s5771_s11 }
0x1804   :  { %v1843_v3 = vpop.permute.xlu1 %1842 }
0x1805   :  { %v6546_v7 = vmul.f32 %v5628_v34, %v1843_v3 }
0x1807   :  { %1847 = vrot.lane.b32.xlu0 %v6546_v7, %s5772_s12 }
0x1875   :  { %v1852_v54 = vpop.permute.xlu1 %1851 }
0x1879   :  { %v1848_v55 = vpop.permute.xlu0 %1847 }
0x187a   :  { %v1854_v56 = vsel %vm151_vm3, %v1848_v55, %v1852_v54 }
0x187b   :  { %5130 = vmatmul.mubr.msk.f32.vlgmr.msra.gmra.mxu1 %vm153_vm4, %v1854_v56 }
0x193b   :  { %v1924_v58 = vpop.f32.mrf.mxu1 }
0x193c   :  { %v1925_v59 = vadd.f32 %v1924_v58, %v6555_v57 }
0x193d   :  { %v5131_v9 = vpop.f32.mrf.mxu1 }
0x193e   :  { %5633 = vtanh.f32 %v1925_v59  ;;  %v4440_v61 = vmul.f32 -1.442695, %v1925_v59 }
0x1940   :  { %5635 = vpow2.f32 %v4440_v61 }
0x194b   :  { %v5634_v60 = vpop.eup %5633 }
0x194c   :  { %1937 = vrot.lane.b32.xlu0 %v5634_v60, %s5771_s11 }
0x194d   :  { %v5636_v62 = vpop.eup %5635 }
0x194e   :  { %v1931_v63 = vadd.f32 1.0, %v5636_v62 }
0x1950   :  { %5637 = vrcp.f32 %v1931_v63 }
0x195d   :  { %v5638_v6 = vpop.eup %5637 }
0x195e   :  { %v1935_v12 = vmul.f32 %v5638_v6, %v1707_v24 }
0x19be   :  { %v1938_v8 = vpop.permute.xlu0 %1937 }
0x19bf   :  { %v1940_v11 = vmul.f32 %v5638_v6, %v1938_v8 }
0x19c1   :  { %1942 = vrot.lane.b32.xlu1 %v1940_v11, %s5772_s12 }
0x1a33   :  { %v1943_v13 = vpop.permute.xlu1 %1942 }
0x1a34   :  { %v6560_v14 = vadd.f32 %v1943_v13, %v1935_v12 }
0x1a36   :  { %5639 = vtanh.f32 %v6560_v14 }
0x1a43   :  { %v5640_v19 = vpop.eup %5639 }
0x1a44   :  { %1948 = vrot.lane.b32.xlu0 %v5640_v19, %s5771_s11 }
0x1ab6   :  { %v1949_v20 = vpop.permute.xlu0 %1948 }
0x1ab7   :  { %v6591_v21 = vmul.f32 %v5638_v6, %v1949_v20 }
0x1ab9   :  { %1953 = vrot.lane.b32.xlu1 %v6591_v21, %s5772_s12 }
0x1b2b   :  { %v1954_v22 = vpop.permute.xlu1 %1953 }
0x1b2c   :  { %5141 = vmatmul.mubr.msk.f32.vlgmr.msra.gmra.mxu0 %vm151_vm3, %v1954_v22 }
0x1beb   :  { %2033 = sbr.rel (%p4444_p5) target bundleno = 7154 (0x1bf2), region = 25 }
0x1bec   :  { %v2023_v33 = vpop.f32.mrf.mxu0 }
0x1bed   :  { %v2024_v32 = vadd.f32 %v2023_v33, %v6599_v29 }
0x1bee   :  { %v5142_v34 = vpop.f32.mrf.mxu0 }
0x1bef   :  { %4442 = vst [vmem:[%s7149_s4 + $0x8] sm:$0xff] %v2024_v32 }
0x1bf0   :  { %v4445_v35 = vld [vmem:[%s7147_s2 + $0x8] sm:$0xff] }
0x1bf1   :  { %2036 = vst.msk [vmem:[#allocation2] sm:$0xff] %vm47_vm1, %v4445_v35 }
0x1bf2 PF:  { %s4446_s13 = sld [smem:[#allocation3 + $0x1]] }
0x1bf8   :  { %p4447_p6 = scmp.ne.s32.totalorder %s4446_s13, 0 }
0x1bfa   :  { %2041 = sbr.rel (%p4447_p6) target bundleno = 7792 (0x1e70), region = 29 }
0x1bff   :  { %vm2042_vm5 = vcmp.lt.s32.totalorder %v6416_v2, 32  ;;  %v5774_v25 = vmov 0.0   ;;  %vm5775_vm8 = vmmov 0  }
0x1c00   :  { %v2043_v36 = vsel %vm2042_vm5, %v2024_v32, -1e+30  ;;  %5143 = vmatprep.subr.mxu0 %v5774_v25  ;;  %5151 = vmatprep.mubr.msk.f32.mxu0 %vm5775_vm8, %v5774_v25 }
0x1c01   :  { %2044 = vmax.xlane.f32.xlu0 %v2043_v36  ;;  %5144 = vmatpush3.msra.mxu0 %v6409_v49 }
0x1c02   :  { %5145 = vmatprep.subr.mxu0 %v5774_v25 }
0x1c03   :  { %5146 = vmatpush3.msra.mxu0 %v6404_v47 }
0x1c04   :  { %5147 = vmatprep.subr.mxu0 %v5774_v25 }
0x1c05   :  { %5148 = vmatpush3.msra.mxu0 %v6399_v46 }
0x1c06   :  { %5149 = vmatprep.subr.mxu0 %v5774_v25 }
0x1c07   :  { %5150 = vmatpush3.msra.mxu0 %v6394_v45 }
0x1c8a   :  { %v2045_v37 = vpop.xlane.xlu0 %2044 }
0x1c8b   :  { %vm2046_vm6 = vcmp.eq.f32.partialorder %v2043_v36, %v2045_v37 }
0x1c8c   :  { %v2047_v23 = vsel %vm2046_vm6, %v6416_v2, 128 }
0x1c8d   :  { %v2049_v24 = vshra.s32 %v2047_v23, 16  ;;  %v2048_v30 = vand.u32 65535, %v2047_v23 }
0x1c8f   :  { %v2051_v38 = vcvt.s32.f32 %v2049_v24  ;;  %v2050_v48 = vcvt.s32.f32 %v2048_v30 }
0x1c91   :  { %2052 = vmin.xlane.f32.xlu0 %v2051_v38 }
0x1d1a   :  { %v2053_v31 = vpop.xlane.xlu0 %2052 }
0x1d1b   :  { %vm2054_vm7 = vcmp.eq.f32.partialorder %v2051_v38, %v2053_v31  ;;  %v2059_v3 = vcvt.f32.s32 %v2053_v31 }
0x1d1c   :  { %v2055_v0 = vsel %vm2054_vm7, %v2050_v48, inf }
0x1d1d   :  { %2056 = vmin.xlane.f32.xlu1 %v2055_v0  ;;  %v2060_v55 = vshll.u32 %v2059_v3, 16 }
0x1da6   :  { %v2057_v54 = vpop.xlane.xlu1 %2056 }
0x1da7   :  { %v2058_v56 = vcvt.f32.s32 %v2057_v54 }
0x1da9   :  { %v2061_v58 = vadd.s32 %v2060_v55, %v2058_v56 }
0x1dab   :  { %vm2062_vm9 = vcmp.eq.s32.totalorder %v6416_v2, %v2061_v58 }
0x1dac   :  { %v4448_v59 = vsel %vm2062_vm9, 1.0, %v5774_v25 }
0x1dad   :  { %5152 = vmatmul.mubr.msk.f32.vlgmr.msra.gmra.mxu0 %vm151_vm3, %v4448_v59 }
0x1e6d   :  { %v2134_v9 = vpop.f32.mrf.mxu0 }
0x1e6e   :  { %2138 = vst.msk [vmem:[#allocation2] sm:$0xff] %vm47_vm1, %v2134_v9 }
0x1e6f   :  { %v5153_v60 = vpop.f32.mrf.mxu0 }
0x1e70 PF:  { %2140 = vrot.lane.b32.xlu0 %v6546_v7, %s5773_s28  ;;  %5154 = vmatprep.subr.mxu0 %v5769_v1  ;;  %s4456_s3 = sld [smem:[#allocation3 + $0x2]] }
0x1e71   :  { %5155 = vmatpush3.msra.mxu0 %v6414_v50  ;;  %5166 = vmatprep.mubr.msk.f32.mxu0 %vm5770_vm0, %v5769_v1 }
0x1e72   :  { %5156 = vmatprep.subr.mxu0 %v5769_v1  ;;  %5169 = vmatprep.subr.mxu1 %v5769_v1 }
0x1e73   :  { %5157 = vmatpush3.msra.mxu0 %v6425_v4  ;;  %5170 = vmatpush3.msra.mxu1 %v6491_v27 }
0x1e74   :  { %5158 = vmatprep.subr.mxu0 %v5769_v1  ;;  %5171 = vmatprep.subr.mxu1 %v5769_v1 }
0x1e75   :  { %5159 = vmatpush3.msra.mxu0 %v6430_v5  ;;  %5172 = vmatpush3.msra.mxu1 %v6496_v40  ;;  %v2139_v7 = vld [vmem:[#allocation2] sm:$0xff] }
0x1e76   :  { %5160 = vmatprep.subr.mxu0 %v5769_v1  ;;  %5173 = vmatprep.subr.mxu1 %v5769_v1  ;;  %p4457_p7 = scmp.eq.s32.totalorder %s4456_s3, 0 }
0x1e77   :  { %5161 = vmatpush3.msra.mxu0 %v6443_v51  ;;  %5174 = vmatpush3.msra.mxu1 %v6503_v28 }
0x1e78   :  { %5162 = vmatprep.subr.mxu0 %v5769_v1  ;;  %5175 = vmatprep.subr.mxu1 %v5769_v1 }
0x1e79   :  { %5163 = vmatpush3.msra.mxu0 %v6450_v52  ;;  %5176 = vmatpush3.msra.mxu1 %v6510_v41 }
0x1e7a   :  { %5164 = vmatprep.subr.mxu0 %v5769_v1  ;;  %5177 = vmatprep.subr.mxu1 %v5769_v1 }
0x1e7b   :  { %5165 = vmatpush3.msra.mxu0 %v6457_v53  ;;  %5178 = vmatpush3.msra.mxu1 %v6517_v42 }
0x1e7c   :  { %5179 = vmatprep.subr.mxu1 %v5769_v1  ;;  %5185 = vmatprep.mubr.msk.f32.mxu1 %vm5770_vm0, %v5769_v1 }
0x1e7d   :  { %5180 = vmatpush3.msra.mxu1 %v6528_v43  ;;  %5188 = vmatprep.subr.mxu0 %v5769_v1 }
0x1e7e   :  { %5181 = vmatprep.subr.mxu1 %v5769_v1 }
0x1e7f   :  { %5182 = vmatpush3.msra.mxu1 %v6533_v39 }
0x1e80   :  { %5183 = vmatprep.subr.mxu1 %v5769_v1 }
0x1e81   :  { %5184 = vmatpush3.msra.mxu1 %v6542_v44 }
0x1ee2   :  { %v2141_v61 = vpop.permute.xlu0 %2140 }
0x1ee3   :  { %v2143_v62 = vsel %vm47_vm1, %v2139_v7, %v2141_v61 }
0x1ee4   :  { %5167 = vmatmul.mubr.msk.f32.vlgmr.msra.gmra.mxu0 %vm49_vm2, %v2143_v62 }
0x1ee5   :  { %5189 = vmatpush3.msra.mxu0 %v6566_v15  ;;  %5196 = vmatprep.mubr.msk.f32.mxu0 %vm5770_vm0, %v5769_v1 }
0x1ee6   :  { %5190 = vmatprep.subr.mxu0 %v5769_v1 }
0x1ee7   :  { %5191 = vmatpush3.msra.mxu0 %v6571_v16 }
0x1ee8   :  { %5192 = vmatprep.subr.mxu0 %v5769_v1 }
0x1ee9   :  { %5193 = vmatpush3.msra.mxu0 %v6578_v17 }
0x1eea   :  { %5194 = vmatprep.subr.mxu0 %v5769_v1 }
0x1eeb   :  { %5195 = vmatpush3.msra.mxu0 %v6585_v18 }
0x1fa4   :  { %v2213_v63 = vpop.f32.mrf.mxu0 }
0x1fa5   :  { %v2214_v6 = vadd.f32 %v2213_v63, %v6476_v10 }
0x1fa6   :  { %v5168_v8 = vpop.f32.mrf.mxu0 }
0x1fa7   :  { %5658 = vtanh.f32 %v2214_v6  ;;  %v4451_v12 = vmul.f32 -1.442695, %v2214_v6 }
0x1fa9   :  { %5660 = vpow2.f32 %v4451_v12 }
0x1fb4   :  { %v5659_v11 = vpop.eup %5658 }
0x1fb5   :  { %2226 = vrot.lane.b32.xlu0 %v5659_v11, %s5771_s11 }
0x1fb6   :  { %v5661_v13 = vpop.eup %5660 }
0x1fb7   :  { %v2220_v19 = vadd.f32 1.0, %v5661_v13 }
0x1fb9   :  { %5662 = vrcp.f32 %v2220_v19 }
0x1fc6   :  { %v5663_v20 = vpop.eup %5662 }
0x1fc7   :  { %v2224_v32 = vmul.f32 %v5663_v20, %v6485_v26 }
0x2027   :  { %v2227_v22 = vpop.permute.xlu0 %2226 }
0x2028   :  { %v2229_v33 = vmul.f32 %v5663_v20, %v2227_v22 }
0x202a   :  { %2231 = vrot.lane.b32.xlu1 %v2229_v33, %s5772_s12 }
0x209c   :  { %v2232_v34 = vpop.permute.xlu1 %2231 }
0x209d   :  { %v6668_v35 = vadd.f32 %v2232_v34, %v2224_v32 }
0x209f   :  { %5664 = vtanh.f32 %v6668_v35 }
0x20ac   :  { %v5665_v36 = vpop.eup %5664 }
0x20ad   :  { %2237 = vrot.lane.b32.xlu1 %v5665_v36, %s5771_s11 }
0x20b1   :  { %2245 = vrot.lane.b32.xlu1 %v6591_v21, %s5771_s11 }
0x211f   :  { %v2238_v37 = vpop.permute.xlu1 %2237 }
0x2120   :  { %v6674_v23 = vmul.f32 %v5663_v20, %v2238_v37 }
0x2122   :  { %2242 = vrot.lane.b32.xlu0 %v6674_v23, %s5772_s12 }
0x2123   :  { %v2246_v24 = vpop.permute.xlu1 %2245 }
0x2194   :  { %v2243_v38 = vpop.permute.xlu0 %2242 }
0x2195   :  { %v2248_v26 = vsel %vm151_vm3, %v2243_v38, %v2246_v24 }
0x2196   :  { %5186 = vmatmul.mubr.msk.f32.vlgmr.msra.gmra.mxu1 %vm153_vm4, %v2248_v26 }
0x2256   :  { %v2318_v25 = vpop.f32.mrf.mxu1 }
0x2257   :  { %v2319_v30 = vadd.f32 %v2318_v25, %v6555_v57 }
0x2258   :  { %v5187_v31 = vpop.f32.mrf.mxu1 }
0x2259   :  { %5666 = vtanh.f32 %v2319_v30  ;;  %v4453_v21 = vmul.f32 -1.442695, %v2319_v30 }
0x225b   :  { %5668 = vpow2.f32 %v4453_v21 }
0x2266   :  { %v5667_v48 = vpop.eup %5666 }
0x2267   :  { %2331 = vrot.lane.b32.xlu0 %v5667_v48, %s5771_s11 }
0x2268   :  { %v5669_v0 = vpop.eup %5668 }
0x2269   :  { %v2325_v3 = vadd.f32 1.0, %v5669_v0 }
0x226b   :  { %5670 = vrcp.f32 %v2325_v3 }
0x2278   :  { %v5671_v54 = vpop.eup %5670 }
0x2279   :  { %v2329_v58 = vmul.f32 %v5671_v54, %v6560_v14 }
0x22d9   :  { %v2332_v55 = vpop.permute.xlu0 %2331 }
0x22da   :  { %v2334_v56 = vmul.f32 %v5671_v54, %v2332_v55 }
0x22dc   :  { %2336 = vrot.lane.b32.xlu1 %v2334_v56, %s5772_s12 }
0x234e   :  { %v2337_v59 = vpop.permute.xlu1 %2336 }
0x234f   :  { %v6684_v9 = vadd.f32 %v2337_v59, %v2329_v58 }
0x2351   :  { %5672 = vtanh.f32 %v6684_v9 }
0x235e   :  { %v5673_v60 = vpop.eup %5672 }
0x235f   :  { %2342 = vrot.lane.b32.xlu0 %v5673_v60, %s5771_s11 }
0x23d1   :  { %v2343_v7 = vpop.permute.xlu0 %2342 }
0x23d2   :  { %v6688_v61 = vmul.f32 %v5671_v54, %v2343_v7 }
0x23d4   :  { %2347 = vrot.lane.b32.xlu1 %v6688_v61, %s5772_s12 }
0x2446   :  { %v2348_v62 = vpop.permute.xlu1 %2347 }
0x2447   :  { %5197 = vmatmul.mubr.msk.f32.vlgmr.msra.gmra.mxu0 %vm151_vm3, %v2348_v62 }
0x2506   :  { %2427 = sbr.rel (%p4457_p7) target bundleno = 9485 (0x250d), region = 33 }
0x2507   :  { %v2417_v63 = vpop.f32.mrf.mxu0 }
0x2508   :  { %v2418_v14 = vadd.f32 %v2417_v63, %v6599_v29 }
0x2509   :  { %v5198_v6 = vpop.f32.mrf.mxu0 }
0x250a   :  { %4455 = vst [vmem:[%s7149_s4 + $0x10] sm:$0xff] %v2418_v14 }
0x250b   :  { %v4458_v8 = vld [vmem:[%s7147_s2 + $0x10] sm:$0xff] }
0x250c   :  { %2430 = vst.msk [vmem:[#allocation2] sm:$0xff] %vm47_vm1, %v4458_v8 }
0x250d PF:  { %s4459_s17 = sld [smem:[#allocation3 + $0x2]] }
0x2513   :  { %p4460_p8 = scmp.ne.s32.totalorder %s4459_s17, 0 }
0x2515   :  { %2435 = sbr.rel (%p4460_p8) target bundleno = 10123 (0x278b), region = 37 }
0x251a   :  { %vm2436_vm10 = vcmp.lt.s32.totalorder %v6416_v2, 32  ;;  %v5776_v22 = vmov 0.0   ;;  %vm5777_vm13 = vmmov 0  }
0x251b   :  { %v2437_v11 = vsel %vm2436_vm10, %v2418_v14, -1e+30  ;;  %5199 = vmatprep.subr.mxu0 %v5776_v22  ;;  %5207 = vmatprep.mubr.msk.f32.mxu0 %vm5777_vm13, %v5776_v22 }
0x251c   :  { %2438 = vmax.xlane.f32.xlu0 %v2437_v11  ;;  %5200 = vmatpush3.msra.mxu0 %v6409_v49 }
0x251d   :  { %5201 = vmatprep.subr.mxu0 %v5776_v22 }
0x251e   :  { %5202 = vmatpush3.msra.mxu0 %v6404_v47 }
0x251f   :  { %5203 = vmatprep.subr.mxu0 %v5776_v22 }
0x2520   :  { %5204 = vmatpush3.msra.mxu0 %v6399_v46 }
0x2521   :  { %5205 = vmatprep.subr.mxu0 %v5776_v22 }
0x2522   :  { %5206 = vmatpush3.msra.mxu0 %v6394_v45 }
0x25a5   :  { %v2439_v12 = vpop.xlane.xlu0 %2438 }
0x25a6   :  { %vm2440_vm11 = vcmp.eq.f32.partialorder %v2437_v11, %v2439_v12 }
0x25a7   :  { %v2441_v13 = vsel %vm2440_vm11, %v6416_v2, 128 }
0x25a8   :  { %v2443_v19 = vshra.s32 %v2441_v13, 16  ;;  %v2442_v33 = vand.u32 65535, %v2441_v13 }
0x25aa   :  { %v2445_v20 = vcvt.s32.f32 %v2443_v19  ;;  %v2444_v34 = vcvt.s32.f32 %v2442_v33 }
0x25ac   :  { %2446 = vmin.xlane.f32.xlu0 %v2445_v20 }
0x2635   :  { %v2447_v32 = vpop.xlane.xlu0 %2446 }
0x2636   :  { %vm2448_vm12 = vcmp.eq.f32.partialorder %v2445_v20, %v2447_v32  ;;  %v2453_v37 = vcvt.f32.s32 %v2447_v32 }
0x2637   :  { %v2449_v36 = vsel %vm2448_vm12, %v2444_v34, inf }
0x2638   :  { %2450 = vmin.xlane.f32.xlu1 %v2449_v36  ;;  %v2454_v38 = vshll.u32 %v2453_v37, 16 }
0x26c1   :  { %v2451_v24 = vpop.xlane.xlu1 %2450 }
0x26c2   :  { %v2452_v26 = vcvt.f32.s32 %v2451_v24 }
0x26c4   :  { %v2455_v25 = vadd.s32 %v2454_v38, %v2452_v26 }
0x26c6   :  { %vm2456_vm14 = vcmp.eq.s32.totalorder %v6416_v2, %v2455_v25 }
0x26c7   :  { %v4461_v30 = vsel %vm2456_vm14, 1.0, %v5776_v22 }
0x26c8   :  { %5208 = vmatmul.mubr.msk.f32.vlgmr.msra.gmra.mxu0 %vm151_vm3, %v4461_v30 }
0x2788   :  { %v2528_v31 = vpop.f32.mrf.mxu0 }
0x2789   :  { %2532 = vst.msk [vmem:[#allocation2] sm:$0xff] %vm47_vm1, %v2528_v31 }
0x278a   :  { %v5209_v48 = vpop.f32.mrf.mxu0 }
0x278b PF:  { %2534 = vrot.lane.b32.xlu0 %v6674_v23, %s5773_s28  ;;  %5210 = vmatprep.subr.mxu0 %v5769_v1  ;;  %s4469_s18 = sld [smem:[#allocation3 + $0x3]] }
0x278c   :  { %5211 = vmatpush3.msra.mxu0 %v6414_v50  ;;  %5222 = vmatprep.mubr.msk.f32.mxu0 %vm5770_vm0, %v5769_v1 }
0x278d   :  { %5212 = vmatprep.subr.mxu0 %v5769_v1  ;;  %5225 = vmatprep.subr.mxu1 %v5769_v1 }
0x278e   :  { %5213 = vmatpush3.msra.mxu0 %v6425_v4  ;;  %5226 = vmatpush3.msra.mxu1 %v6491_v27 }
0x278f   :  { %5214 = vmatprep.subr.mxu0 %v5769_v1  ;;  %5227 = vmatprep.subr.mxu1 %v5769_v1 }
0x2790   :  { %5215 = vmatpush3.msra.mxu0 %v6430_v5  ;;  %5228 = vmatpush3.msra.mxu1 %v6496_v40  ;;  %v2533_v23 = vld [vmem:[#allocation2] sm:$0xff] }
0x2791   :  { %5216 = vmatprep.subr.mxu0 %v5769_v1  ;;  %5229 = vmatprep.subr.mxu1 %v5769_v1  ;;  %p4470_p9 = scmp.eq.s32.totalorder %s4469_s18, 0 }
0x2792   :  { %5217 = vmatpush3.msra.mxu0 %v6443_v51  ;;  %5230 = vmatpush3.msra.mxu1 %v6503_v28 }
0x2793   :  { %5218 = vmatprep.subr.mxu0 %v5769_v1  ;;  %5231 = vmatprep.subr.mxu1 %v5769_v1 }
0x2794   :  { %5219 = vmatpush3.msra.mxu0 %v6450_v52  ;;  %5232 = vmatpush3.msra.mxu1 %v6510_v41 }
0x2795   :  { %5220 = vmatprep.subr.mxu0 %v5769_v1  ;;  %5233 = vmatprep.subr.mxu1 %v5769_v1 }
0x2796   :  { %5221 = vmatpush3.msra.mxu0 %v6457_v53  ;;  %5234 = vmatpush3.msra.mxu1 %v6517_v42 }
0x2797   :  { %5235 = vmatprep.subr.mxu1 %v5769_v1  ;;  %5241 = vmatprep.mubr.msk.f32.mxu1 %vm5770_vm0, %v5769_v1 }
0x2798   :  { %5236 = vmatpush3.msra.mxu1 %v6528_v43  ;;  %5244 = vmatprep.subr.mxu0 %v5769_v1 }
0x2799   :  { %5237 = vmatprep.subr.mxu1 %v5769_v1 }
0x279a   :  { %5238 = vmatpush3.msra.mxu1 %v6533_v39 }
0x279b   :  { %5239 = vmatprep.subr.mxu1 %v5769_v1 }
0x279c   :  { %5240 = vmatpush3.msra.mxu1 %v6542_v44 }
0x27fd   :  { %v2535_v21 = vpop.permute.xlu0 %2534 }
0x27fe   :  { %v2537_v0 = vsel %vm47_vm1, %v2533_v23, %v2535_v21 }
0x27ff   :  { %5223 = vmatmul.mubr.msk.f32.vlgmr.msra.gmra.mxu0 %vm49_vm2, %v2537_v0 }
0x2800   :  { %5245 = vmatpush3.msra.mxu0 %v6566_v15  ;;  %5252 = vmatprep.mubr.msk.f32.mxu0 %vm5770_vm0, %v5769_v1 }
0x2801   :  { %5246 = vmatprep.subr.mxu0 %v5769_v1 }
0x2802   :  { %5247 = vmatpush3.msra.mxu0 %v6571_v16 }
0x2803   :  { %5248 = vmatprep.subr.mxu0 %v5769_v1 }
0x2804   :  { %5249 = vmatpush3.msra.mxu0 %v6578_v17 }
0x2805   :  { %5250 = vmatprep.subr.mxu0 %v5769_v1 }
0x2806   :  { %5251 = vmatpush3.msra.mxu0 %v6585_v18 }
0x28bf   :  { %v2607_v3 = vpop.f32.mrf.mxu0 }
0x28c0   :  { %v2608_v54 = vadd.f32 %v2607_v3, %v6476_v10 }
0x28c1   :  { %v5224_v55 = vpop.f32.mrf.mxu0 }
0x28c2   :  { %5674 = vtanh.f32 %v2608_v54  ;;  %v4464_v58 = vmul.f32 -1.442695, %v2608_v54 }
0x28c4   :  { %5676 = vpow2.f32 %v4464_v58 }
0x28cf   :  { %v5675_v56 = vpop.eup %5674 }
0x28d0   :  { %2620 = vrot.lane.b32.xlu0 %v5675_v56, %s5771_s11 }
0x28d1   :  { %v5677_v59 = vpop.eup %5676 }
0x28d2   :  { %v2614_v60 = vadd.f32 1.0, %v5677_v59 }
0x28d4   :  { %5678 = vrcp.f32 %v2614_v60 }
0x28e1   :  { %v5679_v7 = vpop.eup %5678 }
0x28e2   :  { %v2618_v14 = vmul.f32 %v5679_v7, %v6668_v35 }
0x2942   :  { %v2621_v62 = vpop.permute.xlu0 %2620 }
0x2943   :  { %v2623_v63 = vmul.f32 %v5679_v7, %v2621_v62 }
0x2945   :  { %2625 = vrot.lane.b32.xlu1 %v2623_v63, %s5772_s12 }
0x29b7   :  { %v2626_v6 = vpop.permute.xlu1 %2625 }
0x29b8   :  { %v6760_v8 = vadd.f32 %v2626_v6, %v2618_v14 }
0x29ba   :  { %5680 = vtanh.f32 %v6760_v8 }
0x29c7   :  { %v5681_v11 = vpop.eup %5680 }
0x29c8   :  { %2631 = vrot.lane.b32.xlu1 %v5681_v11, %s5771_s11 }
0x29cc   :  { %2639 = vrot.lane.b32.xlu1 %v6688_v61, %s5771_s11 }
0x2a3a   :  { %v2632_v12 = vpop.permute.xlu1 %2631 }
0x2a3b   :  { %v6766_v13 = vmul.f32 %v5679_v7, %v2632_v12 }
0x2a3d   :  { %2636 = vrot.lane.b32.xlu0 %v6766_v13, %s5772_s12 }
0x2a3e   :  { %v2640_v19 = vpop.permute.xlu1 %2639 }
0x2aaf   :  { %v2637_v20 = vpop.permute.xlu0 %2636 }
0x2ab0   :  { %v2642_v35 = vsel %vm151_vm3, %v2637_v20, %v2640_v19 }
0x2ab1   :  { %5242 = vmatmul.mubr.msk.f32.vlgmr.msra.gmra.mxu1 %vm153_vm4, %v2642_v35 }
0x2b71   :  { %v2712_v22 = vpop.f32.mrf.mxu1 }
0x2b72   :  { %v2713_v33 = vadd.f32 %v2712_v22, %v6555_v57 }
0x2b73   :  { %v5243_v32 = vpop.f32.mrf.mxu1 }
0x2b74   :  { %5682 = vtanh.f32 %v2713_v33  ;;  %v4466_v61 = vmul.f32 -1.442695, %v2713_v33 }
0x2b76   :  { %5684 = vpow2.f32 %v4466_v61 }
0x2b81   :  { %v5683_v34 = vpop.eup %5682 }
0x2b82   :  { %2725 = vrot.lane.b32.xlu0 %v5683_v34, %s5771_s11 }
0x2b83   :  { %v5685_v36 = vpop.eup %5684 }
0x2b84   :  { %v2719_v37 = vadd.f32 1.0, %v5685_v36 }
0x2b86   :  { %5686 = vrcp.f32 %v2719_v37 }
0x2b93   :  { %v5687_v24 = vpop.eup %5686 }
0x2b94   :  { %v2723_v25 = vmul.f32 %v5687_v24, %v6684_v9 }
0x2bf4   :  { %v2726_v38 = vpop.permute.xlu0 %2725 }
0x2bf5   :  { %v2728_v26 = vmul.f32 %v5687_v24, %v2726_v38 }
0x2bf7   :  { %2730 = vrot.lane.b32.xlu1 %v2728_v26, %s5772_s12 }
0x2c69   :  { %v2731_v30 = vpop.permute.xlu1 %2730 }
0x2c6a   :  { %v6776_v31 = vadd.f32 %v2731_v30, %v2723_v25 }
0x2c6c   :  { %5688 = vtanh.f32 %v6776_v31 }
0x2c79   :  { %v5689_v48 = vpop.eup %5688 }
0x2c7a   :  { %2736 = vrot.lane.b32.xlu0 %v5689_v48, %s5771_s11 }
0x2cec   :  { %v2737_v23 = vpop.permute.xlu0 %2736 }
0x2ced   :  { %v6780_v21 = vmul.f32 %v5687_v24, %v2737_v23 }
0x2cef   :  { %2741 = vrot.lane.b32.xlu1 %v6780_v21, %s5772_s12 }
0x2d61   :  { %v2742_v0 = vpop.permute.xlu1 %2741 }
0x2d62   :  { %5253 = vmatmul.mubr.msk.f32.vlgmr.msra.gmra.mxu0 %vm151_vm3, %v2742_v0 }
0x2e21   :  { %2821 = sbr.rel (%p4470_p9) target bundleno = 11816 (0x2e28), region = 41 }
0x2e22   :  { %v2811_v3 = vpop.f32.mrf.mxu0 }
0x2e23   :  { %v2812_v9 = vadd.f32 %v2811_v3, %v6599_v29 }
0x2e24   :  { %v5254_v54 = vpop.f32.mrf.mxu0 }
0x2e25   :  { %4468 = vst [vmem:[%s7149_s4 + $0x18] sm:$0xff] %v2812_v9 }
0x2e26   :  { %v4471_v55 = vld [vmem:[%s7147_s2 + $0x18] sm:$0xff] }
0x2e27   :  { %2824 = vst.msk [vmem:[#allocation2] sm:$0xff] %vm47_vm1, %v4471_v55 }
0x2e28 PF:  { %s4472_s22 = sld [smem:[#allocation3 + $0x3]] }
0x2e2e   :  { %p4473_p10 = scmp.ne.s32.totalorder %s4472_s22, 0 }
0x2e30   :  { %2829 = sbr.rel (%p4473_p10) target bundleno = 12454 (0x30a6), region = 45 }
0x2e35   :  { %vm2830_vm15 = vcmp.lt.s32.totalorder %v6416_v2, 32  ;;  %v5778_v62 = vmov 0.0   ;;  %vm5779_vm7 = vmmov 0  }
0x2e36   :  { %v2831_v56 = vsel %vm2830_vm15, %v2812_v9, -1e+30  ;;  %5255 = vmatprep.subr.mxu0 %v5778_v62  ;;  %5263 = vmatprep.mubr.msk.f32.mxu0 %vm5779_vm7, %v5778_v62 }
0x2e37   :  { %2832 = vmax.xlane.f32.xlu0 %v2831_v56  ;;  %5256 = vmatpush3.msra.mxu0 %v6409_v49 }
0x2e38   :  { %5257 = vmatprep.subr.mxu0 %v5778_v62 }
0x2e39   :  { %5258 = vmatpush3.msra.mxu0 %v6404_v47 }
0x2e3a   :  { %5259 = vmatprep.subr.mxu0 %v5778_v62 }
0x2e3b   :  { %5260 = vmatpush3.msra.mxu0 %v6399_v46 }
0x2e3c   :  { %5261 = vmatprep.subr.mxu0 %v5778_v62 }
0x2e3d   :  { %5262 = vmatpush3.msra.mxu0 %v6394_v45 }
0x2ec0   :  { %v2833_v58 = vpop.xlane.xlu0 %2832 }
0x2ec1   :  { %vm2834_vm5 = vcmp.eq.f32.partialorder %v2831_v56, %v2833_v58 }
0x2ec2   :  { %v2835_v59 = vsel %vm2834_vm5, %v6416_v2, 128 }
0x2ec3   :  { %v2837_v60 = vshra.s32 %v2835_v59, 16  ;;  %v2836_v63 = vand.u32 65535, %v2835_v59 }
0x2ec5   :  { %v2839_v7 = vcvt.s32.f32 %v2837_v60  ;;  %v2838_v6 = vcvt.s32.f32 %v2836_v63 }
0x2ec7   :  { %2840 = vmin.xlane.f32.xlu0 %v2839_v7 }
0x2f50   :  { %v2841_v14 = vpop.xlane.xlu0 %2840 }
0x2f51   :  { %vm2842_vm6 = vcmp.eq.f32.partialorder %v2839_v7, %v2841_v14  ;;  %v2847_v12 = vcvt.f32.s32 %v2841_v14 }
0x2f52   :  { %v2843_v11 = vsel %vm2842_vm6, %v2838_v6, inf }
0x2f53   :  { %2844 = vmin.xlane.f32.xlu1 %v2843_v11  ;;  %v2848_v20 = vshll.u32 %v2847_v12, 16 }
0x2fdc   :  { %v2845_v19 = vpop.xlane.xlu1 %2844 }
0x2fdd   :  { %v2846_v35 = vcvt.f32.s32 %v2845_v19 }
0x2fdf   :  { %v2849_v22 = vadd.s32 %v2848_v20, %v2846_v35 }
0x2fe1   :  { %vm2850_vm8 = vcmp.eq.s32.totalorder %v6416_v2, %v2849_v22 }
0x2fe2   :  { %v4474_v33 = vsel %vm2850_vm8, 1.0, %v5778_v62 }
0x2fe3   :  { %5264 = vmatmul.mubr.msk.f32.vlgmr.msra.gmra.mxu0 %vm151_vm3, %v4474_v33 }
0x30a3   :  { %v2922_v32 = vpop.f32.mrf.mxu0 }
0x30a4   :  { %2926 = vst.msk [vmem:[#allocation2] sm:$0xff] %vm47_vm1, %v2922_v32 }
0x30a5   :  { %v5265_v34 = vpop.f32.mrf.mxu0 }
0x30a6 PF:  { %2928 = vrot.lane.b32.xlu0 %v6766_v13, %s5773_s28  ;;  %5266 = vmatprep.subr.mxu0 %v5769_v1  ;;  %s4482_s23 = sld [smem:[#allocation3 + $0x4]] }
0x30a7   :  { %5267 = vmatpush3.msra.mxu0 %v6414_v50  ;;  %5278 = vmatprep.mubr.msk.f32.mxu0 %vm5770_vm0, %v5769_v1 }
0x30a8   :  { %5268 = vmatprep.subr.mxu0 %v5769_v1  ;;  %5281 = vmatprep.subr.mxu1 %v5769_v1 }
0x30a9   :  { %5269 = vmatpush3.msra.mxu0 %v6425_v4  ;;  %5282 = vmatpush3.msra.mxu1 %v6491_v27 }
0x30aa   :  { %5270 = vmatprep.subr.mxu0 %v5769_v1  ;;  %5283 = vmatprep.subr.mxu1 %v5769_v1 }
0x30ab   :  { %5271 = vmatpush3.msra.mxu0 %v6430_v5  ;;  %5284 = vmatpush3.msra.mxu1 %v6496_v40  ;;  %v2927_v13 = vld [vmem:[#allocation2] sm:$0xff] }
0x30ac   :  { %5272 = vmatprep.subr.mxu0 %v5769_v1  ;;  %5285 = vmatprep.subr.mxu1 %v5769_v1  ;;  %p4483_p11 = scmp.eq.s32.totalorder %s4482_s23, 0 }
0x30ad   :  { %5273 = vmatpush3.msra.mxu0 %v6443_v51  ;;  %5286 = vmatpush3.msra.mxu1 %v6503_v28 }
0x30ae   :  { %5274 = vmatprep.subr.mxu0 %v5769_v1  ;;  %5287 = vmatprep.subr.mxu1 %v5769_v1 }
0x30af   :  { %5275 = vmatpush3.msra.mxu0 %v6450_v52  ;;  %5288 = vmatpush3.msra.mxu1 %v6510_v41 }
0x30b0   :  { %5276 = vmatprep.subr.mxu0 %v5769_v1  ;;  %5289 = vmatprep.subr.mxu1 %v5769_v1 }
0x30b1   :  { %5277 = vmatpush3.msra.mxu0 %v6457_v53  ;;  %5290 = vmatpush3.msra.mxu1 %v6517_v42 }
0x30b2   :  { %5291 = vmatprep.subr.mxu1 %v5769_v1  ;;  %5297 = vmatprep.mubr.msk.f32.mxu1 %vm5770_vm0, %v5769_v1 }
0x30b3   :  { %5292 = vmatpush3.msra.mxu1 %v6528_v43  ;;  %5300 = vmatprep.subr.mxu0 %v5769_v1 }
0x30b4   :  { %5293 = vmatprep.subr.mxu1 %v5769_v1 }
0x30b5   :  { %5294 = vmatpush3.msra.mxu1 %v6533_v39 }
0x30b6   :  { %5295 = vmatprep.subr.mxu1 %v5769_v1 }
0x30b7   :  { %5296 = vmatpush3.msra.mxu1 %v6542_v44 }
0x3118   :  { %v2929_v61 = vpop.permute.xlu0 %2928 }
0x3119   :  { %v2931_v36 = vsel %vm47_vm1, %v2927_v13, %v2929_v61 }
0x311a   :  { %5279 = vmatmul.mubr.msk.f32.vlgmr.msra.gmra.mxu0 %vm49_vm2, %v2931_v36 }
0x311b   :  { %5301 = vmatpush3.msra.mxu0 %v6566_v15  ;;  %5308 = vmatprep.mubr.msk.f32.mxu0 %vm5770_vm0, %v5769_v1 }
0x311c   :  { %5302 = vmatprep.subr.mxu0 %v5769_v1 }
0x311d   :  { %5303 = vmatpush3.msra.mxu0 %v6571_v16 }
0x311e   :  { %5304 = vmatprep.subr.mxu0 %v5769_v1 }
0x311f   :  { %5305 = vmatpush3.msra.mxu0 %v6578_v17 }
0x3120   :  { %5306 = vmatprep.subr.mxu0 %v5769_v1 }
0x3121   :  { %5307 = vmatpush3.msra.mxu0 %v6585_v18 }
0x31da   :  { %v3001_v37 = vpop.f32.mrf.mxu0 }
0x31db   :  { %v3002_v24 = vadd.f32 %v3001_v37, %v6476_v10 }
0x31dc   :  { %v5280_v38 = vpop.f32.mrf.mxu0 }
0x31dd   :  { %5690 = vtanh.f32 %v3002_v24  ;;  %v4477_v25 = vmul.f32 -1.442695, %v3002_v24 }
0x31df   :  { %5692 = vpow2.f32 %v4477_v25 }
0x31ea   :  { %v5691_v26 = vpop.eup %5690 }
0x31eb   :  { %3014 = vrot.lane.b32.xlu0 %v5691_v26, %s5771_s11 }
0x31ec   :  { %v5693_v30 = vpop.eup %5692 }
0x31ed   :  { %v3008_v48 = vadd.f32 1.0, %v5693_v30 }
0x31ef   :  { %5694 = vrcp.f32 %v3008_v48 }
0x31fc   :  { %v5695_v23 = vpop.eup %5694 }
0x31fd   :  { %v3012_v9 = vmul.f32 %v5695_v23, %v6760_v8 }
0x325d   :  { %v3015_v0 = vpop.permute.xlu0 %3014 }
0x325e   :  { %v3017_v3 = vmul.f32 %v5695_v23, %v3015_v0 }
0x3260   :  { %3019 = vrot.lane.b32.xlu1 %v3017_v3, %s5772_s12 }
0x32d2   :  { %v3020_v54 = vpop.permute.xlu1 %3019 }
0x32d3   :  { %v6852_v55 = vadd.f32 %v3020_v54, %v3012_v9 }
0x32d5   :  { %5696 = vtanh.f32 %v6852_v55 }
0x32e2   :  { %v5697_v56 = vpop.eup %5696 }
0x32e3   :  { %3025 = vrot.lane.b32.xlu1 %v5697_v56, %s5771_s11 }
0x32e7   :  { %3033 = vrot.lane.b32.xlu1 %v6780_v21, %s5771_s11 }
0x3355   :  { %v3026_v58 = vpop.permute.xlu1 %3025 }
0x3356   :  { %v6858_v59 = vmul.f32 %v5695_v23, %v3026_v58 }
0x3358   :  { %3030 = vrot.lane.b32.xlu0 %v6858_v59, %s5772_s12 }
0x3359   :  { %v3034_v60 = vpop.permute.xlu1 %3033 }
0x33ca   :  { %v3031_v7 = vpop.permute.xlu0 %3030 }
0x33cb   :  { %v3036_v8 = vsel %vm151_vm3, %v3031_v7, %v3034_v60 }
0x33cc   :  { %5298 = vmatmul.mubr.msk.f32.vlgmr.msra.gmra.mxu1 %vm153_vm4, %v3036_v8 }
0x348c   :  { %v3106_v62 = vpop.f32.mrf.mxu1 }
0x348d   :  { %v3107_v63 = vadd.f32 %v3106_v62, %v6555_v57 }
0x348e   :  { %v5299_v14 = vpop.f32.mrf.mxu1 }
0x348f   :  { %5698 = vtanh.f32 %v3107_v63  ;;  %v4479_v21 = vmul.f32 -1.442695, %v3107_v63 }
0x3491   :  { %5700 = vpow2.f32 %v4479_v21 }
0x349c   :  { %v5699_v6 = vpop.eup %5698 }
0x349d   :  { %3119 = vrot.lane.b32.xlu0 %v5699_v6, %s5771_s11 }
0x349e   :  { %v5701_v11 = vpop.eup %5700 }
0x349f   :  { %v3113_v12 = vadd.f32 1.0, %v5701_v11 }
0x34a1   :  { %5702 = vrcp.f32 %v3113_v12 }
0x34ae   :  { %v5703_v19 = vpop.eup %5702 }
0x34af   :  { %v3117_v22 = vmul.f32 %v5703_v19, %v6776_v31 }
0x350f   :  { %v3120_v20 = vpop.permute.xlu0 %3119 }
0x3510   :  { %v3122_v35 = vmul.f32 %v5703_v19, %v3120_v20 }
0x3512   :  { %3124 = vrot.lane.b32.xlu1 %v3122_v35, %s5772_s12 }
0x3584   :  { %v3125_v33 = vpop.permute.xlu1 %3124 }
0x3585   :  { %v6868_v32 = vadd.f32 %v3125_v33, %v3117_v22 }
0x3587   :  { %5704 = vtanh.f32 %v6868_v32 }
0x3594   :  { %v5705_v34 = vpop.eup %5704 }
0x3595   :  { %3130 = vrot.lane.b32.xlu0 %v5705_v34, %s5771_s11 }
0x3607   :  { %v3131_v13 = vpop.permute.xlu0 %3130 }
0x3608   :  { %v6872_v61 = vmul.f32 %v5703_v19, %v3131_v13 }
0x360a   :  { %3135 = vrot.lane.b32.xlu1 %v6872_v61, %s5772_s12 }
0x367c   :  { %v3136_v36 = vpop.permute.xlu1 %3135 }
0x367d   :  { %5309 = vmatmul.mubr.msk.f32.vlgmr.msra.gmra.mxu0 %vm151_vm3, %v3136_v36 }
0x373c   :  { %3215 = sbr.rel (%p4483_p11) target bundleno = 14147 (0x3743), region = 49 }
0x373d   :  { %v3205_v37 = vpop.f32.mrf.mxu0 }
0x373e   :  { %v3206_v31 = vadd.f32 %v3205_v37, %v6599_v29 }
0x373f   :  { %v5310_v24 = vpop.f32.mrf.mxu0 }
0x3740   :  { %4481 = vst [vmem:[%s7149_s4 + $0x20] sm:$0xff] %v3206_v31 }
0x3741   :  { %v4484_v38 = vld [vmem:[%s7147_s2 + $0x20] sm:$0xff] }
0x3742   :  { %3218 = vst.msk [vmem:[#allocation2] sm:$0xff] %vm47_vm1, %v4484_v38 }
0x3743 PF:  { %s4485_s29 = sld [smem:[#allocation3 + $0x4]] }
0x3749   :  { %p4486_p12 = scmp.ne.s32.totalorder %s4485_s29, 0 }
0x374b   :  { %3223 = sbr.rel (%p4486_p12) target bundleno = 14785 (0x39c1), region = 53 }
0x3750   :  { %vm3224_vm9 = vcmp.lt.s32.totalorder %v6416_v2, 32  ;;  %v5780_v0 = vmov 0.0   ;;  %vm5781_vm12 = vmmov 0  }
0x3751   :  { %v3225_v26 = vsel %vm3224_vm9, %v3206_v31, -1e+30  ;;  %5311 = vmatprep.subr.mxu0 %v5780_v0  ;;  %5319 = vmatprep.mubr.msk.f32.mxu0 %vm5781_vm12, %v5780_v0 }
0x3752   :  { %3226 = vmax.xlane.f32.xlu0 %v3225_v26  ;;  %5312 = vmatpush3.msra.mxu0 %v6409_v49 }
0x3753   :  { %5313 = vmatprep.subr.mxu0 %v5780_v0 }
0x3754   :  { %5314 = vmatpush3.msra.mxu0 %v6404_v47 }
0x3755   :  { %5315 = vmatprep.subr.mxu0 %v5780_v0 }
0x3756   :  { %5316 = vmatpush3.msra.mxu0 %v6399_v46 }
0x3757   :  { %5317 = vmatprep.subr.mxu0 %v5780_v0 }
0x3758   :  { %5318 = vmatpush3.msra.mxu0 %v6394_v45 }
0x37db   :  { %v3227_v25 = vpop.xlane.xlu0 %3226 }
0x37dc   :  { %vm3228_vm10 = vcmp.eq.f32.partialorder %v3225_v26, %v3227_v25 }
0x37dd   :  { %v3229_v30 = vsel %vm3228_vm10, %v6416_v2, 128 }
0x37de   :  { %v3231_v48 = vshra.s32 %v3229_v30, 16  ;;  %v3230_v3 = vand.u32 65535, %v3229_v30 }
0x37e0   :  { %v3233_v23 = vcvt.s32.f32 %v3231_v48  ;;  %v3232_v54 = vcvt.s32.f32 %v3230_v3 }
0x37e2   :  { %3234 = vmin.xlane.f32.xlu0 %v3233_v23 }
0x386b   :  { %v3235_v9 = vpop.xlane.xlu0 %3234 }
0x386c   :  { %vm3236_vm11 = vcmp.eq.f32.partialorder %v3233_v23, %v3235_v9  ;;  %v3241_v58 = vcvt.f32.s32 %v3235_v9 }
0x386d   :  { %v3237_v56 = vsel %vm3236_vm11, %v3232_v54, inf }
0x386e   :  { %3238 = vmin.xlane.f32.xlu1 %v3237_v56  ;;  %v3242_v7 = vshll.u32 %v3241_v58, 16 }
0x38f7   :  { %v3239_v60 = vpop.xlane.xlu1 %3238 }
0x38f8   :  { %v3240_v8 = vcvt.f32.s32 %v3239_v60 }
0x38fa   :  { %v3243_v62 = vadd.s32 %v3242_v7, %v3240_v8 }
0x38fc   :  { %vm3244_vm13 = vcmp.eq.s32.totalorder %v6416_v2, %v3243_v62 }
0x38fd   :  { %v4487_v63 = vsel %vm3244_vm13, 1.0, %v5780_v0 }
0x38fe   :  { %5320 = vmatmul.mubr.msk.f32.vlgmr.msra.gmra.mxu0 %vm151_vm3, %v4487_v63 }
0x39be   :  { %v3316_v14 = vpop.f32.mrf.mxu0 }
0x39bf   :  { %3320 = vst.msk [vmem:[#allocation2] sm:$0xff] %vm47_vm1, %v3316_v14 }
0x39c0   :  { %v5321_v6 = vpop.f32.mrf.mxu0 }
0x39c1 PF:  { %3322 = vrot.lane.b32.xlu0 %v6858_v59, %s5773_s28  ;;  %5322 = vmatprep.subr.mxu0 %v5769_v1  ;;  %s4495_s30 = sld [smem:[#allocation3 + $0x5]] }
0x39c2   :  { %5323 = vmatpush3.msra.mxu0 %v6414_v50  ;;  %5334 = vmatprep.mubr.msk.f32.mxu0 %vm5770_vm0, %v5769_v1 }
0x39c3   :  { %5324 = vmatprep.subr.mxu0 %v5769_v1  ;;  %5337 = vmatprep.subr.mxu1 %v5769_v1 }
0x39c4   :  { %5325 = vmatpush3.msra.mxu0 %v6425_v4  ;;  %5338 = vmatpush3.msra.mxu1 %v6491_v27 }
0x39c5   :  { %5326 = vmatprep.subr.mxu0 %v5769_v1  ;;  %5339 = vmatprep.subr.mxu1 %v5769_v1 }
0x39c6   :  { %5327 = vmatpush3.msra.mxu0 %v6430_v5  ;;  %5340 = vmatpush3.msra.mxu1 %v6496_v40  ;;  %v3321_v59 = vld [vmem:[#allocation2] sm:$0xff] }
0x39c7   :  { %5328 = vmatprep.subr.mxu0 %v5769_v1  ;;  %5341 = vmatprep.subr.mxu1 %v5769_v1  ;;  %p4496_p13 = scmp.eq.s32.totalorder %s4495_s30, 0 }
0x39c8   :  { %5329 = vmatpush3.msra.mxu0 %v6443_v51  ;;  %5342 = vmatpush3.msra.mxu1 %v6503_v28 }
0x39c9   :  { %5330 = vmatprep.subr.mxu0 %v5769_v1  ;;  %5343 = vmatprep.subr.mxu1 %v5769_v1 }
0x39ca   :  { %5331 = vmatpush3.msra.mxu0 %v6450_v52  ;;  %5344 = vmatpush3.msra.mxu1 %v6510_v41 }
0x39cb   :  { %5332 = vmatprep.subr.mxu0 %v5769_v1  ;;  %5345 = vmatprep.subr.mxu1 %v5769_v1 }
0x39cc   :  { %5333 = vmatpush3.msra.mxu0 %v6457_v53  ;;  %5346 = vmatpush3.msra.mxu1 %v6517_v42 }
0x39cd   :  { %5347 = vmatprep.subr.mxu1 %v5769_v1  ;;  %5353 = vmatprep.mubr.msk.f32.mxu1 %vm5770_vm0, %v5769_v1 }
0x39ce   :  { %5348 = vmatpush3.msra.mxu1 %v6528_v43  ;;  %5356 = vmatprep.subr.mxu0 %v5769_v1 }
0x39cf   :  { %5349 = vmatprep.subr.mxu1 %v5769_v1 }
0x39d0   :  { %5350 = vmatpush3.msra.mxu1 %v6533_v39 }
0x39d1   :  { %5351 = vmatprep.subr.mxu1 %v5769_v1 }
0x39d2   :  { %5352 = vmatpush3.msra.mxu1 %v6542_v44 }
0x3a33   :  { %v3323_v21 = vpop.permute.xlu0 %3322 }
0x3a34   :  { %v3325_v11 = vsel %vm47_vm1, %v3321_v59, %v3323_v21 }
0x3a35   :  { %5335 = vmatmul.mubr.msk.f32.vlgmr.msra.gmra.mxu0 %vm49_vm2, %v3325_v11 }
0x3a36   :  { %5357 = vmatpush3.msra.mxu0 %v6566_v15  ;;  %5364 = vmatprep.mubr.msk.f32.mxu0 %vm5770_vm0, %v5769_v1 }
0x3a37   :  { %5358 = vmatprep.subr.mxu0 %v5769_v1 }
0x3a38   :  { %5359 = vmatpush3.msra.mxu0 %v6571_v16 }
0x3a39   :  { %5360 = vmatprep.subr.mxu0 %v5769_v1 }
0x3a3a   :  { %5361 = vmatpush3.msra.mxu0 %v6578_v17 }
0x3a3b   :  { %5362 = vmatprep.subr.mxu0 %v5769_v1 }
0x3a3c   :  { %5363 = vmatpush3.msra.mxu0 %v6585_v18 }
0x3af5   :  { %v3395_v12 = vpop.f32.mrf.mxu0 }
0x3af6   :  { %v3396_v19 = vadd.f32 %v3395_v12, %v6476_v10 }
0x3af7   :  { %v5336_v20 = vpop.f32.mrf.mxu0 }
0x3af8   :  { %5706 = vtanh.f32 %v3396_v19  ;;  %v4490_v22 = vmul.f32 -1.442695, %v3396_v19 }
0x3afa   :  { %5708 = vpow2.f32 %v4490_v22 }
0x3b05   :  { %v5707_v35 = vpop.eup %5706 }
0x3b06   :  { %3408 = vrot.lane.b32.xlu0 %v5707_v35, %s5771_s11 }
0x3b07   :  { %v5709_v33 = vpop.eup %5708 }
0x3b08   :  { %v3402_v34 = vadd.f32 1.0, %v5709_v33 }
0x3b0a   :  { %5710 = vrcp.f32 %v3402_v34 }
0x3b17   :  { %v5711_v13 = vpop.eup %5710 }
0x3b18   :  { %v3406_v31 = vmul.f32 %v5711_v13, %v6852_v55 }
0x3b78   :  { %v3409_v36 = vpop.permute.xlu0 %3408 }
0x3b79   :  { %v3411_v37 = vmul.f32 %v5711_v13, %v3409_v36 }
0x3b7b   :  { %3413 = vrot.lane.b32.xlu1 %v3411_v37, %s5772_s12 }
0x3bed   :  { %v3414_v24 = vpop.permute.xlu1 %3413 }
0x3bee   :  { %v6944_v38 = vadd.f32 %v3414_v24, %v3406_v31 }
0x3bf0   :  { %5712 = vtanh.f32 %v6944_v38 }
0x3bfd   :  { %v5713_v26 = vpop.eup %5712 }
0x3bfe   :  { %3419 = vrot.lane.b32.xlu1 %v5713_v26, %s5771_s11 }
0x3c02   :  { %3427 = vrot.lane.b32.xlu1 %v6872_v61, %s5771_s11 }
0x3c70   :  { %v3420_v25 = vpop.permute.xlu1 %3419 }
0x3c71   :  { %v6950_v30 = vmul.f32 %v5711_v13, %v3420_v25 }
0x3c73   :  { %3424 = vrot.lane.b32.xlu0 %v6950_v30, %s5772_s12 }
0x3c74   :  { %v3428_v48 = vpop.permute.xlu1 %3427 }
0x3ce5   :  { %v3425_v23 = vpop.permute.xlu0 %3424 }
0x3ce6   :  { %v3430_v55 = vsel %vm151_vm3, %v3425_v23, %v3428_v48 }
0x3ce7   :  { %5354 = vmatmul.mubr.msk.f32.vlgmr.msra.gmra.mxu1 %vm153_vm4, %v3430_v55 }
0x3da7   :  { %v3500_v0 = vpop.f32.mrf.mxu1 }
0x3da8   :  { %v3501_v3 = vadd.f32 %v3500_v0, %v6555_v57 }
0x3da9   :  { %v5355_v9 = vpop.f32.mrf.mxu1 }
0x3daa   :  { %5714 = vtanh.f32 %v3501_v3  ;;  %v4492_v61 = vmul.f32 -1.442695, %v3501_v3 }
0x3dac   :  { %5716 = vpow2.f32 %v4492_v61 }
0x3db7   :  { %v5715_v54 = vpop.eup %5714 }
0x3db8   :  { %3513 = vrot.lane.b32.xlu0 %v5715_v54, %s5771_s11 }
0x3db9   :  { %v5717_v56 = vpop.eup %5716 }
0x3dba   :  { %v3507_v58 = vadd.f32 1.0, %v5717_v56 }
0x3dbc   :  { %5718 = vrcp.f32 %v3507_v58 }
0x3dc9   :  { %v5719_v60 = vpop.eup %5718 }
0x3dca   :  { %v3511_v62 = vmul.f32 %v5719_v60, %v6868_v32 }
0x3e2a   :  { %v3514_v7 = vpop.permute.xlu0 %3513 }
0x3e2b   :  { %v3516_v8 = vmul.f32 %v5719_v60, %v3514_v7 }
0x3e2d   :  { %3518 = vrot.lane.b32.xlu1 %v3516_v8, %s5772_s12 }
0x3e9f   :  { %v3519_v63 = vpop.permute.xlu1 %3518 }
0x3ea0   :  { %v6960_v14 = vadd.f32 %v3519_v63, %v3511_v62 }
0x3ea2   :  { %5720 = vtanh.f32 %v6960_v14 }
0x3eaf   :  { %v5721_v6 = vpop.eup %5720 }
0x3eb0   :  { %3524 = vrot.lane.b32.xlu0 %v5721_v6, %s5771_s11 }
0x3f22   :  { %v3525_v59 = vpop.permute.xlu0 %3524 }
0x3f23   :  { %v6964_v21 = vmul.f32 %v5719_v60, %v3525_v59 }
0x3f25   :  { %3529 = vrot.lane.b32.xlu1 %v6964_v21, %s5772_s12 }
0x3f97   :  { %v3530_v11 = vpop.permute.xlu1 %3529 }
0x3f98   :  { %5365 = vmatmul.mubr.msk.f32.vlgmr.msra.gmra.mxu0 %vm151_vm3, %v3530_v11 }
0x4057   :  { %3609 = sbr.rel (%p4496_p13) target bundleno = 16478 (0x405e), region = 57 }
0x4058   :  { %v3599_v12 = vpop.f32.mrf.mxu0 }
0x4059   :  { %v3600_v32 = vadd.f32 %v3599_v12, %v6599_v29 }
0x405a   :  { %v5366_v19 = vpop.f32.mrf.mxu0 }
0x405b   :  { %4494 = vst [vmem:[%s7149_s4 + $0x28] sm:$0xff] %v3600_v32 }
0x405c   :  { %v4497_v20 = vld [vmem:[%s7147_s2 + $0x28] sm:$0xff] }
0x405d   :  { %3612 = vst.msk [vmem:[#allocation2] sm:$0xff] %vm47_vm1, %v4497_v20 }
0x405e PF:  { %s4498_s9 = sld [smem:[#allocation3 + $0x5]] }
0x4064   :  { %p4499_p0 = scmp.ne.s32.totalorder %s4498_s9, 0 }
0x4066   :  { %3617 = sbr.rel (%p4499_p0) target bundleno = 17116 (0x42dc), region = 61 }
0x406b   :  { %vm3618_vm14 = vcmp.lt.s32.totalorder %v6416_v2, 32  ;;  %v5782_v36 = vmov 0.0   ;;  %vm5783_vm6 = vmmov 0  }
0x406c   :  { %v3619_v35 = vsel %vm3618_vm14, %v3600_v32, -1e+30  ;;  %5367 = vmatprep.subr.mxu0 %v5782_v36  ;;  %5375 = vmatprep.mubr.msk.f32.mxu0 %vm5783_vm6, %v5782_v36 }
0x406d   :  { %3620 = vmax.xlane.f32.xlu0 %v3619_v35  ;;  %5368 = vmatpush3.msra.mxu0 %v6409_v49 }
0x406e   :  { %5369 = vmatprep.subr.mxu0 %v5782_v36 }
0x406f   :  { %5370 = vmatpush3.msra.mxu0 %v6404_v47 }
0x4070   :  { %5371 = vmatprep.subr.mxu0 %v5782_v36 }
0x4071   :  { %5372 = vmatpush3.msra.mxu0 %v6399_v46 }
0x4072   :  { %5373 = vmatprep.subr.mxu0 %v5782_v36 }
0x4073   :  { %5374 = vmatpush3.msra.mxu0 %v6394_v45 }
0x40f6   :  { %v3621_v22 = vpop.xlane.xlu0 %3620 }
0x40f7   :  { %vm3622_vm15 = vcmp.eq.f32.partialorder %v3619_v35, %v3621_v22 }
0x40f8   :  { %v3623_v33 = vsel %vm3622_vm15, %v6416_v2, 128 }
0x40f9   :  { %v3625_v34 = vshra.s32 %v3623_v33, 16  ;;  %v3624_v37 = vand.u32 65535, %v3623_v33 }
0x40fb   :  { %v3627_v13 = vcvt.s32.f32 %v3625_v34  ;;  %v3626_v24 = vcvt.s32.f32 %v3624_v37 }
0x40fd   :  { %3628 = vmin.xlane.f32.xlu0 %v3627_v13 }
0x4186   :  { %v3629_v31 = vpop.xlane.xlu0 %3628 }
0x4187   :  { %vm3630_vm5 = vcmp.eq.f32.partialorder %v3627_v13, %v3629_v31  ;;  %v3635_v25 = vcvt.f32.s32 %v3629_v31 }
0x4188   :  { %v3631_v26 = vsel %vm3630_vm5, %v3626_v24, inf }
0x4189   :  { %3632 = vmin.xlane.f32.xlu1 %v3631_v26  ;;  %v3636_v23 = vshll.u32 %v3635_v25, 16 }
0x4212   :  { %v3633_v48 = vpop.xlane.xlu1 %3632 }
0x4213   :  { %v3634_v55 = vcvt.f32.s32 %v3633_v48 }
0x4215   :  { %v3637_v0 = vadd.s32 %v3636_v23, %v3634_v55 }
0x4217   :  { %vm3638_vm7 = vcmp.eq.s32.totalorder %v6416_v2, %v3637_v0 }
0x4218   :  { %v4500_v3 = vsel %vm3638_vm7, 1.0, %v5782_v36 }
0x4219   :  { %5376 = vmatmul.mubr.msk.f32.vlgmr.msra.gmra.mxu0 %vm151_vm3, %v4500_v3 }
0x42d9   :  { %v3710_v9 = vpop.f32.mrf.mxu0 }
0x42da   :  { %3714 = vst.msk [vmem:[#allocation2] sm:$0xff] %vm47_vm1, %v3710_v9 }
0x42db   :  { %v5377_v54 = vpop.f32.mrf.mxu0 }
0x42dc PF:  { %3716 = vrot.lane.b32.xlu0 %v6950_v30, %s5773_s28  ;;  %5378 = vmatprep.subr.mxu0 %v5769_v1  ;;  %s4508_s10 = sld [smem:[#allocation3 + $0x6]] }
0x42dd   :  { %5379 = vmatpush3.msra.mxu0 %v6414_v50  ;;  %5390 = vmatprep.mubr.msk.f32.mxu0 %vm5770_vm0, %v5769_v1 }
0x42de   :  { %5380 = vmatprep.subr.mxu0 %v5769_v1  ;;  %5393 = vmatprep.subr.mxu1 %v5769_v1 }
0x42df   :  { %5381 = vmatpush3.msra.mxu0 %v6425_v4  ;;  %5394 = vmatpush3.msra.mxu1 %v6491_v27 }
0x42e0   :  { %5382 = vmatprep.subr.mxu0 %v5769_v1  ;;  %5395 = vmatprep.subr.mxu1 %v5769_v1 }
0x42e1   :  { %5383 = vmatpush3.msra.mxu0 %v6430_v5  ;;  %5396 = vmatpush3.msra.mxu1 %v6496_v40  ;;  %v3715_v30 = vld [vmem:[#allocation2] sm:$0xff] }
0x42e2   :  { %5384 = vmatprep.subr.mxu0 %v5769_v1  ;;  %5397 = vmatprep.subr.mxu1 %v5769_v1  ;;  %p4509_p1 = scmp.eq.s32.totalorder %s4508_s10, 0 }
0x42e3   :  { %5385 = vmatpush3.msra.mxu0 %v6443_v51  ;;  %5398 = vmatpush3.msra.mxu1 %v6503_v28 }
0x42e4   :  { %5386 = vmatprep.subr.mxu0 %v5769_v1  ;;  %5399 = vmatprep.subr.mxu1 %v5769_v1 }
0x42e5   :  { %5387 = vmatpush3.msra.mxu0 %v6450_v52  ;;  %5400 = vmatpush3.msra.mxu1 %v6510_v41 }
0x42e6   :  { %5388 = vmatprep.subr.mxu0 %v5769_v1  ;;  %5401 = vmatprep.subr.mxu1 %v5769_v1 }
0x42e7   :  { %5389 = vmatpush3.msra.mxu0 %v6457_v53  ;;  %5402 = vmatpush3.msra.mxu1 %v6517_v42 }
0x42e8   :  { %5403 = vmatprep.subr.mxu1 %v5769_v1  ;;  %5409 = vmatprep.mubr.msk.f32.mxu1 %vm5770_vm0, %v5769_v1 }
0x42e9   :  { %5404 = vmatpush3.msra.mxu1 %v6528_v43  ;;  %5412 = vmatprep.subr.mxu0 %v5769_v1 }
0x42ea   :  { %5405 = vmatprep.subr.mxu1 %v5769_v1 }
0x42eb   :  { %5406 = vmatpush3.msra.mxu1 %v6533_v39 }
0x42ec   :  { %5407 = vmatprep.subr.mxu1 %v5769_v1 }
0x42ed   :  { %5408 = vmatpush3.msra.mxu1 %v6542_v44 }
0x434e   :  { %v3717_v61 = vpop.permute.xlu0 %3716 }
0x434f   :  { %v3719_v56 = vsel %vm47_vm1, %v3715_v30, %v3717_v61 }
0x4350   :  { %5391 = vmatmul.mubr.msk.f32.vlgmr.msra.gmra.mxu0 %vm49_vm2, %v3719_v56 }
0x4351   :  { %5413 = vmatpush3.msra.mxu0 %v6566_v15  ;;  %5420 = vmatprep.mubr.msk.f32.mxu0 %vm5770_vm0, %v5769_v1 }
0x4352   :  { %5414 = vmatprep.subr.mxu0 %v5769_v1 }
0x4353   :  { %5415 = vmatpush3.msra.mxu0 %v6571_v16 }
0x4354   :  { %5416 = vmatprep.subr.mxu0 %v5769_v1 }
0x4355   :  { %5417 = vmatpush3.msra.mxu0 %v6578_v17 }
0x4356   :  { %5418 = vmatprep.subr.mxu0 %v5769_v1 }
0x4357   :  { %5419 = vmatpush3.msra.mxu0 %v6585_v18 }
0x4410   :  { %v3789_v58 = vpop.f32.mrf.mxu0 }
0x4411   :  { %v3790_v60 = vadd.f32 %v3789_v58, %v6476_v10 }
0x4412   :  { %v5392_v7 = vpop.f32.mrf.mxu0 }
0x4413   :  { %5722 = vtanh.f32 %v3790_v60  ;;  %v4503_v62 = vmul.f32 -1.442695, %v3790_v60 }
0x4415   :  { %5724 = vpow2.f32 %v4503_v62 }
0x4420   :  { %v5723_v8 = vpop.eup %5722 }
0x4421   :  { %3802 = vrot.lane.b32.xlu0 %v5723_v8, %s5771_s11 }
0x4422   :  { %v5725_v63 = vpop.eup %5724 }
0x4423   :  { %v3796_v6 = vadd.f32 1.0, %v5725_v63 }
0x4425   :  { %5726 = vrcp.f32 %v3796_v6 }
0x4432   :  { %v5727_v59 = vpop.eup %5726 }
0x4433   :  { %v3800_v32 = vmul.f32 %v5727_v59, %v6944_v38 }
0x4493   :  { %v3803_v11 = vpop.permute.xlu0 %3802 }
0x4494   :  { %v3805_v12 = vmul.f32 %v5727_v59, %v3803_v11 }
0x4496   :  { %3807 = vrot.lane.b32.xlu1 %v3805_v12, %s5772_s12 }
0x4508   :  { %v3808_v19 = vpop.permute.xlu1 %3807 }
0x4509   :  { %v7036_v20 = vadd.f32 %v3808_v19, %v3800_v32 }
0x450b   :  { %5728 = vtanh.f32 %v7036_v20 }
0x4518   :  { %v5729_v35 = vpop.eup %5728 }
0x4519   :  { %3813 = vrot.lane.b32.xlu1 %v5729_v35, %s5771_s11 }
0x451d   :  { %3821 = vrot.lane.b32.xlu1 %v6964_v21, %s5771_s11 }
0x458b   :  { %v3814_v22 = vpop.permute.xlu1 %3813 }
0x458c   :  { %v7042_v33 = vmul.f32 %v5727_v59, %v3814_v22 }
0x458e   :  { %3818 = vrot.lane.b32.xlu0 %v7042_v33, %s5772_s12 }
0x458f   :  { %v3822_v34 = vpop.permute.xlu1 %3821 }
0x4600   :  { %v3819_v13 = vpop.permute.xlu0 %3818 }
0x4601   :  { %v3824_v38 = vsel %vm151_vm3, %v3819_v13, %v3822_v34 }
0x4602   :  { %5410 = vmatmul.mubr.msk.f32.vlgmr.msra.gmra.mxu1 %vm153_vm4, %v3824_v38 }
0x46c2   :  { %v3894_v36 = vpop.f32.mrf.mxu1 }
0x46c3   :  { %v3895_v37 = vadd.f32 %v3894_v36, %v6555_v57 }
0x46c4   :  { %v5411_v31 = vpop.f32.mrf.mxu1 }
0x46c5   :  { %5730 = vtanh.f32 %v3895_v37  ;;  %v4505_v21 = vmul.f32 -1.442695, %v3895_v37 }
0x46c7   :  { %5732 = vpow2.f32 %v4505_v21 }
0x46d2   :  { %v5731_v24 = vpop.eup %5730 }
0x46d3   :  { %3907 = vrot.lane.b32.xlu0 %v5731_v24, %s5771_s11 }
0x46d4   :  { %v5733_v26 = vpop.eup %5732 }
0x46d5   :  { %v3901_v25 = vadd.f32 1.0, %v5733_v26 }
0x46d7   :  { %5734 = vrcp.f32 %v3901_v25 }
0x46e4   :  { %v5735_v48 = vpop.eup %5734 }
0x46e5   :  { %v3905_v0 = vmul.f32 %v5735_v48, %v6960_v14 }
0x4745   :  { %v3908_v23 = vpop.permute.xlu0 %3907 }
0x4746   :  { %v3910_v55 = vmul.f32 %v5735_v48, %v3908_v23 }
0x4748   :  { %3912 = vrot.lane.b32.xlu1 %v3910_v55, %s5772_s12 }
0x47ba   :  { %v3913_v3 = vpop.permute.xlu1 %3912 }
0x47bb   :  { %v7052_v9 = vadd.f32 %v3913_v3, %v3905_v0 }
0x47bd   :  { %5736 = vtanh.f32 %v7052_v9 }
0x47ca   :  { %v5737_v54 = vpop.eup %5736 }
0x47cb   :  { %3918 = vrot.lane.b32.xlu0 %v5737_v54, %s5771_s11 }
0x483d   :  { %v3919_v30 = vpop.permute.xlu0 %3918 }
0x483e   :  { %v7056_v61 = vmul.f32 %v5735_v48, %v3919_v30 }
0x4840   :  { %3923 = vrot.lane.b32.xlu1 %v7056_v61, %s5772_s12 }
0x48b2   :  { %v3924_v56 = vpop.permute.xlu1 %3923 }
0x48b3   :  { %5421 = vmatmul.mubr.msk.f32.vlgmr.msra.gmra.mxu0 %vm151_vm3, %v3924_v56 }
0x4972   :  { %4003 = sbr.rel (%p4509_p1) target bundleno = 18809 (0x4979), region = 65 }
0x4973   :  { %v3993_v58 = vpop.f32.mrf.mxu0 }
0x4974   :  { %v3994_v14 = vadd.f32 %v3993_v58, %v6599_v29 }
0x4975   :  { %v5422_v60 = vpop.f32.mrf.mxu0 }
0x4976   :  { %4507 = vst [vmem:[%s7149_s4 + $0x30] sm:$0xff] %v3994_v14 }
0x4977   :  { %v4510_v7 = vld [vmem:[%s7147_s2 + $0x30] sm:$0xff] }
0x4978   :  { %4006 = vst.msk [vmem:[#allocation2] sm:$0xff] %vm47_vm1, %v4510_v7 }
0x4979 PF:  { %s4511_s1 = sld [smem:[#allocation3 + $0x6]] }
0x497f   :  { %p4512_p2 = scmp.ne.s32.totalorder %s4511_s1, 0 }
0x4981   :  { %4011 = sbr.rel (%p4512_p2) target bundleno = 19447 (0x4bf7), region = 69 }
0x4986   :  { %vm4012_vm8 = vcmp.lt.s32.totalorder %v6416_v2, 32  ;;  %v5784_v11 = vmov 0.0   ;;  %vm5785_vm11 = vmmov 0  }
0x4987   :  { %v4013_v8 = vsel %vm4012_vm8, %v3994_v14, -1e+30  ;;  %5423 = vmatprep.subr.mxu0 %v5784_v11  ;;  %5431 = vmatprep.mubr.msk.f32.mxu0 %vm5785_vm11, %v5784_v11 }
0x4988   :  { %4014 = vmax.xlane.f32.xlu0 %v4013_v8  ;;  %5424 = vmatpush3.msra.mxu0 %v6409_v49 }
0x4989   :  { %5425 = vmatprep.subr.mxu0 %v5784_v11 }
0x498a   :  { %5426 = vmatpush3.msra.mxu0 %v6404_v47 }
0x498b   :  { %5427 = vmatprep.subr.mxu0 %v5784_v11 }
0x498c   :  { %5428 = vmatpush3.msra.mxu0 %v6399_v46 }
0x498d   :  { %5429 = vmatprep.subr.mxu0 %v5784_v11 }
0x498e   :  { %5430 = vmatpush3.msra.mxu0 %v6394_v45 }
0x4a11   :  { %v4015_v62 = vpop.xlane.xlu0 %4014 }
0x4a12   :  { %vm4016_vm9 = vcmp.eq.f32.partialorder %v4013_v8, %v4015_v62 }
0x4a13   :  { %v4017_v63 = vsel %vm4016_vm9, %v6416_v2, 128 }
0x4a14   :  { %v4019_v6 = vshra.s32 %v4017_v63, 16  ;;  %v4018_v12 = vand.u32 65535, %v4017_v63 }
0x4a16   :  { %v4021_v59 = vcvt.s32.f32 %v4019_v6  ;;  %v4020_v19 = vcvt.s32.f32 %v4018_v12 }
0x4a18   :  { %4022 = vmin.xlane.f32.xlu0 %v4021_v59 }
0x4aa1   :  { %v4023_v32 = vpop.xlane.xlu0 %4022 }
0x4aa2   :  { %vm4024_vm10 = vcmp.eq.f32.partialorder %v4021_v59, %v4023_v32  ;;  %v4029_v22 = vcvt.f32.s32 %v4023_v32 }
0x4aa3   :  { %v4025_v35 = vsel %vm4024_vm10, %v4020_v19, inf }
0x4aa4   :  { %4026 = vmin.xlane.f32.xlu1 %v4025_v35  ;;  %v4030_v49 = vshll.u32 %v4029_v22, 16 }
0x4b2d   :  { %v4027_v34 = vpop.xlane.xlu1 %4026 }
0x4b2e   :  { %v4028_v13 = vcvt.f32.s32 %v4027_v34 }
0x4b30   :  { %v4031_v38 = vadd.s32 %v4030_v49, %v4028_v13 }
0x4b32   :  { %vm4032_vm12 = vcmp.eq.s32.totalorder %v6416_v2, %v4031_v38 }
0x4b33   :  { %v4513_v47 = vsel %vm4032_vm12, 1.0, %v5784_v11 }
0x4b34   :  { %5432 = vmatmul.mubr.msk.f32.vlgmr.msra.gmra.mxu0 %vm151_vm3, %v4513_v47 }
0x4bf4   :  { %v4104_v46 = vpop.f32.mrf.mxu0 }
0x4bf5   :  { %4108 = vst.msk [vmem:[#allocation2] sm:$0xff] %vm47_vm1, %v4104_v46 }
0x4bf6   :  { %v5433_v45 = vpop.f32.mrf.mxu0 }
0x4bf7 PF:  { %4110 = vrot.lane.b32.xlu0 %v7042_v33, %s5773_s28  ;;  %5434 = vmatprep.subr.mxu0 %v5769_v1 }
0x4bf8   :  { %5435 = vmatpush3.msra.mxu0 %v6414_v50  ;;  %5446 = vmatprep.mubr.msk.f32.mxu0 %vm5770_vm0, %v5769_v1 }
0x4bf9   :  { %5436 = vmatprep.subr.mxu0 %v5769_v1  ;;  %5449 = vmatprep.subr.mxu1 %v5769_v1 }
0x4bfa   :  { %5437 = vmatpush3.msra.mxu0 %v6425_v4  ;;  %5450 = vmatpush3.msra.mxu1 %v6491_v27 }
0x4bfb   :  { %5438 = vmatprep.subr.mxu0 %v5769_v1  ;;  %5451 = vmatprep.subr.mxu1 %v5769_v1 }
0x4bfc   :  { %5439 = vmatpush3.msra.mxu0 %v6430_v5  ;;  %5452 = vmatpush3.msra.mxu1 %v6496_v40  ;;  %v4109_v50 = vld [vmem:[#allocation2] sm:$0xff] }
0x4bfd   :  { %5440 = vmatprep.subr.mxu0 %v5769_v1  ;;  %5453 = vmatprep.subr.mxu1 %v5769_v1 }
0x4bfe   :  { %5441 = vmatpush3.msra.mxu0 %v6443_v51  ;;  %5454 = vmatpush3.msra.mxu1 %v6503_v28 }
0x4bff   :  { %5442 = vmatprep.subr.mxu0 %v5769_v1  ;;  %5455 = vmatprep.subr.mxu1 %v5769_v1 }
0x4c00   :  { %5443 = vmatpush3.msra.mxu0 %v6450_v52  ;;  %5456 = vmatpush3.msra.mxu1 %v6510_v41 }
0x4c01   :  { %5444 = vmatprep.subr.mxu0 %v5769_v1  ;;  %5457 = vmatprep.subr.mxu1 %v5769_v1 }
0x4c02   :  { %5445 = vmatpush3.msra.mxu0 %v6457_v53  ;;  %5458 = vmatpush3.msra.mxu1 %v6517_v42 }
0x4c03   :  { %5459 = vmatprep.subr.mxu1 %v5769_v1  ;;  %5465 = vmatprep.mubr.msk.f32.mxu1 %vm5770_vm0, %v5769_v1 }
0x4c04   :  { %5460 = vmatpush3.msra.mxu1 %v6528_v43  ;;  %5468 = vmatprep.subr.mxu0 %v5769_v1 }
0x4c05   :  { %5461 = vmatprep.subr.mxu1 %v5769_v1 }
0x4c06   :  { %5462 = vmatpush3.msra.mxu1 %v6533_v39 }
0x4c07   :  { %5463 = vmatprep.subr.mxu1 %v5769_v1 }
0x4c08   :  { %5464 = vmatpush3.msra.mxu1 %v6542_v44 }
0x4c69   :  { %v4111_v2 = vpop.permute.xlu0 %4110 }
0x4c6a   :  { %v4113_v4 = vsel %vm47_vm1, %v4109_v50, %v4111_v2 }
0x4c6b   :  { %5447 = vmatmul.mubr.msk.f32.vlgmr.msra.gmra.mxu0 %vm49_vm2, %v4113_v4 }
0x4c6c   :  { %5469 = vmatpush3.msra.mxu0 %v6566_v15  ;;  %5476 = vmatprep.mubr.msk.f32.mxu0 %vm5770_vm0, %v5769_v1 }
0x4c6d   :  { %5470 = vmatprep.subr.mxu0 %v5769_v1 }
0x4c6e   :  { %5471 = vmatpush3.msra.mxu0 %v6571_v16 }
0x4c6f   :  { %5472 = vmatprep.subr.mxu0 %v5769_v1 }
0x4c70   :  { %5473 = vmatpush3.msra.mxu0 %v6578_v17 }
0x4c71   :  { %5474 = vmatprep.subr.mxu0 %v5769_v1 }
0x4c72   :  { %5475 = vmatpush3.msra.mxu0 %v6585_v18 }
0x4d2b   :  { %v4183_v5 = vpop.f32.mrf.mxu0 }
0x4d2c   :  { %v4184_v51 = vadd.f32 %v4183_v5, %v6476_v10 }
0x4d2d   :  { %v5448_v52 = vpop.f32.mrf.mxu0 }
0x4d2e   :  { %5738 = vtanh.f32 %v4184_v51  ;;  %v4516_v27 = vmul.f32 -1.442695, %v4184_v51 }
0x4d30   :  { %5740 = vpow2.f32 %v4516_v27 }
0x4d3b   :  { %v5739_v53 = vpop.eup %5738 }
0x4d3c   :  { %4196 = vrot.lane.b32.xlu0 %v5739_v53, %s5771_s11 }
0x4d3d   :  { %v5741_v40 = vpop.eup %5740 }
0x4d3e   :  { %v4190_v28 = vadd.f32 1.0, %v5741_v40 }
0x4d40   :  { %5742 = vrcp.f32 %v4190_v28 }
0x4d4d   :  { %v5743_v41 = vpop.eup %5742 }
0x4d4e   :  { %v4194_v1 = vmul.f32 %v5743_v41, %v7036_v20 }
0x4dae   :  { %v4197_v42 = vpop.permute.xlu0 %4196 }
0x4daf   :  { %v4199_v43 = vmul.f32 %v5743_v41, %v4197_v42 }
0x4db1   :  { %4201 = vrot.lane.b32.xlu1 %v4199_v43, %s5772_s12 }
0x4e23   :  { %v4202_v39 = vpop.permute.xlu1 %4201 }
0x4e24   :  { %v4204_v44 = vadd.f32 %v4202_v39, %v4194_v1 }
0x4e26   :  { %5744 = vtanh.f32 %v4204_v44 }
0x4e33   :  { %v5745_v10 = vpop.eup %5744 }
0x4e34   :  { %4207 = vrot.lane.b32.xlu1 %v5745_v10, %s5771_s11 }
0x4e38   :  { %4215 = vrot.lane.b32.xlu1 %v7056_v61, %s5771_s11 }
0x4ea6   :  { %v4208_v15 = vpop.permute.xlu1 %4207 }
0x4ea7   :  { %v4210_v16 = vmul.f32 %v5743_v41, %v4208_v15 }
0x4ea9   :  { %4212 = vrot.lane.b32.xlu0 %v4210_v16, %s5772_s12 }
0x4eaa   :  { %v4216_v17 = vpop.permute.xlu1 %4215 }
0x4f1b   :  { %v4213_v18 = vpop.permute.xlu0 %4212 }
0x4f1c   :  { %v4218_v33 = vsel %vm151_vm3, %v4213_v18, %v4216_v17 }
0x4f1d   :  { %5466 = vmatmul.mubr.msk.f32.vlgmr.msra.gmra.mxu1 %vm153_vm4, %v4218_v33 }
0x4fdd   :  { %v4288_v20 = vpop.f32.mrf.mxu1 }
0x4fde   :  { %v4289_v36 = vadd.f32 %v4288_v20, %v6555_v57 }
0x4fdf   :  { %v5467_v37 = vpop.f32.mrf.mxu1 }
0x4fe0   :  { %5746 = vtanh.f32 %v4289_v36  ;;  %v4518_v24 = vmul.f32 -1.442695, %v4289_v36 }
0x4fe2   :  { %5748 = vpow2.f32 %v4518_v24 }
0x4fed   :  { %v5747_v31 = vpop.eup %5746 }
0x4fee   :  { %4301 = vrot.lane.b32.xlu0 %v5747_v31, %s5771_s11 }
0x4fef   :  { %v5749_v21 = vpop.eup %5748 }
0x4ff0   :  { %v4295_v26 = vadd.f32 1.0, %v5749_v21 }
0x4ff2   :  { %5750 = vrcp.f32 %v4295_v26 }
0x4fff   :  { %v5751_v25 = vpop.eup %5750 }
0x5000   :  { %v4299_v55 = vmul.f32 %v5751_v25, %v7052_v9 }
0x5060   :  { %v4302_v48 = vpop.permute.xlu0 %4301 }
0x5061   :  { %v4304_v23 = vmul.f32 %v5751_v25, %v4302_v48 }
0x5063   :  { %4306 = vrot.lane.b32.xlu1 %v4304_v23, %s5772_s12 }
0x50d5   :  { %v4307_v0 = vpop.permute.xlu1 %4306 }
0x50d6   :  { %v4309_v3 = vadd.f32 %v4307_v0, %v4299_v55 }
0x50d8   :  { %5752 = vtanh.f32 %v4309_v3 }
0x50e5   :  { %v5753_v57 = vpop.eup %5752 }
0x50e6   :  { %4312 = vrot.lane.b32.xlu0 %v5753_v57, %s5771_s11 }
0x5158   :  { %v4313_v54 = vpop.permute.xlu0 %4312 }
0x5159   :  { %v4315_v30 = vmul.f32 %v5751_v25, %v4313_v54 }
0x515b   :  { %4317 = vrot.lane.b32.xlu1 %v4315_v30, %s5772_s12 }
0x51cd   :  { %v4318_v61 = vpop.permute.xlu1 %4317 }
0x51ce   :  { %5477 = vmatmul.mubr.msk.f32.vlgmr.msra.gmra.mxu0 %vm151_vm3, %v4318_v61 }
0x528e   :  { %v4387_v56 = vpop.f32.mrf.mxu0 }
0x528f   :  { %v4388_v58 = vadd.f32 %v4387_v56, %v6599_v29 }
0x5290   :  { %v5478_v14 = vpop.f32.mrf.mxu0 }
0x5291   :  { %4520 = vst [vmem:[%s7149_s4 + $0x38] sm:$0xff] %v4388_v58 }
0x5292   :  { %4397 = vsyncpa [#allocation4], 1 }

</bundles_post_ra>
